<compile_context>
chip_gen: v7x
topology: tpu7x:2x2x1
jax: 0.10.0
libtpu: 0.0.40
codegen_flags: <defaults>
</compile_context>

<pallas_src>
import math

import numpy as np

import jax
import jax.numpy as jnp
from jax import lax
from jax.experimental import pallas as pl
from jax.experimental.pallas import tpu as pltpu  # noqa: F401

HEADS = 4
D_MODEL = 32
D_FF = 2 * D_MODEL
D_K = D_MODEL // HEADS
LN_EPS = 1e-6
NEG_INF = -1e9


def _make_coattn_kernel(B, Lp):
    """Kernel factory specialized on the static batch size / padded length."""
    N = 2 * B              # stacked sequences: n < B -> states1[b], n >= B -> states2[b]
    NL = N * Lp            # stacked sequence rows
    S = HEADS * NL         # head-major stacked score rows / cols
    scale = 1.0 / math.sqrt(D_K)

    def kernel(s_ref, kvm_ref, pstart_ref, qpool_ref,
               wqkv_ref, bqkv_ref, wo_ref, bo_ref,
               w1_ref, b1_ref, w2_ref, b2_ref, g_ref, beta_ref, out_ref):
        x_in = s_ref[...].astype(jnp.bfloat16)                        # (NL, D)

        # ---- fused Q/K/V projection: one (NL, D) @ (D, 3D) matmul ----
        qkv = (jnp.dot(x_in, wqkv_ref[...], preferred_element_type=jnp.float32)
               + bqkv_ref[...]).astype(jnp.bfloat16)                  # (NL, 3D)

        # ---- head-major sublane stacking: row = h*NL + n*Lp + l ----
        def stack(off):
            return jnp.concatenate(
                [qkv[:, off + h * D_K: off + (h + 1) * D_K] for h in range(HEADS)],
                axis=0)                                               # (S, D_K)

        qh = stack(0)
        kh = stack(D_MODEL)
        vh = stack(2 * D_MODEL)

        # ---- ONE full-width scores matmul ----
        scores = lax.dot_general(qh, kh, (((1,), (1,)), ((), ())),
                                 preferred_element_type=jnp.float32) * scale  # (S, S)

        # ---- block-permutation mask, built in-kernel (no big bias DMA) ----
        col_ids = lax.broadcasted_iota(jnp.int32, (1, S), 1)          # (1, S)
        rel = col_ids - pstart_ref[...]                               # (S, S)
        block_ok = (rel >= 0) & (rel < Lp)                            # partner (h, n) block
        kv_ok = jnp.concatenate([kvm_ref[...]] * HEADS, axis=1) > 0.0  # (1, S)
        scores = jnp.where(block_ok & kv_ok, scores, NEG_INF)

        # ---- ONE full-width softmax (off-block entries underflow to 0) ----
        m = jnp.max(scores, axis=-1, keepdims=True)
        e = jnp.exp(scores - m)
        p = (e * pl.reciprocal(jnp.sum(e, axis=-1, keepdims=True), approx=True)
             ).astype(jnp.bfloat16)                                   # (S, S)

        # ---- ONE P@V matmul, then per-head accumulation via Wo row-slices ----
        o = jnp.dot(p, vh, preferred_element_type=jnp.float32
                    ).astype(jnp.bfloat16)                            # (S, D_K)
        x = jnp.zeros((NL, D_MODEL), jnp.float32)
        for h in range(HEADS):
            x = x + jnp.dot(o[h * NL:(h + 1) * NL, :],
                            wo_ref[h * D_K:(h + 1) * D_K, :],
                            preferred_element_type=jnp.float32)       # (NL, D)
        x = x + bo_ref[...]

        # ---- positionwise feed-forward ----
        h1 = jnp.maximum(
            jnp.dot(x.astype(jnp.bfloat16), w1_ref[...],
                    preferred_element_type=jnp.float32) + b1_ref[...], 0.0)
        y = jnp.dot(h1.astype(jnp.bfloat16), w2_ref[...],
                    preferred_element_type=jnp.float32) + b2_ref[...]

        # ---- LayerNorm (PyTorch module: unbiased std, eps added to std) ----
        mean = jnp.mean(y, axis=-1, keepdims=True)
        cent = y - mean
        var = jnp.sum(cent * cent, axis=-1, keepdims=True) / (D_MODEL - 1)
        inv = pl.reciprocal(jnp.sqrt(var) + LN_EPS, approx=True)
        yn = g_ref[...] * cent * inv + beta_ref[...]                  # (NL, D)

        # ---- mean-pool over the valid query rows of each sequence ----
        out_ref[...] = jnp.dot(qpool_ref[...], yn,
                               preferred_element_type=jnp.float32)    # (N, D)

    return kernel


def _pad_seq(x, target_len):
    pad = target_len - x.shape[1]
    if pad == 0:
        return x
    cfg = [(0, 0)] * x.ndim
    cfg[1] = (0, pad)
    return jnp.pad(x, cfg)


@jax.jit
def coattention(states1, states2, mask1, mask2, params):
    """Returns (x1, x2): pooled DUMA co-attention outputs, each (B, D_MODEL)."""
    B, L1, D = states1.shape
    _, L2, _ = states2.shape
    Lp = ((max(L1, L2) + 7) // 8) * 8       # common padded length, sublane aligned
    N = 2 * B
    NL = N * Lp
    S = HEADS * NL

    # single stacked/padded states tensor: rows [0:B*Lp]=states1, [B*Lp:]=states2
    s1 = _pad_seq(states1.astype(jnp.float32), Lp)
    s2 = _pad_seq(states2.astype(jnp.float32), Lp)
    s = jnp.concatenate([s1, s2], axis=0).reshape(NL, D)

    # raw key-validity mask per stacked row (padding rows -> 0)
    m1 = _pad_seq(mask1.astype(jnp.float32), Lp)
    m2 = _pad_seq(mask2.astype(jnp.float32), Lp)
    kvm = jnp.concatenate([m1, m2], axis=0).reshape(1, NL)

    # --- static helpers: numpy at trace time -> tiny XLA constants (~1 KB) ---
    # start column of the partner key block for every stacked score row
    r = np.arange(S)
    hh = r // NL
    nn = (r // Lp) % N
    pstart = jnp.asarray(
        (hh * NL + ((nn + B) % N) * Lp).astype(np.int32).reshape(S, 1))
    # mean-pool weights over the valid (un-padded) query rows of each sequence
    qp = np.zeros((N, NL), np.float32)
    for ni in range(N):
        Ln = L1 if ni < B else L2
        qp[ni, ni * Lp: ni * Lp + Ln] = 1.0 / Ln
    qpool = jnp.asarray(qp)

    # fused / pre-cast weights (bf16 matmul operands, f32 biases & LN params)
    wqkv = jnp.concatenate([params["wq"], params["wk"], params["wv"]],
                           axis=1).astype(jnp.bfloat16)               # (D, 3D)
    bqkv = jnp.concatenate([params["bq"], params["bk"], params["bv"]],
                           axis=1).astype(jnp.float32)                # (1, 3D)
    wo = params["wo"].astype(jnp.bfloat16)
    bo = params["bo"].astype(jnp.float32)
    w1 = params["w1"].astype(jnp.bfloat16)
    b1 = params["b1"].astype(jnp.float32)
    w2 = params["w2"].astype(jnp.bfloat16)
    b2 = params["b2"].astype(jnp.float32)
    g = params["g"].astype(jnp.float32)
    beta = params["beta"].astype(jnp.float32)

    out = pl.pallas_call(
        _make_coattn_kernel(B, Lp),
        out_shape=jax.ShapeDtypeStruct((N, D_MODEL), jnp.float32),
    )(s, kvm, pstart, qpool, wqkv, bqkv, wo, bo, w1, b1, w2, b2, g, beta)

    return out[:B], out[B:]


# -------------- pure-JAX reference (mirrors the PyTorch forward, f32) --------------
def _reference_half(states_q, states_kv, mask_kv, p):
    B, Lq, D = states_q.shape
    _, Lkv, _ = states_kv.shape
    q = states_q @ p["wq"] + p["bq"]
    k = states_kv @ p["wk"] + p["bk"]
    v = states_kv @ p["wv"] + p["bv"]

    def split(t, L):
        return t.reshape(B, L, HEADS, D_K).transpose(0, 2, 1, 3)   # (B, h, L, d_k)

    qh, kh, vh = split(q, Lq), split(k, Lkv), split(v, Lkv)
    scores = jnp.einsum("bhqd,bhkd->bhqk", qh, kh) / math.sqrt(D_K)
    m = mask_kv.reshape(B, 1, 1, Lkv)
    scores = jnp.where(m == 0, -1e9, scores)
    pa = jax.nn.softmax(scores, axis=-1)
    o = jnp.einsum("bhqk,bhkd->bhqd", pa, vh).transpose(0, 2, 1, 3).reshape(B, Lq, D)
    x = o @ p["wo"] + p["bo"]
    y = jnp.maximum(x @ p["w1"] + p["b1"], 0.0) @ p["w2"] + p["b2"]
    mean = y.mean(-1, keepdims=True)
    cent = y - mean
    std = jnp.sqrt((cent * cent).sum(-1, keepdims=True) / (D - 1))
    yn = p["g"] * cent / (std + LN_EPS) + p["beta"]
    return yn.mean(axis=1)


def _reference(states1, states2, mask1, mask2, p):
    return (_reference_half(states1, states2, mask2, p),
            _reference_half(states2, states1, mask1, p))


def init_params(key):
    ks = jax.random.split(key, 8)
    s = 0.1
    params = {
        # Linear weights stored pre-transposed: (in_features, out_features)
        "wq": s * jax.random.normal(ks[0], (D_MODEL, D_MODEL), jnp.float32),
        "wk": s * jax.random.normal(ks[1], (D_MODEL, D_MODEL), jnp.float32),
        "wv": s * jax.random.normal(ks[2], (D_MODEL, D_MODEL), jnp.float32),
        "wo": s * jax.random.normal(ks[3], (D_MODEL, D_MODEL), jnp.float32),
        "w1": s * jax.random.normal(ks[4], (D_MODEL, D_FF), jnp.float32),
        "w2": s * jax.random.normal(ks[5], (D_FF, D_MODEL), jnp.float32),
        "bq": s * jax.random.normal(ks[6], (1, D_MODEL), jnp.float32),
        "bk": jnp.zeros((1, D_MODEL), jnp.float32),
        "bv": jnp.full((1, D_MODEL), 0.01, jnp.float32),
        "bo": jnp.zeros((1, D_MODEL), jnp.float32),
        "b1": jnp.full((1, D_FF), 0.02, jnp.float32),
        "b2": jnp.zeros((1, D_MODEL), jnp.float32),
        "g": jnp.ones((1, D_MODEL), jnp.float32),       # LayerNorm a_2
        "beta": jnp.zeros((1, D_MODEL), jnp.float32),   # LayerNorm b_2
    }
    return params


if __name__ == "__main__":
    key = jax.random.PRNGKey(0)
    k_s1, k_s2, k_m1, k_m2, k_p = jax.random.split(key, 5)

    B, L1, L2 = 2, 8, 16
    states1 = jax.random.normal(k_s1, (B, L1, D_MODEL), jnp.float32)
    states2 = jax.random.normal(k_s2, (B, L2, D_MODEL), jnp.float32)

    mask1 = (jax.random.uniform(k_m1, (B, L1)) > 0.2).astype(jnp.float32)
    mask2 = (jax.random.uniform(k_m2, (B, L2)) > 0.2).astype(jnp.float32)
    # guarantee at least one attendable position per row
    mask1 = mask1.at[:, 0].set(1.0)
    mask2 = mask2.at[:, 0].set(1.0)

    params = init_params(k_p)

    x1, x2 = coattention(states1, states2, mask1, mask2, params)
    jax.block_until_ready((x1, x2))

    r1, r2 = _reference(states1, states2, mask1, mask2, params)
    # kernel uses bf16 MXU matmuls (f32 accumulate, f32 softmax/LayerNorm) and
    # approx reciprocals, so compare against the pure-f32 reference with a
    # bf16-appropriate tolerance.
    assert jnp.allclose(x1, r1, rtol=2e-2, atol=2e-2), "x1 mismatch vs reference"
    assert jnp.allclose(x2, r2, rtol=2e-2, atol=2e-2), "x2 mismatch vs reference"

    print("KERNEL_OK")
</pallas_src>

<mosaic_0001>
module attributes {stable_mosaic.version = 11 : i64} {
  func.func @kernel(%arg0: memref<64x32xf32, #tpu.memory_space<vmem>>, %arg1: memref<1x64xf32, #tpu.memory_space<vmem>>, %arg2: memref<256x1xi32, #tpu.memory_space<vmem>>, %arg3: memref<4x64xf32, #tpu.memory_space<vmem>>, %arg4: memref<32x96xbf16, #tpu.memory_space<vmem>>, %arg5: memref<1x96xf32, #tpu.memory_space<vmem>>, %arg6: memref<32x32xbf16, #tpu.memory_space<vmem>>, %arg7: memref<1x32xf32, #tpu.memory_space<vmem>>, %arg8: memref<32x64xbf16, #tpu.memory_space<vmem>>, %arg9: memref<1x64xf32, #tpu.memory_space<vmem>>, %arg10: memref<64x32xbf16, #tpu.memory_space<vmem>>, %arg11: memref<1x32xf32, #tpu.memory_space<vmem>>, %arg12: memref<1x32xf32, #tpu.memory_space<vmem>>, %arg13: memref<1x32xf32, #tpu.memory_space<vmem>>, %arg14: memref<4x32xf32, #tpu.memory_space<vmem>>) attributes {dimension_semantics = [], scalar_prefetch = 0 : i64, scratch_operands = 0 : i64, tpu.core_type = #tpu.core_type<tc>} {
    %c0 = arith.constant 0 : index
    %c0_0 = arith.constant 0 : index
    %0 = vector.load %arg0[%c0, %c0_0] : memref<64x32xf32, #tpu.memory_space<vmem>>, vector<64x32xf32>
    %1 = arith.truncf %0 : vector<64x32xf32> to vector<64x32xbf16>
    %c0_1 = arith.constant 0 : index
    %c0_2 = arith.constant 0 : index
    %2 = vector.load %arg4[%c0_1, %c0_2] : memref<32x96xbf16, #tpu.memory_space<vmem>>, vector<32x96xbf16>
    %cst = arith.constant dense<0.000000e+00> : vector<64x96xf32>
    %3 = tpu.matmul %1, %2, %cst {dimension_numbers = #tpu.dot_dimension_numbers<[1], [0], [0], [1], [0, 0, 1, 1], [], []>} : vector<64x32xbf16>, vector<32x96xbf16>, vector<64x96xf32> -> vector<64x96xf32>
    %c0_3 = arith.constant 0 : index
    %c0_4 = arith.constant 0 : index
    %4 = vector.load %arg5[%c0_3, %c0_4] : memref<1x96xf32, #tpu.memory_space<vmem>>, vector<1x96xf32>
    %5 = vector.broadcast %4 : vector<1x96xf32> to vector<64x96xf32>
    %6 = arith.addf %3, %5 : vector<64x96xf32>
    %7 = arith.truncf %6 : vector<64x96xf32> to vector<64x96xbf16>
    %8 = vector.extract_strided_slice %7 {offsets = [0, 0], sizes = [64, 8], strides = [1, 1]} : vector<64x96xbf16> to vector<64x8xbf16>
    %9 = vector.extract_strided_slice %7 {offsets = [0, 8], sizes = [64, 8], strides = [1, 1]} : vector<64x96xbf16> to vector<64x8xbf16>
    %10 = vector.extract_strided_slice %7 {offsets = [0, 16], sizes = [64, 8], strides = [1, 1]} : vector<64x96xbf16> to vector<64x8xbf16>
    %11 = vector.extract_strided_slice %7 {offsets = [0, 24], sizes = [64, 8], strides = [1, 1]} : vector<64x96xbf16> to vector<64x8xbf16>
    %12 = tpu.concatenate %8, %9, %10, %11 in 0 : vector<64x8xbf16>, vector<64x8xbf16>, vector<64x8xbf16>, vector<64x8xbf16> -> vector<256x8xbf16>
    %13 = vector.extract_strided_slice %7 {offsets = [0, 32], sizes = [64, 8], strides = [1, 1]} : vector<64x96xbf16> to vector<64x8xbf16>
    %14 = vector.extract_strided_slice %7 {offsets = [0, 40], sizes = [64, 8], strides = [1, 1]} : vector<64x96xbf16> to vector<64x8xbf16>
    %15 = vector.extract_strided_slice %7 {offsets = [0, 48], sizes = [64, 8], strides = [1, 1]} : vector<64x96xbf16> to vector<64x8xbf16>
    %16 = vector.extract_strided_slice %7 {offsets = [0, 56], sizes = [64, 8], strides = [1, 1]} : vector<64x96xbf16> to vector<64x8xbf16>
    %17 = tpu.concatenate %13, %14, %15, %16 in 0 : vector<64x8xbf16>, vector<64x8xbf16>, vector<64x8xbf16>, vector<64x8xbf16> -> vector<256x8xbf16>
    %18 = vector.extract_strided_slice %7 {offsets = [0, 64], sizes = [64, 8], strides = [1, 1]} : vector<64x96xbf16> to vector<64x8xbf16>
    %19 = vector.extract_strided_slice %7 {offsets = [0, 72], sizes = [64, 8], strides = [1, 1]} : vector<64x96xbf16> to vector<64x8xbf16>
    %20 = vector.extract_strided_slice %7 {offsets = [0, 80], sizes = [64, 8], strides = [1, 1]} : vector<64x96xbf16> to vector<64x8xbf16>
    %21 = vector.extract_strided_slice %7 {offsets = [0, 88], sizes = [64, 8], strides = [1, 1]} : vector<64x96xbf16> to vector<64x8xbf16>
    %22 = tpu.concatenate %18, %19, %20, %21 in 0 : vector<64x8xbf16>, vector<64x8xbf16>, vector<64x8xbf16>, vector<64x8xbf16> -> vector<256x8xbf16>
    %cst_5 = arith.constant dense<0.000000e+00> : vector<256x256xf32>
    %23 = tpu.matmul %12, %17, %cst_5 {dimension_numbers = #tpu.dot_dimension_numbers<[1], [1], [0], [0], [0, 0, 1, 0], [], []>} : vector<256x8xbf16>, vector<256x8xbf16>, vector<256x256xf32> -> vector<256x256xf32>
    %cst_6 = arith.constant 0.353553385 : f32
    %24 = vector.broadcast %cst_6 : f32 to vector<256x256xf32>
    %25 = arith.mulf %23, %24 : vector<256x256xf32>
    %26 = tpu.iota {dimensions = array<i32: 1>} : vector<1x256xi32>
    %c0_7 = arith.constant 0 : index
    %c0_8 = arith.constant 0 : index
    %27 = vector.load %arg2[%c0_7, %c0_8] : memref<256x1xi32, #tpu.memory_space<vmem>>, vector<256x1xi32>
    %28 = vector.broadcast %26 : vector<1x256xi32> to vector<256x256xi32>
    %29 = vector.broadcast %27 : vector<256x1xi32> to vector<256x256xi32>
    %30 = arith.subi %28, %29 : vector<256x256xi32>
    %c0_i32 = arith.constant 0 : i32
    %31 = vector.broadcast %c0_i32 : i32 to vector<256x256xi32>
    %32 = arith.cmpi sge, %30, %31 : vector<256x256xi32>
    %c16_i32 = arith.constant 16 : i32
    %33 = vector.broadcast %c16_i32 : i32 to vector<256x256xi32>
    %34 = arith.cmpi slt, %30, %33 : vector<256x256xi32>
    %35 = arith.andi %32, %34 : vector<256x256xi1>
    %c0_9 = arith.constant 0 : index
    %c0_10 = arith.constant 0 : index
    %36 = vector.load %arg1[%c0_9, %c0_10] : memref<1x64xf32, #tpu.memory_space<vmem>>, vector<1x64xf32>
    %37 = tpu.concatenate %36, %36, %36, %36 in 1 : vector<1x64xf32>, vector<1x64xf32>, vector<1x64xf32>, vector<1x64xf32> -> vector<1x256xf32>
    %cst_11 = arith.constant 0.000000e+00 : f32
    %38 = vector.broadcast %cst_11 : f32 to vector<1x256xf32>
    %39 = arith.cmpf ogt, %37, %38 : vector<1x256xf32>
    %40 = vector.broadcast %39 : vector<1x256xi1> to vector<256x256xi1>
    %41 = arith.andi %35, %40 : vector<256x256xi1>
    %cst_12 = arith.constant -1.000000e+09 : f32
    %42 = vector.broadcast %cst_12 : f32 to vector<256x256xf32>
    %43 = arith.select %41, %25, %42 : vector<256x256xi1>, vector<256x256xf32>
    %cst_13 = arith.constant dense<0xFF800000> : vector<256xf32>
    %44 = vector.multi_reduction <maximumf>, %43, %cst_13 [1] : vector<256x256xf32> to vector<256xf32>
    %45 = vector.shape_cast %44 : vector<256xf32> to vector<256x1xf32>
    %46 = vector.broadcast %45 : vector<256x1xf32> to vector<256x256xf32>
    %47 = arith.subf %43, %46 : vector<256x256xf32>
    %48 = math.exp %47 : vector<256x256xf32>
    %cst_14 = arith.constant dense<0.000000e+00> : vector<256xf32>
    %49 = vector.multi_reduction <add>, %48, %cst_14 [1] : vector<256x256xf32> to vector<256xf32>
    %50 = vector.shape_cast %49 : vector<256xf32> to vector<256x1xf32>
    %51 = tpu.reciprocal %50 {approx = true} : vector<256x1xf32> -> vector<256x1xf32>
    %52 = vector.broadcast %51 : vector<256x1xf32> to vector<256x256xf32>
    %53 = arith.mulf %48, %52 : vector<256x256xf32>
    %54 = arith.truncf %53 : vector<256x256xf32> to vector<256x256xbf16>
    %cst_15 = arith.constant dense<0.000000e+00> : vector<256x8xf32>
    %55 = tpu.matmul %54, %22, %cst_15 {dimension_numbers = #tpu.dot_dimension_numbers<[1], [0], [0], [1], [0, 0, 1, 1], [], []>} : vector<256x256xbf16>, vector<256x8xbf16>, vector<256x8xf32> -> vector<256x8xf32>
    %56 = arith.truncf %55 : vector<256x8xf32> to vector<256x8xbf16>
    %cst_16 = arith.constant 0.000000e+00 : f32
    %57 = vector.broadcast %cst_16 : f32 to vector<64x32xf32>
    %58 = vector.extract_strided_slice %56 {offsets = [0, 0], sizes = [64, 8], strides = [1, 1]} : vector<256x8xbf16> to vector<64x8xbf16>
    %c0_17 = arith.constant 0 : index
    %c0_18 = arith.constant 0 : index
    %59 = vector.load %arg6[%c0_17, %c0_18] : memref<32x32xbf16, #tpu.memory_space<vmem>>, vector<8x32xbf16>
    %cst_19 = arith.constant dense<0.000000e+00> : vector<64x32xf32>
    %60 = tpu.matmul %58, %59, %cst_19 {dimension_numbers = #tpu.dot_dimension_numbers<[1], [0], [0], [1], [0, 0, 1, 1], [], []>} : vector<64x8xbf16>, vector<8x32xbf16>, vector<64x32xf32> -> vector<64x32xf32>
    %61 = arith.addf %57, %60 : vector<64x32xf32>
    %62 = vector.extract_strided_slice %56 {offsets = [64, 0], sizes = [64, 8], strides = [1, 1]} : vector<256x8xbf16> to vector<64x8xbf16>
    %c8 = arith.constant 8 : index
    %c0_20 = arith.constant 0 : index
    %63 = vector.load %arg6[%c8, %c0_20] : memref<32x32xbf16, #tpu.memory_space<vmem>>, vector<8x32xbf16>
    %cst_21 = arith.constant dense<0.000000e+00> : vector<64x32xf32>
    %64 = tpu.matmul %62, %63, %cst_21 {dimension_numbers = #tpu.dot_dimension_numbers<[1], [0], [0], [1], [0, 0, 1, 1], [], []>} : vector<64x8xbf16>, vector<8x32xbf16>, vector<64x32xf32> -> vector<64x32xf32>
    %65 = arith.addf %61, %64 : vector<64x32xf32>
    %66 = vector.extract_strided_slice %56 {offsets = [128, 0], sizes = [64, 8], strides = [1, 1]} : vector<256x8xbf16> to vector<64x8xbf16>
    %c16 = arith.constant 16 : index
    %c0_22 = arith.constant 0 : index
    %67 = vector.load %arg6[%c16, %c0_22] : memref<32x32xbf16, #tpu.memory_space<vmem>>, vector<8x32xbf16>
    %cst_23 = arith.constant dense<0.000000e+00> : vector<64x32xf32>
    %68 = tpu.matmul %66, %67, %cst_23 {dimension_numbers = #tpu.dot_dimension_numbers<[1], [0], [0], [1], [0, 0, 1, 1], [], []>} : vector<64x8xbf16>, vector<8x32xbf16>, vector<64x32xf32> -> vector<64x32xf32>
    %69 = arith.addf %65, %68 : vector<64x32xf32>
    %70 = vector.extract_strided_slice %56 {offsets = [192, 0], sizes = [64, 8], strides = [1, 1]} : vector<256x8xbf16> to vector<64x8xbf16>
    %c24 = arith.constant 24 : index
    %c0_24 = arith.constant 0 : index
    %71 = vector.load %arg6[%c24, %c0_24] : memref<32x32xbf16, #tpu.memory_space<vmem>>, vector<8x32xbf16>
    %cst_25 = arith.constant dense<0.000000e+00> : vector<64x32xf32>
    %72 = tpu.matmul %70, %71, %cst_25 {dimension_numbers = #tpu.dot_dimension_numbers<[1], [0], [0], [1], [0, 0, 1, 1], [], []>} : vector<64x8xbf16>, vector<8x32xbf16>, vector<64x32xf32> -> vector<64x32xf32>
    %73 = arith.addf %69, %72 : vector<64x32xf32>
    %c0_26 = arith.constant 0 : index
    %c0_27 = arith.constant 0 : index
    %74 = vector.load %arg7[%c0_26, %c0_27] : memref<1x32xf32, #tpu.memory_space<vmem>>, vector<1x32xf32>
    %75 = vector.broadcast %74 : vector<1x32xf32> to vector<64x32xf32>
    %76 = arith.addf %73, %75 : vector<64x32xf32>
    %77 = arith.truncf %76 : vector<64x32xf32> to vector<64x32xbf16>
    %c0_28 = arith.constant 0 : index
    %c0_29 = arith.constant 0 : index
    %78 = vector.load %arg8[%c0_28, %c0_29] : memref<32x64xbf16, #tpu.memory_space<vmem>>, vector<32x64xbf16>
    %cst_30 = arith.constant dense<0.000000e+00> : vector<64x64xf32>
    %79 = tpu.matmul %77, %78, %cst_30 {dimension_numbers = #tpu.dot_dimension_numbers<[1], [0], [0], [1], [0, 0, 1, 1], [], []>} : vector<64x32xbf16>, vector<32x64xbf16>, vector<64x64xf32> -> vector<64x64xf32>
    %c0_31 = arith.constant 0 : index
    %c0_32 = arith.constant 0 : index
    %80 = vector.load %arg9[%c0_31, %c0_32] : memref<1x64xf32, #tpu.memory_space<vmem>>, vector<1x64xf32>
    %81 = vector.broadcast %80 : vector<1x64xf32> to vector<64x64xf32>
    %82 = arith.addf %79, %81 : vector<64x64xf32>
    %cst_33 = arith.constant 0.000000e+00 : f32
    %83 = vector.broadcast %cst_33 : f32 to vector<64x64xf32>
    %84 = arith.maximumf %82, %83 : vector<64x64xf32>
    %85 = arith.truncf %84 : vector<64x64xf32> to vector<64x64xbf16>
    %c0_34 = arith.constant 0 : index
    %c0_35 = arith.constant 0 : index
    %86 = vector.load %arg10[%c0_34, %c0_35] : memref<64x32xbf16, #tpu.memory_space<vmem>>, vector<64x32xbf16>
    %cst_36 = arith.constant dense<0.000000e+00> : vector<64x32xf32>
    %87 = tpu.matmul %85, %86, %cst_36 {dimension_numbers = #tpu.dot_dimension_numbers<[1], [0], [0], [1], [0, 0, 1, 1], [], []>} : vector<64x64xbf16>, vector<64x32xbf16>, vector<64x32xf32> -> vector<64x32xf32>
    %c0_37 = arith.constant 0 : index
    %c0_38 = arith.constant 0 : index
    %88 = vector.load %arg11[%c0_37, %c0_38] : memref<1x32xf32, #tpu.memory_space<vmem>>, vector<1x32xf32>
    %89 = vector.broadcast %88 : vector<1x32xf32> to vector<64x32xf32>
    %90 = arith.addf %87, %89 : vector<64x32xf32>
    %cst_39 = arith.constant dense<0.000000e+00> : vector<64xf32>
    %91 = vector.multi_reduction <add>, %90, %cst_39 [1] : vector<64x32xf32> to vector<64xf32>
    %92 = vector.shape_cast %91 : vector<64xf32> to vector<64x1xf32>
    %cst_40 = arith.constant 3.200000e+01 : f32
    %93 = vector.broadcast %cst_40 : f32 to vector<64x1xf32>
    %94 = arith.divf %92, %93 : vector<64x1xf32>
    %95 = vector.broadcast %94 : vector<64x1xf32> to vector<64x32xf32>
    %96 = arith.subf %90, %95 : vector<64x32xf32>
    %97 = arith.mulf %96, %96 : vector<64x32xf32>
    %cst_41 = arith.constant dense<0.000000e+00> : vector<64xf32>
    %98 = vector.multi_reduction <add>, %97, %cst_41 [1] : vector<64x32xf32> to vector<64xf32>
    %99 = vector.shape_cast %98 : vector<64xf32> to vector<64x1xf32>
    %cst_42 = arith.constant 3.100000e+01 : f32
    %100 = vector.broadcast %cst_42 : f32 to vector<64x1xf32>
    %101 = arith.divf %99, %100 : vector<64x1xf32>
    %102 = math.sqrt %101 : vector<64x1xf32>
    %cst_43 = arith.constant 9.99999997E-7 : f32
    %103 = vector.broadcast %cst_43 : f32 to vector<64x1xf32>
    %104 = arith.addf %102, %103 : vector<64x1xf32>
    %105 = tpu.reciprocal %104 {approx = true} : vector<64x1xf32> -> vector<64x1xf32>
    %c0_44 = arith.constant 0 : index
    %c0_45 = arith.constant 0 : index
    %106 = vector.load %arg12[%c0_44, %c0_45] : memref<1x32xf32, #tpu.memory_space<vmem>>, vector<1x32xf32>
    %107 = vector.broadcast %106 : vector<1x32xf32> to vector<64x32xf32>
    %108 = arith.mulf %107, %96 : vector<64x32xf32>
    %109 = vector.broadcast %105 : vector<64x1xf32> to vector<64x32xf32>
    %110 = arith.mulf %108, %109 : vector<64x32xf32>
    %c0_46 = arith.constant 0 : index
    %c0_47 = arith.constant 0 : index
    %111 = vector.load %arg13[%c0_46, %c0_47] : memref<1x32xf32, #tpu.memory_space<vmem>>, vector<1x32xf32>
    %112 = vector.broadcast %111 : vector<1x32xf32> to vector<64x32xf32>
    %113 = arith.addf %110, %112 : vector<64x32xf32>
    %c0_48 = arith.constant 0 : index
    %c0_49 = arith.constant 0 : index
    %114 = vector.load %arg3[%c0_48, %c0_49] : memref<4x64xf32, #tpu.memory_space<vmem>>, vector<4x64xf32>
    %cst_50 = arith.constant dense<0.000000e+00> : vector<4x32xf32>
    %115 = tpu.matmul %114, %113, %cst_50 {dimension_numbers = #tpu.dot_dimension_numbers<[1], [0], [0], [1], [0, 0, 1, 1], [], []>} : vector<4x64xf32>, vector<64x32xf32>, vector<4x32xf32> -> vector<4x32xf32>
    %c0_51 = arith.constant 0 : index
    %c0_52 = arith.constant 0 : index
    %116 = vector.load %arg14[%c0_51, %c0_52] : memref<4x32xf32, #tpu.memory_space<vmem>>, vector<4x32xf32>
    tpu.vector_store %arg14[%c0_51, %c0_52], %115 {strides = array<i32>} : memref<4x32xf32, #tpu.memory_space<vmem>>, vector<4x32xf32>,
    return
  }
}

</mosaic_0001>

<bundles_post_ra>
// kernel: coattention.1
= control target key start
LH: loop header
LB: loop body
LE: loop exit
PB: predicated region body
PF: predicated region fallthrough
CT: control target
= control target key end

     0   :  { %vm5419_vm0 = vcmask 261120   ;;  %vm5420_vm1 = vcmask 64512   ;;  %v3369_v35 = vmov 0   ;;  %s3370_s18 = smov 104   ;;  %s3371_s19 = smov 96   ;;  %v579_v46 = vlaneseq  ;;  %s5403_s4 = inlined_call_operand.vmem [shape: bf16[32,96], index: 4, kind: input, shape index: {}]   ;;  %s5404_s0 = inlined_call_operand.vmem [shape: f32[64,32], index: 0, kind: input, shape index: {}]   ;;  %s5405_s5 = inlined_call_operand.vmem [shape: f32[1,96], index: 5, kind: input, shape index: {}]   ;;  %s5406_s2 = inlined_call_operand.vmem [shape: s32[256,1], index: 2, kind: input, shape index: {}]   ;;  %s5407_s1 = inlined_call_operand.vmem [shape: f32[1,64], index: 1, kind: input, shape index: {}]   ;;  %s5408_s6 = inlined_call_operand.vmem [shape: bf16[32,32], index: 6, kind: input, shape index: {}]   ;;  %s5409_s8 = inlined_call_operand.vmem [shape: bf16[32,64], index: 8, kind: input, shape index: {}]   ;;  %s5410_s10 = inlined_call_operand.vmem [shape: bf16[64,32], index: 10, kind: input, shape index: {}]   ;;  %s5411_s7 = inlined_call_operand.vmem [shape: f32[1,32], index: 7, kind: input, shape index: {}]   ;;  %s5412_s9 = inlined_call_operand.vmem [shape: f32[1,64], index: 9, kind: input, shape index: {}]   ;;  %s5413_s11 = inlined_call_operand.vmem [shape: f32[1,32], index: 11, kind: input, shape index: {}]   ;;  %s5414_s12 = inlined_call_operand.vmem [shape: f32[1,32], index: 12, kind: input, shape index: {}]   ;;  %s5415_s13 = inlined_call_operand.vmem [shape: f32[1,32], index: 13, kind: input, shape index: {}]   ;;  %s5416_s3 = inlined_call_operand.vmem [shape: f32[4,64], index: 3, kind: input, shape index: {}]   ;;  %s5417_s14 = inlined_call_operand.vmem [shape: f32[4,32], index: 14, kind: output, shape index: {}]  }
   0x1   :  { %v3135_v0 = vld [vmem:[%s5403_s4] sm:$0xff]   ;;  %v3136_v1 = vld [vmem:[%s5403_s4 + $0x8] sm:$0xff]   ;;  %v50_v5 = vld [vmem:[%s5404_s0 + $0x10] sm:$0xff]  ;;  %3133 = vset.pattern.permute.xlu0 %v3369_v35  ;;  %3134 = vset.pattern.permute.xlu1 %v3369_v35  ;;  %s3372_s15 = smov 64   ;;  %vm5418_vm2 = vcmask 523264  }
   0x2   :  { %2977 = vmatprep.subr.bf16.mxu0 %v3135_v0  ;;  %v48_v2 = vld [vmem:[%s5404_s0] sm:$0xff]  ;;  %v49_v3 = vld [vmem:[%s5404_s0 + $0x8] sm:$0xff]  ;;  %v51_v6 = vld [vmem:[%s5404_s0 + $0x18] sm:$0xff]  ;;  %v3568_v49 = vshrl.u32 %v579_v46, 7 }
   0x3   :  { %2978 = vmatpush3.bf16.msra.mxu0 %v3135_v0  ;;  %v56_v4 = vpack.c.bf16 %v49_v3, %v48_v2  ;;  %v52_v7 = vld [vmem:[%s5404_s0 + $0x20] sm:$0xff]  ;;  %v53_v8 = vld [vmem:[%s5404_s0 + $0x28] sm:$0xff]  ;;  %v57_v9 = vpack.c.bf16 %v51_v6, %v50_v5  ;;  %v54_v11 = vld [vmem:[%s5404_s0 + $0x30] sm:$0xff] }
   0x4   :  { %2979 = vmatprep.subr.bf16.mxu0 %v3136_v1  ;;  %v58_v10 = vpack.c.bf16 %v53_v8, %v52_v7  ;;  %v55_v12 = vld [vmem:[%s5404_s0 + $0x38] sm:$0xff]  ;;  %v2709_v15 = vld [vmem:[%s5405_s5] ss:$0 sm:$0xff]  ;;  %s3367_s0 = smov 112   ;;  %s3368_s5 = smov 120   ;;  %v584_v50 = vld [vmem:[%s5406_s2 + $0x10] sm:$0xff] }
   0x5   :  { %2981 = vmatprep.mubr.msk.bf16.mxu0 %vm5419_vm0, %v56_v4  ;;  %v59_v13 = vpack.c.bf16 %v55_v12, %v54_v11  ;;  %v582_v47 = vld [vmem:[%s5406_s2] sm:$0xff]  ;;  %v970_v52 = vsub.s32 0, %v3568_v49  ;;  %v583_v53 = vld [vmem:[%s5406_s2 + $0x8] sm:$0xff]  ;;  %v588_v57 = vld [vmem:[%s5406_s2 + $0x30] sm:$0xff] }
   0x6   :  { %v586_v54 = vld [vmem:[%s5406_s2 + $0x20] sm:$0xff]  ;;  %v585_v58 = vld [vmem:[%s5406_s2 + $0x18] sm:$0xff]  ;;  %v587_v60 = vld [vmem:[%s5406_s2 + $0x28] sm:$0xff] }
   0x7   :  { %2980 = vmatpush3.bf16.msra.mxu0 %v3136_v1  ;;  %v3587_v55 = vld [vmem:[%s5407_s1] sm:$0x1]  ;;  %v592_v61 = vld [vmem:[%s5406_s2 + $0x50] sm:$0xff]  ;;  %v589_v62 = vld [vmem:[%s5406_s2 + $0x38] sm:$0xff] }
   0x8   :  { %v971_v56 = vrot.slane %v3587_v55, %v970_v52  ;;  %v590_v59 = vld [vmem:[%s5406_s2 + $0x40] sm:$0xff]  ;;  %v591_v0 = vld [vmem:[%s5406_s2 + $0x48] sm:$0xff]  ;;  %v596_v1 = vld [vmem:[%s5406_s2 + $0x70] sm:$0xff] }
   0x9   :  { %v594_v63 = vld [vmem:[%s5406_s2 + $0x60] sm:$0xff]  ;;  %v593_v2 = vld [vmem:[%s5406_s2 + $0x58] sm:$0xff]  ;;  %v595_v4 = vld [vmem:[%s5406_s2 + $0x68] sm:$0xff] }
   0xa   :  { %2982 = vmatmul.mubr.msk.bf16.vlgmr.msra.gmra.mrb[0].mxu0 %vm5419_vm0, %v57_v9  ;;  %v598_v3 = vld [vmem:[%s5406_s2 + $0x80] sm:$0xff]  ;;  %v600_v5 = vld [vmem:[%s5406_s2 + $0x90] sm:$0xff]  ;;  %v597_v6 = vld [vmem:[%s5406_s2 + $0x78] sm:$0xff] }
   0xb   :  { %2985 = vmatprep.mubr.msk.bf16.mxu0 %vm5419_vm0, %v58_v10  ;;  %v602_v7 = vld [vmem:[%s5406_s2 + $0xa0] sm:$0xff]  ;;  %v599_v8 = vld [vmem:[%s5406_s2 + $0x88] sm:$0xff]  ;;  %v604_v9 = vld [vmem:[%s5406_s2 + $0xb0] sm:$0xff] }
   0xc   :  { %v601_v10 = vld [vmem:[%s5406_s2 + $0x98] sm:$0xff]  ;;  %v606_v11 = vld [vmem:[%s5406_s2 + $0xc0] sm:$0xff]  ;;  %v603_v12 = vld [vmem:[%s5406_s2 + $0xa8] sm:$0xff] }
  0x12   :  { %2986 = vmatmul.mubr.msk.bf16.gmra.mrb[4].mxu0 %vm5419_vm0, %v59_v13  ;;  %v608_v13 = vld [vmem:[%s5406_s2 + $0xd0] sm:$0xff] }
  0xdd   :  { %v2983_v14 = vpop.f32.mrb[0].mxu0 }
  0xde   :  { %v130_v16 = vpop.f32.mrb[1].mxu0  ;;  %v139_v18 = vadd.f32 %v2983_v14, %v2709_v15  ;;  %v605_v14 = vld [vmem:[%s5406_s2 + $0xb8] sm:$0xff] }
  0xdf   :  { %v2984_v17 = vpop.f32.mrb[2].mxu0  ;;  %v131_v21 = vadd.f32 %v2709_v15, %v130_v16  ;;  %v607_v16 = vld [vmem:[%s5406_s2 + $0xc8] sm:$0xff] }
  0xe0   :  { %v142_v19 = vadd.f32 %v2984_v17, %v2709_v15  ;;  %v133_v20 = vpop.f32.mrb[3].mxu0  ;;  %v612_v17 = vld [vmem:[%s5406_s2 + $0xf0] sm:$0xff] }
  0xe1   :  { %v134_v22 = vadd.f32 %v2709_v15, %v133_v20  ;;  %v613_v20 = vld [vmem:[%s5406_s2 + $0xf8] sm:$0xff] }
  0xe2   :  { %v3488_v23 = vpack.c.bf16 %v142_v19, %v139_v18  ;;  %v609_v18 = vld [vmem:[%s5406_s2 + $0xd8] sm:$0xff]  ;;  %v611_v19 = vld [vmem:[%s5406_s2 + $0xe8] sm:$0xff] }
  0xe3   :  { %v3490_v24 = vpack.c.bf16 %v134_v22, %v131_v21 }
  0xe5   :  { %v2987_v25 = vpop.f32.mrb[4].mxu0  ;;  %177 = vrot.lane.b32.xlu0 %v3490_v24, %s3367_s0  ;;  %2790 = vmatprep.mubr.msk.bf16.mxu1 %vm5420_vm1, %v3490_v24 }
  0xe6   :  { %v155_v26 = vadd.f32 %v2987_v25, %v2709_v15  ;;  %v146_v27 = vpop.f32.mrb[5].mxu0 }
  0xe7   :  { %v147_v28 = vadd.f32 %v2709_v15, %v146_v27  ;;  %v2988_v29 = vpop.f32.mrb[6].mxu0 }
  0xe8   :  { %v158_v30 = vadd.f32 %v2988_v29, %v2709_v15  ;;  %v149_v31 = vpop.f32.mrb[7].mxu0 }
  0xe9   :  { %v150_v32 = vadd.f32 %v2709_v15, %v149_v31  ;;  %179 = vrot.lane.b32.xlu0 %v3488_v23, %s3367_s0  ;;  %v610_v15 = vld [vmem:[%s5406_s2 + $0xe0] sm:$0xff] }
  0xea   :  { %v3496_v33 = vpack.c.bf16 %v158_v30, %v155_v26 }
  0xeb   :  { %v3498_v34 = vpack.c.bf16 %v150_v32, %v147_v28 }
  0xed   :  { %181 = vrot.lane.b32.xlu1 %v3498_v34, %s3367_s0  ;;  %169 = vrot.lane.b32.xlu0 %v3490_v24, %s3368_s5 }
  0xf1   :  { %183 = vrot.lane.b32.xlu1 %v3496_v33, %s3367_s0  ;;  %171 = vrot.lane.b32.xlu0 %v3488_v23, %s3368_s5 }
  0xf5   :  { %185 = vrot.lane.b32.xlu1 %v3490_v24, %s3370_s18  ;;  %173 = vrot.lane.b32.xlu0 %v3498_v34, %s3368_s5 }
  0xf9   :  { %187 = vrot.lane.b32.xlu1 %v3488_v23, %s3370_s18  ;;  %175 = vrot.lane.b32.xlu0 %v3496_v33, %s3368_s5 }
  0xfd   :  { %189 = vrot.lane.b32.xlu1 %v3498_v34, %s3370_s18  ;;  %193 = vrot.lane.b32.xlu0 %v3490_v24, %s3371_s19 }
 0x101   :  { %191 = vrot.lane.b32.xlu1 %v3496_v33, %s3370_s18  ;;  %195 = vrot.lane.b32.xlu0 %v3488_v23, %s3371_s19 }
 0x105   :  { %197 = vrot.lane.b32.xlu0 %v3498_v34, %s3371_s19 }
 0x109   :  { %199 = vrot.lane.b32.xlu0 %v3496_v33, %s3371_s19 }
 0x157   :  { %v3520_v36 = vpop.permute.xlu0 %177 }
 0x158   :  { %209 = vrot.lane.b32.xlu1 %v3520_v36, %s3371_s19 }
 0x15b   :  { %v3524_v37 = vpop.permute.xlu0 %179 }
 0x15c   :  { %211 = vrot.lane.b32.xlu1 %v3524_v37, %s3371_s19 }
 0x15f   :  { %v3528_v38 = vpop.permute.xlu1 %181  ;;  %v3530_v39 = vpop.permute.xlu0 %169 }
 0x160   :  { %213 = vrot.lane.b32.xlu1 %v3528_v38, %s3371_s19  ;;  %201 = vrot.lane.b32.xlu0 %v3530_v39, %s3371_s19 }
 0x163   :  { %v3536_v40 = vpop.permute.xlu1 %183  ;;  %v3538_v41 = vpop.permute.xlu0 %171 }
 0x164   :  { %215 = vrot.lane.b32.xlu1 %v3536_v40, %s3371_s19  ;;  %203 = vrot.lane.b32.xlu0 %v3538_v41, %s3371_s19 }
 0x167   :  { %v3544_v42 = vpop.permute.xlu1 %185  ;;  %v3546_v43 = vpop.permute.xlu0 %173 }
 0x168   :  { %217 = vrot.lane.b32.xlu1 %v3544_v42, %s3371_s19  ;;  %205 = vrot.lane.b32.xlu0 %v3546_v43, %s3371_s19 }
 0x16b   :  { %v3552_v44 = vpop.permute.xlu1 %187  ;;  %v3554_v45 = vpop.permute.xlu0 %175 }
 0x16c   :  { %5459 = vst [vmem:[#allocation2_spill] sm:$0xff] %v3554_v45  ;;  %219 = vrot.lane.b32.xlu1 %v3552_v44, %s3371_s19  ;;  %207 = vrot.lane.b32.xlu0 %v3554_v45, %s3371_s19 }
 0x16f   :  { %v3563_v48 = vpop.permute.xlu1 %189  ;;  %v194_v21 = vpop.permute.xlu0 %193 }
 0x170   :  { %221 = vrot.lane.b32.xlu1 %v3563_v48, %s3371_s19  ;;  %615 = vperm.xlu0 %3133, %v582_v47   ;;  %v275_v26 = vsel %vm5420_vm1, %v194_v21, 0 }
 0x173   :  { %v3573_v51 = vpop.permute.xlu1 %191  ;;  %v196_v22 = vpop.permute.xlu0 %195 }
 0x174   :  { %5460 = vst [vmem:[#allocation3_spill] sm:$0xff] %v3573_v51  ;;  %223 = vrot.lane.b32.xlu1 %v3573_v51, %s3371_s19  ;;  %621 = vperm.xlu0 %3133, %v584_v50   ;;  %v278_v29 = vsel %vm5420_vm1, %v196_v22, 0 }
 0x177   :  { %v198_v28 = vpop.permute.xlu0 %197 }
 0x178   :  { %618 = vperm.xlu1 %3134, %v583_v53   ;;  %627 = vperm.xlu0 %3133, %v586_v54   ;;  %v281_v50 = vsel %vm5420_vm1, %v198_v28, 0 }
 0x17b   :  { %v200_v31 = vpop.permute.xlu0 %199 }
 0x17c   :  { %972 = vrot.lane.b32.xlu1 %v971_v56, %s3372_s15  ;;  %633 = vperm.xlu0 %3133, %v588_v57   ;;  %v284_v56 = vsel %vm5420_vm1, %v200_v31, 0 }
 0x180   :  { %624 = vperm.xlu1 %3134, %v585_v58   ;;  %639 = vperm.xlu0 %3133, %v590_v59  }
 0x184   :  { %630 = vperm.xlu1 %3134, %v587_v60   ;;  %645 = vperm.xlu0 %3133, %v592_v61  }
 0x188   :  { %636 = vperm.xlu1 %3134, %v589_v62   ;;  %651 = vperm.xlu0 %3133, %v594_v63  }
 0x18c   :  { %642 = vperm.xlu1 %3134, %v591_v0   ;;  %657 = vperm.xlu0 %3133, %v596_v1  }
 0x190   :  { %648 = vperm.xlu1 %3134, %v593_v2   ;;  %663 = vperm.xlu0 %3133, %v598_v3  }
 0x194   :  { %654 = vperm.xlu1 %3134, %v595_v4   ;;  %669 = vperm.xlu0 %3133, %v600_v5  }
 0x198   :  { %660 = vperm.xlu1 %3134, %v597_v6   ;;  %675 = vperm.xlu0 %3133, %v602_v7  }
 0x19c   :  { %666 = vperm.xlu1 %3134, %v599_v8   ;;  %681 = vperm.xlu0 %3133, %v604_v9  }
 0x1a0   :  { %672 = vperm.xlu1 %3134, %v601_v10   ;;  %687 = vperm.xlu0 %3133, %v606_v11  }
 0x1a4   :  { %678 = vperm.xlu1 %3134, %v603_v12   ;;  %693 = vperm.xlu0 %3133, %v608_v13  }
 0x1a8   :  { %684 = vperm.xlu1 %3134, %v605_v14   ;;  %699 = vperm.xlu0 %3133, %v610_v15  }
 0x1ac   :  { %690 = vperm.xlu1 %3134, %v607_v16   ;;  %705 = vperm.xlu0 %3133, %v612_v17  }
 0x1b0   :  { %696 = vperm.xlu1 %3134, %v609_v18   ;;  %1624 = vrot.lane.b32.xlu0 %v3490_v24, %s3372_s15 }
 0x1b4   :  { %702 = vperm.xlu1 %3134, %v611_v19   ;;  %1626 = vrot.lane.b32.xlu0 %v3488_v23, %s3372_s15 }
 0x1b8   :  { %708 = vperm.xlu1 %3134, %v613_v20   ;;  %1646 = vrot.lane.b32.xlu0 %v3536_v40, %s3372_s15 }
 0x1bc   :  { %1640 = vrot.lane.b32.xlu1 %v3520_v36, %s3372_s15  ;;  %1650 = vrot.lane.b32.xlu0 %v3552_v44, %s3372_s15 }
 0x1c0   :  { %1642 = vrot.lane.b32.xlu1 %v3524_v37, %s3372_s15 }
 0x1c4   :  { %1628 = vrot.lane.b32.xlu1 %v3498_v34, %s3372_s15 }
 0x1c8   :  { %1630 = vrot.lane.b32.xlu1 %v3496_v33, %s3372_s15 }
 0x1ca   :  { %v210_v25 = vpop.permute.xlu1 %209 }
 0x1cb   :  { %3112 = vmatprep.subr.msk.bf16.mxu1 %vm5420_vm1, %v210_v25 }
 0x1cc   :  { %1648 = vrot.lane.b32.xlu1 %v3544_v42, %s3372_s15  ;;  %2775 = vmatpush3.bf16.xpose.msra.mxu1 %v275_v26 }
 0x1ce   :  { %v212_v27 = vpop.permute.xlu1 %211 }
 0x1cf   :  { %3113 = vmatprep.subr.msk.bf16.mxu1 %vm5420_vm1, %v212_v27 }
 0x1d0   :  { %1632 = vrot.lane.b32.xlu1 %v3530_v39, %s3372_s15 }
 0x1d2   :  { %v214_v30 = vpop.permute.xlu1 %213  ;;  %v202_v32 = vpop.permute.xlu0 %201 }
 0x1d3   :  { %v287_v60 = vsel %vm5420_vm1, %v202_v32, 0 }
 0x1d4   :  { %1634 = vrot.lane.b32.xlu1 %v3538_v41, %s3372_s15  ;;  %2777 = vmatpush3.bf16.xpose.msra.mxu1 %v278_v29 }
 0x1d5   :  { %3114 = vmatprep.subr.msk.bf16.mxu1 %vm5420_vm1, %v214_v30 }
 0x1d6   :  { %v216_v47 = vpop.permute.xlu1 %215  ;;  %v204_v53 = vpop.permute.xlu0 %203 }
 0x1d7   :  { %v290_v1 = vsel %vm5420_vm1, %v204_v53, 0 }
 0x1d8   :  { %1644 = vrot.lane.b32.xlu1 %v3528_v38, %s3372_s15 }
 0x1da   :  { %v218_v54 = vpop.permute.xlu1 %217  ;;  %v206_v57 = vpop.permute.xlu0 %205 }
 0x1db   :  { %v293_v6 = vsel %vm5420_vm1, %v206_v57, 0 }
 0x1dc   :  { %1652 = vrot.lane.b32.xlu1 %v3563_v48, %s3372_s15  ;;  %2779 = vmatpush3.bf16.xpose.msra.mxu1 %v281_v50 }
 0x1dd   :  { %3115 = vmatprep.subr.msk.bf16.mxu1 %vm5420_vm1, %v216_v47 }
 0x1de   :  { %v220_v58 = vpop.permute.xlu1 %219  ;;  %v208_v59 = vpop.permute.xlu0 %207 }
 0x1df   :  { %v296_v11 = vsel %vm5420_vm1, %v208_v59, 0 }
 0x1e2   :  { %v222_v61 = vpop.permute.xlu1 %221 }
 0x1e4   :  { %2781 = vmatpush3.bf16.xpose.msra.mxu1 %v284_v56 }
 0x1e5   :  { %3116 = vmatprep.subr.msk.bf16.mxu1 %vm5420_vm1, %v218_v54 }
 0x1e6   :  { %v224_v63 = vpop.permute.xlu1 %223 }
 0x1ec   :  { %2783 = vmatpush3.bf16.xpose.msra.mxu1 %v287_v60 }
 0x1ed   :  { %3117 = vmatprep.subr.msk.bf16.mxu1 %vm5420_vm1, %v220_v58 }
 0x1ef   :  { %v3714_v62 = vpop.permute.xlu0 %615 }
 0x1f3   :  { %v3716_v0 = vpop.permute.xlu0 %621 }
 0x1f4   :  { %2785 = vmatpush3.bf16.xpose.msra.mxu1 %v290_v1 }
 0x1f5   :  { %3118 = vmatprep.subr.msk.bf16.mxu1 %vm5420_vm1, %v222_v61 }
 0x1f7   :  { %v3720_v2 = vpop.permute.xlu1 %618  ;;  %v3722_v3 = vpop.permute.xlu0 %627 }
 0x1fb   :  { %v3724_v4 = vpop.permute.xlu1 %972  ;;  %v3726_v5 = vpop.permute.xlu0 %633 }
 0x1fc   :  { %2787 = vmatpush3.bf16.xpose.msra.mxu1 %v293_v6 }
 0x1fd   :  { %3119 = vmatprep.subr.msk.bf16.mxu1 %vm5420_vm1, %v224_v63 }
 0x1ff   :  { %v3730_v7 = vpop.permute.xlu1 %624  ;;  %v3732_v8 = vpop.permute.xlu0 %639 }
 0x203   :  { %v3734_v9 = vpop.permute.xlu1 %630  ;;  %v3736_v10 = vpop.permute.xlu0 %645 }
 0x204   :  { %2789 = vmatpush3.bf16.xpose.msra.mxu1 %v296_v11 }
 0x207   :  { %v3739_v12 = vpop.permute.xlu1 %636  ;;  %v3741_v13 = vpop.permute.xlu0 %651 }
 0x20b   :  { %v3743_v14 = vpop.permute.xlu1 %642  ;;  %v3745_v15 = vpop.permute.xlu0 %657  ;;  %2791 = vmatmul.mubr.msk.bf16.vlgmr.msra.gmra.mrb[0].mxu1 %vm5420_vm1, %v3490_v24 }
 0x20c   :  { %2792 = vmatprep.mubr.msk.bf16.mxu1 %vm5420_vm1, %v3488_v23 }
 0x20f   :  { %v3751_v16 = vpop.permute.xlu1 %648  ;;  %v3753_v17 = vpop.permute.xlu0 %663 }
 0x213   :  { %v3755_v18 = vpop.permute.xlu1 %654  ;;  %v3757_v19 = vpop.permute.xlu0 %669  ;;  %2793 = vmatmul.mubr.msk.bf16.gmra.mrb[4].mxu1 %vm5420_vm1, %v3488_v23 }
 0x214   :  { %2794 = vmatprep.mubr.msk.bf16.mxu1 %vm5420_vm1, %v3498_v34 }
 0x217   :  { %v3763_v20 = vpop.permute.xlu1 %660  ;;  %v3765_v24 = vpop.permute.xlu0 %675 }
 0x21b   :  { %v3767_v21 = vpop.permute.xlu1 %666  ;;  %2795 = vmatmul.mubr.msk.bf16.gmra.mrb[8].mxu1 %vm5420_vm1, %v3498_v34  ;;  %v3771_v22 = vpop.permute.xlu0 %681 }
 0x21c   :  { %2796 = vmatprep.mubr.msk.bf16.mxu1 %vm5420_vm1, %v3496_v33 }
 0x21f   :  { %v3775_v25 = vpop.permute.xlu1 %672  ;;  %v3777_v23 = vpop.permute.xlu0 %687 }
 0x223   :  { %v3779_v26 = vpop.permute.xlu1 %678  ;;  %2797 = vmatmul.mubr.msk.bf16.gmra.mrb[12].mxu1 %vm5420_vm1, %v3496_v33  ;;  %v3787_v34 = vpop.permute.xlu0 %693 }
 0x224   :  { %2798 = vmatprep.mubr.msk.bf16.mxu1 %vm5420_vm1, %v3530_v39 }
 0x227   :  { %v3785_v27 = vpop.permute.xlu1 %684  ;;  %v3795_v29 = vpop.permute.xlu0 %699 }
 0x22b   :  { %v3789_v28 = vpop.permute.xlu1 %690  ;;  %2799 = vmatmul.mubr.msk.bf16.gmra.mrb[16].mxu1 %vm5420_vm1, %v3530_v39  ;;  %v3803_v31 = vpop.permute.xlu0 %705 }
 0x22c   :  { %2800 = vmatprep.mubr.msk.bf16.mxu1 %vm5420_vm1, %v3538_v41  ;;  %5461 = vst [vmem:[#allocation4_spill] sm:$0xff] %v3803_v31 }
 0x22f   :  { %v3797_v30 = vpop.permute.xlu1 %696  ;;  %v1625_v39 = vpop.permute.xlu0 %1624 }
 0x233   :  { %v3799_v33 = vpop.permute.xlu1 %702  ;;  %2801 = vmatmul.mubr.msk.bf16.gmra.mrb[20].mxu1 %vm5420_vm1, %v3538_v41  ;;  %v1627_v53 = vpop.permute.xlu0 %1626 }
 0x234   :  { %2802 = vmatprep.mubr.msk.bf16.mxu1 %vm5420_vm1, %v3546_v43 }
 0x237   :  { %v3807_v32 = vpop.permute.xlu1 %708  ;;  %v1647_v60 = vpop.permute.xlu0 %1646 }
 0x23b   :  { %v1641_v47 = vpop.permute.xlu1 %1640  ;;  %2803 = vmatmul.mubr.msk.bf16.gmra.mrb[24].mxu1 %vm5420_vm1, %v3546_v43 }
 0x23c   :  { %2804 = vmatprep.mubr.msk.bf16.mxu1 %vm5420_vm1, %v3554_v45  ;;  %2822 = vmatprep.subr.bf16.mxu0 %v1641_v47 }
 0x23d   :  { %2823 = vmatpush3.bf16.msra.mxu0 %v1625_v39 }
 0x23f   :  { %v1643_v50 = vpop.permute.xlu1 %1642 }
 0x240   :  { %2824 = vmatprep.subr.bf16.mxu0 %v1643_v50 }
 0x241   :  { %2825 = vmatpush3.bf16.msra.mxu0 %v1627_v53 }
 0x243   :  { %v1629_v41 = vpop.permute.xlu1 %1628  ;;  %2805 = vmatmul.mubr.msk.bf16.gmra.mrb[28].mxu1 %vm5420_vm1, %v3554_v45 }
 0x244   :  { %2806 = vmatprep.mubr.msk.bf16.mxu1 %vm5420_vm1, %v3520_v36 }
 0x247   :  { %v1631_v54 = vpop.permute.xlu1 %1630 }
 0x24b   :  { %v1649_v56 = vpop.permute.xlu1 %1648  ;;  %2807 = vmatmul.mubr.msk.bf16.gmra.mrb[32].mxu1 %vm5420_vm1, %v3520_v36  ;;  %v1651_v36 = vpop.permute.xlu0 %1650 }
 0x24c   :  { %2808 = vmatprep.mubr.msk.bf16.mxu1 %vm5420_vm1, %v3524_v37 }
 0x24f   :  { %v1633_v57 = vpop.permute.xlu1 %1632 }
 0x253   :  { %v1635_v58 = vpop.permute.xlu1 %1634  ;;  %2809 = vmatmul.mubr.msk.bf16.gmra.mrb[36].mxu1 %vm5420_vm1, %v3524_v37 }
 0x254   :  { %2810 = vmatprep.mubr.msk.bf16.mxu1 %vm5420_vm1, %v3528_v38 }
 0x257   :  { %v1645_v59 = vpop.permute.xlu1 %1644 }
 0x258   :  { %2826 = vmatprep.subr.bf16.mxu0 %v1645_v59 }
 0x259   :  { %2827 = vmatpush3.bf16.msra.mxu0 %v1629_v41 }
 0x25a   :  { %2828 = vmatprep.subr.bf16.mxu0 %v1647_v60 }
 0x25b   :  { %2811 = vmatmul.mubr.msk.bf16.gmra.mrb[40].mxu1 %vm5420_vm1, %v3528_v38  ;;  %v1653_v37 = vpop.permute.xlu1 %1652  ;;  %v3848_v38 = vand.u32 127, %v579_v46 }
 0x25c   :  { %2812 = vmatprep.mubr.msk.bf16.mxu1 %vm5420_vm1, %v3536_v40 }
 0x25d   :  { %2829 = vmatpush3.bf16.msra.mxu0 %v1631_v54  ;;  %v712_v63 = vsub.s32 %v3848_v38, %v3720_v2  ;;  %v718_v59 = vsub.s32 %v3848_v38, %v3722_v3 }
 0x25e   :  { %2830 = vmatprep.subr.bf16.mxu0 %v1649_v56 }
 0x25f   :  { %vm776_vm10 = vcmp.ge.s32.totalorder %v712_v63, 0  ;;  %vm840_vm11 = vcmp.lt.s32.totalorder %v712_v63, 16 }
 0x261   :  { %2831 = vmatpush3.bf16.msra.mxu0 %v1633_v57 }
 0x262   :  { %2832 = vmatprep.subr.bf16.mxu0 %v1651_v36 }
 0x263   :  { %2813 = vmatmul.mubr.msk.bf16.gmra.mrb[44].mxu1 %vm5420_vm1, %v3536_v40  ;;  %v976_v40 = vsel %vm5418_vm2, %v3587_v55, %v3724_v4  ;;  %v716_v4 = vsub.s32 %v3848_v38, %v3730_v7 }
 0x264   :  { %2814 = vmatprep.mubr.msk.bf16.mxu1 %vm5420_vm1, %v3544_v42  ;;  %vm977_vm3 = vcmp.gt.f32.partialorder %v976_v40, 0.0 }
 0x265   :  { %2833 = vmatpush3.bf16.msra.mxu0 %v1635_v58  ;;  %v726_v58 = vsub.s32 %v3848_v38, %v3732_v8 }
 0x266   :  { %2834 = vmatprep.subr.bf16.mxu0 %v1653_v37 }
 0x26b   :  { %2815 = vmatmul.mubr.msk.bf16.gmra.mrb[48].mxu1 %vm5420_vm1, %v3544_v42  ;;  %v3854_v42 = vadd.s32 128, %v3848_v38 }
 0x26c   :  { %2816 = vmatprep.mubr.msk.bf16.mxu1 %vm5420_vm1, %v3552_v44 }
 0x26d   :  { %v711_v61 = vsub.s32 %v3854_v42, %v3714_v62  ;;  %v713_v55 = vsub.s32 %v3854_v42, %v3720_v2  ;;  %v717_v39 = vsub.s32 %v3854_v42, %v3730_v7  ;;  %v719_v36 = vsub.s32 %v3854_v42, %v3722_v3 }
 0x26e   :  { %v749_v45 = vsub.s32 %v3854_v42, %v3775_v25 }
 0x26f   :  { %vm775_vm6 = vcmp.ge.s32.totalorder %v711_v61, 0  ;;  %vm839_vm7 = vcmp.lt.s32.totalorder %v711_v61, 16  ;;  %vm777_vm13 = vcmp.ge.s32.totalorder %v713_v55, 0  ;;  %vm841_vm14 = vcmp.lt.s32.totalorder %v713_v55, 16 }
 0x270   :  { %vm903_vm12 = vmand %vm775_vm6, %vm839_vm7 }
 0x273   :  { %2817 = vmatmul.mubr.msk.bf16.gmra.mrb[52].mxu1 %vm5420_vm1, %v3552_v44  ;;  %v710_v44 = vsub.s32 %v3848_v38, %v3714_v62 }
 0x274   :  { %2818 = vmatprep.mubr.msk.bf16.mxu1 %vm5420_vm1, %v3563_v48 }
 0x275   :  { %vm774_vm4 = vcmp.ge.s32.totalorder %v710_v44, 0  ;;  %vm838_vm5 = vcmp.lt.s32.totalorder %v710_v44, 16 }
 0x276   :  { %vm902_vm9 = vmand %vm774_vm4, %vm838_vm5 }
 0x277   :  { %vm905_vm4 = vmand %vm777_vm13, %vm841_vm14  ;;  %vm780_vm14 = vcmp.ge.s32.totalorder %v716_v4, 0 }
 0x27b   :  { %2819 = vmatmul.mubr.msk.bf16.gmra.mrb[56].mxu1 %vm5420_vm1, %v3563_v48  ;;  %v978_v48 = vsel %vm977_vm3, 1, %v3369_v35  ;;  %v714_v35 = vsub.s32 %v3848_v38, %v3716_v0  ;;  %vm904_vm3 = vmand %vm776_vm10, %vm840_vm11 }
 0x27c   :  { %2820 = vmatprep.mubr.msk.bf16.mxu1 %vm5420_vm1, %v3573_v51  ;;  %v3863_v46 = vrot.slane %v978_v48, %v970_v52  ;;  %v715_v52 = vsub.s32 %v3854_v42, %v3716_v0 }
 0x27d   :  { %vm778_vm6 = vcmp.ge.s32.totalorder %v714_v35, 0  ;;  %vm842_vm7 = vcmp.lt.s32.totalorder %v714_v35, 16 }
 0x27e   :  { %vm5428_vm8 = vcmp.eq.s32.totalorder %v3863_v46, 1  ;;  %vm779_vm11 = vcmp.ge.s32.totalorder %v715_v52, 0  ;;  %vm906_vm13 = vmand %vm778_vm6, %vm842_vm7 }
 0x27f   :  { %vm3874_vm15 = vmand %vm902_vm9, %vm5428_vm8 }
 0x280   :  { %vm985_vm5 = vmand %vm903_vm12, %vm5428_vm8  ;;  %vm843_vm12 = vcmp.lt.s32.totalorder %v715_v52, 16 }
 0x281   :  { %vm986_vm9 = vmand %vm904_vm3, %vm5428_vm8 }
 0x282   :  { %vm987_vm10 = vmand %vm905_vm4, %vm5428_vm8  ;;  %vm781_vm4 = vcmp.ge.s32.totalorder %v717_v39, 0 }
 0x283   :  { %2821 = vmatmul.mubr.msk.bf16.gmra.mrb[60].mxu1 %vm5420_vm1, %v3573_v51  ;;  %vm3904_vm3 = vmand %vm779_vm11, %vm843_vm12  ;;  %vm782_vm12 = vcmp.ge.s32.totalorder %v718_v59, 0 }
 0x284   :  { %vm988_vm6 = vmand %vm906_vm13, %vm5428_vm8  ;;  %vm846_vm13 = vcmp.lt.s32.totalorder %v718_v59, 16 }
 0x2de   :  { %v356_v62 = vpop.f32.mrb[0].mxu1 }
 0x2df   :  { %v515_v1 = vmul.f32 0.35355338, %v356_v62  ;;  %v358_v2 = vpop.f32.mrb[1].mxu1 }
 0x2e0   :  { %v516_v6 = vmul.f32 0.35355338, %v358_v2  ;;  %v360_v11 = vpop.f32.mrb[2].mxu1  ;;  %v722_v2 = vsub.s32 %v3848_v38, %v3726_v5 }
 0x2e1   :  { %v517_v47 = vmul.f32 0.35355338, %v360_v11  ;;  %v362_v0 = vpop.f32.mrb[3].mxu1  ;;  %v3888_v50 = vsel %vm3874_vm15, %v515_v1, -1e+09  ;;  %vm844_vm15 = vcmp.lt.s32.totalorder %v716_v4, 16 }
 0x2e2   :  { %v518_v53 = vmul.f32 0.35355338, %v362_v0  ;;  %v3892_v41 = vsel %vm985_vm5, %v516_v6, -1e+09  ;;  %vm845_vm5 = vcmp.lt.s32.totalorder %v717_v39, 16  ;;  %vm908_vm7 = vmand %vm780_vm14, %vm844_vm15  ;;  %vm783_vm15 = vcmp.ge.s32.totalorder %v719_v36, 0 }
 0x2e3   :  { %v1112_v7 = vmax.f32 %v3888_v50, %v3892_v41  ;;  %v3898_v54 = vsel %vm986_vm9, %v517_v47, -1e+09  ;;  %vm909_vm9 = vmand %vm781_vm4, %vm845_vm5  ;;  %v723_v6 = vsub.s32 %v3854_v42, %v3726_v5 }
 0x2e4   :  { %v3900_v56 = vsel %vm987_vm10, %v518_v53, -1e+09  ;;  %vm989_vm10 = vmand %vm3904_vm3, %vm5428_vm8  ;;  %vm847_vm3 = vcmp.lt.s32.totalorder %v719_v36, 16 }
 0x2e5   :  { %1113 = vmax.xlane.f32.xlu0 %v1112_v7  ;;  %v1115_v57 = vmax.f32 %v3898_v54, %v3900_v56  ;;  %vm990_vm11 = vmand %vm908_vm7, %vm5428_vm8 }
 0x2e6   :  { %v366_v60 = vpop.f32.mrb[4].mxu1  ;;  %vm991_vm14 = vmand %vm909_vm9, %vm5428_vm8  ;;  %vm786_vm9 = vcmp.ge.s32.totalorder %v722_v2, 0 }
 0x2e7   :  { %v519_v37 = vmul.f32 0.35355338, %v366_v60  ;;  %1116 = vmax.xlane.f32.xlu1 %v1115_v57  ;;  %v368_v40 = vpop.f32.mrb[5].mxu1  ;;  %vm910_vm4 = vmand %vm782_vm12, %vm846_vm13  ;;  %vm851_vm12 = vcmp.lt.s32.totalorder %v723_v6, 16  ;;  %v727_v60 = vsub.s32 %v3854_v42, %v3732_v8 }
 0x2e8   :  { %v520_v44 = vmul.f32 0.35355338, %v368_v40  ;;  %v370_v48 = vpop.f32.mrb[6].mxu1  ;;  %vm911_vm5 = vmand %vm783_vm15, %vm847_vm3 }
 0x2e9   :  { %v521_v61 = vmul.f32 0.35355338, %v370_v48  ;;  %v372_v63 = vpop.f32.mrb[7].mxu1  ;;  %v3918_v55 = vsel %vm988_vm6, %v519_v37, -1e+09  ;;  %vm992_vm6 = vmand %vm910_vm4, %vm5428_vm8  ;;  %vm790_vm4 = vcmp.ge.s32.totalorder %v726_v58, 0 }
 0x2ea   :  { %v522_v35 = vmul.f32 0.35355338, %v372_v63  ;;  %v3920_v49 = vsel %vm989_vm10, %v520_v44, -1e+09  ;;  %vm993_vm7 = vmand %vm911_vm5, %vm5428_vm8  ;;  %vm850_vm10 = vcmp.lt.s32.totalorder %v722_v2, 16  ;;  %vm854_vm5 = vcmp.lt.s32.totalorder %v726_v58, 16 }
 0x2eb   :  { %v1118_v3 = vmax.f32 %v3918_v55, %v3920_v49  ;;  %v3928_v52 = vsel %vm990_vm11, %v521_v61, -1e+09  ;;  %vm787_vm11 = vcmp.ge.s32.totalorder %v723_v6, 0  ;;  %vm914_vm13 = vmand %vm786_vm9, %vm850_vm10 }
 0x2ec   :  { %v3930_v62 = vsel %vm991_vm14, %v522_v35, -1e+09  ;;  %vm915_vm14 = vmand %vm787_vm11, %vm851_vm12  ;;  %v730_v35 = vsub.s32 %v3848_v38, %v3736_v10 }
 0x2ed   :  { %5466 = vst [vmem:[#allocation5_spill] sm:$0xff] %v3930_v62  ;;  %1119 = vmax.xlane.f32.xlu0 %v1118_v3  ;;  %v1121_v1 = vmax.f32 %v3928_v52, %v3930_v62  ;;  %vm996_vm15 = vmand %vm914_vm13, %vm5428_vm8  ;;  %v731_v3 = vsub.s32 %v3854_v42, %v3736_v10  ;;  %v734_v10 = vsub.s32 %v3848_v38, %v3741_v13 }
 0x2ee   :  { %v376_v4 = vpop.f32.mrb[8].mxu1  ;;  %vm997_vm3 = vmand %vm915_vm14, %vm5428_vm8  ;;  %vm794_vm12 = vcmp.ge.s32.totalorder %v730_v35, 0  ;;  %vm858_vm13 = vcmp.lt.s32.totalorder %v730_v35, 16 }
 0x2ef   :  { %v523_v11 = vmul.f32 0.35355338, %v376_v4  ;;  %1122 = vmax.xlane.f32.xlu1 %v1121_v1  ;;  %v378_v39 = vpop.f32.mrb[9].mxu1  ;;  %vm918_vm9 = vmand %vm790_vm4, %vm854_vm5 }
 0x2f0   :  { %v524_v47 = vmul.f32 0.35355338, %v378_v39  ;;  %v3938_v0 = vpop.f32.mrb[10].mxu1  ;;  %vm1000_vm11 = vmand %vm918_vm9, %vm5428_vm8 }
 0x2f1   :  { %v3942_v53 = vpop.f32.mrb[11].mxu1  ;;  %v3946_v7 = vsel %vm992_vm6, %v523_v11, -1e+09  ;;  %vm791_vm6 = vcmp.ge.s32.totalorder %v727_v60, 0  ;;  %vm922_vm4 = vmand %vm794_vm12, %vm858_vm13  ;;  %v525_v31 = vmul.f32 0.35355338, %v3938_v0 }
 0x2f2   :  { %5467 = vst [vmem:[#allocation6_spill] sm:$0xff] %v3946_v7  ;;  %v3948_v57 = vsel %vm993_vm7, %v524_v47, -1e+09  ;;  %vm855_vm7 = vcmp.lt.s32.totalorder %v727_v60, 16  ;;  %vm1004_vm9 = vmand %vm922_vm4, %vm5428_vm8 }
 0x2f3   :  { %5468 = vst [vmem:[#allocation7_spill] sm:$0xff] %v3948_v57  ;;  %v1124_v5 = vmax.f32 %v3946_v7, %v3948_v57  ;;  %vm919_vm10 = vmand %vm791_vm6, %vm855_vm7  ;;  %vm798_vm6 = vcmp.ge.s32.totalorder %v734_v10, 0  ;;  %vm862_vm7 = vcmp.lt.s32.totalorder %v734_v10, 16 }
 0x2f4   :  { %vm1001_vm14 = vmand %vm919_vm10, %vm5428_vm8 }
 0x2f5   :  { %1125 = vmax.xlane.f32.xlu0 %v1124_v5  ;;  %vm926_vm13 = vmand %vm798_vm6, %vm862_vm7 }
 0x2f6   :  { %v386_v59 = vpop.f32.mrb[12].mxu1  ;;  %vm4022_vm4 = vmand %vm926_vm13, %vm5428_vm8 }
 0x2f7   :  { %v527_v36 = vmul.f32 0.35355338, %v386_v59  ;;  %v388_v37 = vpop.f32.mrb[13].mxu1  ;;  %v738_v59 = vsub.s32 %v3848_v38, %v3745_v15 }
 0x2f8   :  { %v528_v40 = vmul.f32 0.35355338, %v388_v37  ;;  %v3956_v44 = vpop.f32.mrb[14].mxu1 }
 0x2f9   :  { %v3960_v48 = vpop.f32.mrb[15].mxu1  ;;  %v3964_v61 = vsel %vm996_vm15, %v527_v36, -1e+09  ;;  %vm795_vm15 = vcmp.ge.s32.totalorder %v731_v3, 0 }
 0x2fa   :  { %5469 = vst [vmem:[#allocation8_spill] sm:$0xff] %v3964_v61  ;;  %v3966_v63 = vsel %vm997_vm3, %v528_v40, -1e+09  ;;  %vm859_vm3 = vcmp.lt.s32.totalorder %v731_v3, 16  ;;  %v740_v40 = vsub.s32 %v3848_v38, %v3763_v20  ;;  %v741_v3 = vsub.s32 %v3854_v42, %v3763_v20 }
 0x2fb   :  { %5470 = vst [vmem:[#allocation9_spill] sm:$0xff] %v3966_v63  ;;  %v1130_v8 = vmax.f32 %v3964_v61, %v3966_v63  ;;  %vm923_vm5 = vmand %vm795_vm15, %vm859_vm3  ;;  %vm802_vm15 = vcmp.ge.s32.totalorder %v738_v59, 0  ;;  %vm866_vm3 = vcmp.lt.s32.totalorder %v738_v59, 16  ;;  %v728_v20 = vsub.s32 %v3848_v38, %v3743_v14 }
 0x2fc   :  { %vm1005_vm12 = vmand %vm923_vm5, %vm5428_vm8  ;;  %vm869_vm13 = vcmp.lt.s32.totalorder %v741_v3, 16 }
 0x2fd   :  { %1131 = vmax.xlane.f32.xlu0 %v1130_v8 }
 0x2fe   :  { %v396_v1 = vpop.f32.mrb[16].mxu1 }
 0x2ff   :  { %v531_v2 = vmul.f32 0.35355338, %v396_v1  ;;  %v398_v4 = vpop.f32.mrb[17].mxu1 }
 0x300   :  { %v532_v6 = vmul.f32 0.35355338, %v398_v4  ;;  %1636 = vrot.lane.b32.xlu1 %v3546_v43, %s3372_s15  ;;  %v3976_v11 = vpop.f32.mrb[18].mxu1  ;;  %v735_v43 = vsub.s32 %v3854_v42, %v3741_v13  ;;  %v739_v13 = vsub.s32 %v3854_v42, %v3745_v15  ;;  %v720_v15 = vsub.s32 %v3848_v38, %v3734_v9 }
 0x301   :  { %v3982_v39 = vpop.f32.mrb[19].mxu1  ;;  %v3986_v47 = vsel %vm1000_vm11, %v531_v2, -1e+09 }
 0x302   :  { %5471 = vst [vmem:[#allocation10_spill] sm:$0xff] %v3986_v47  ;;  %v3990_v5 = vsel %vm1001_vm14, %v532_v6, -1e+09  ;;  %vm799_vm10 = vcmp.ge.s32.totalorder %v735_v43, 0  ;;  %vm863_vm11 = vcmp.lt.s32.totalorder %v735_v43, 16  ;;  %v721_v6 = vsub.s32 %v3854_v42, %v3734_v9 }
 0x303   :  { %5472 = vst [vmem:[#allocation11_spill] sm:$0xff] %v3990_v5  ;;  %v1136_v58 = vmax.f32 %v3986_v47, %v3990_v5  ;;  %vm927_vm14 = vmand %vm799_vm10, %vm863_vm11  ;;  %vm803_vm5 = vcmp.ge.s32.totalorder %v739_v13, 0  ;;  %vm867_vm6 = vcmp.lt.s32.totalorder %v739_v13, 16  ;;  %vm868_vm10 = vcmp.lt.s32.totalorder %v740_v40, 16 }
 0x304   :  { %vm4028_vm7 = vmand %vm927_vm14, %vm5428_vm8  ;;  %vm784_vm0 = vcmp.ge.s32.totalorder %v720_v15, 0  ;;  %vm848_vm1 = vcmp.lt.s32.totalorder %v720_v15, 16  ;;  %v729_v15 = vsub.s32 %v3854_v42, %v3743_v14  ;;  %v4117_v14 = vsub.s32 %v3854_v42, %v3751_v16 }
 0x305   :  { %1137 = vmax.xlane.f32.xlu0 %v1136_v58  ;;  %vm4032_vm11 = vmand %vm802_vm15, %vm866_vm3  ;;  %vm785_vm15 = vcmp.ge.s32.totalorder %v721_v6, 0  ;;  %vm849_vm3 = vcmp.lt.s32.totalorder %v721_v6, 16  ;;  %v4113_v6 = vsub.s32 %v3848_v38, %v3751_v16  ;;  %v530_v16 = vmul.f32 0.35355338, %v3960_v48 }
 0x306   :  { %v406_v60 = vpop.f32.mrb[20].mxu1  ;;  %vm4036_vm2 = vmand %vm803_vm5, %vm867_vm6 }
 0x307   :  { %v535_v36 = vmul.f32 0.35355338, %v406_v60  ;;  %v408_v37 = vpop.f32.mrb[21].mxu1  ;;  %v744_v60 = vsub.s32 %v3848_v38, %v3767_v21  ;;  %vm4054_vm5 = vmand %vm4032_vm11, %vm5428_vm8 }
 0x308   :  { %v536_v8 = vmul.f32 0.35355338, %v408_v37  ;;  %v4004_v35 = vpop.f32.mrb[22].mxu1  ;;  %v4129_v37 = vsub.s32 %v3848_v38, %v3753_v17 }
 0x309   :  { %v4008_v1 = vpop.f32.mrb[23].mxu1  ;;  %v4010_v2 = vsel %vm1004_vm9, %v535_v36, -1e+09  ;;  %vm804_vm9 = vcmp.ge.s32.totalorder %v740_v40, 0  ;;  %v724_v40 = vsub.s32 %v3848_v38, %v3739_v12 }
 0x30a   :  { %5473 = vst [vmem:[#allocation12_spill] sm:$0xff] %v4010_v2  ;;  %v4014_v4 = vsel %vm1005_vm12, %v536_v8, -1e+09  ;;  %vm805_vm12 = vcmp.ge.s32.totalorder %v741_v3, 0  ;;  %vm4042_vm14 = vmand %vm804_vm9, %vm868_vm10  ;;  %v4157_v3 = vsub.s32 %v3848_v38, %v3757_v19 }
 0x30b   :  { %5474 = vst [vmem:[#allocation13_spill] sm:$0xff] %v4014_v4  ;;  %v1142_v10 = vmax.f32 %v4010_v2, %v4014_v4  ;;  %vm4060_vm6 = vmand %vm805_vm12, %vm869_vm13  ;;  %v745_v4 = vsub.s32 %v3854_v42, %v3767_v21  ;;  %v725_v21 = vsub.s32 %v3854_v42, %v3739_v12  ;;  %vm788_vm11 = vcmp.ge.s32.totalorder %v724_v40, 0 }
 0x30c   :  { %vm4076_vm9 = vmand %vm4036_vm2, %vm5428_vm8  ;;  %vm852_vm12 = vcmp.lt.s32.totalorder %v724_v40, 16  ;;  %v747_v40 = vsub.s32 %v3854_v42, %v3757_v19  ;;  %v526_v19 = vmul.f32 0.35355338, %v3942_v53  ;;  %v4223_v53 = vsub.s32 %v3854_v42, %v3765_v24 }
 0x30d   :  { %1143 = vmax.xlane.f32.xlu0 %v1142_v10  ;;  %vm4082_vm10 = vmand %vm784_vm0, %vm848_vm1  ;;  %vm808_vm1 = vcmp.ge.s32.totalorder %v744_v60, 0 }
 0x30e   :  { %v416_v58 = vpop.f32.mrb[24].mxu1  ;;  %vm4095_vm2 = vmand %vm785_vm15, %vm849_vm3  ;;  %vm792_vm15 = vcmp.ge.s32.totalorder %v728_v20, 0 }
 0x30f   :  { %v539_v13 = vmul.f32 0.35355338, %v416_v58  ;;  %v418_v36 = vpop.f32.mrb[25].mxu1  ;;  %vm4107_vm0 = vmand %vm4042_vm14, %vm5428_vm8  ;;  %v5503_v58 = vmov 0 }
 0x310   :  { %v540_v8 = vmul.f32 0.35355338, %v418_v36  ;;  %v4048_v10 = vpop.f32.mrb[26].mxu1  ;;  %vm4139_vm13 = vmand %vm4082_vm10, %vm5428_vm8 }
 0x311   :  { %v4066_v36 = vpop.f32.mrb[27].mxu1  ;;  %v4070_v2 = vsel %vm4022_vm4, %v539_v13, -1e+09  ;;  %vm872_vm4 = vcmp.lt.s32.totalorder %v744_v60, 16  ;;  %vm4147_vm14 = vmand %vm4095_vm2, %vm5428_vm8  ;;  %vm853_vm2 = vcmp.lt.s32.totalorder %v725_v21, 16  ;;  %v748_v60 = vsub.s32 %v3848_v38, %v3775_v25 }
 0x312   :  { %5489 = vst [vmem:[#allocation14_spill] sm:$0xff] %v4070_v2  ;;  %v4092_v13 = vsel %vm4028_vm7, %v540_v8, -1e+09  ;;  %vm4123_vm7 = vmand %vm4060_vm6, %vm5428_vm8  ;;  %v4133_v8 = vsub.s32 %v3848_v38, %v3755_v18  ;;  %v5504_v58 = vsel %vm4147_vm14, 4294967295, %v5503_v58  ;;  %vm856_vm14 = vcmp.lt.s32.totalorder %v728_v20, 16 }
 0x313   :  { %5494 = vst [vmem:[#allocation15_spill] sm:$0xff] %v4092_v13  ;;  %v1148_v63 = vmax.f32 %v4070_v2, %v4092_v13  ;;  %vm4161_vm6 = vmand %vm808_vm1, %vm872_vm4  ;;  %vm5509_vm1 = vcmp.lt.s32.totalorder %v745_v4, 16  ;;  %vm5510_vm4 = vcmp.ge.s32.totalorder %v745_v4, 0  ;;  %v4196_v4 = vsub.s32 %v3848_v38, %v3765_v24 }
 0x314   :  { %vm4167_vm8 = vmand %vm788_vm11, %vm852_vm12  ;;  %vm857_vm11 = vcmp.lt.s32.totalorder %v729_v15, 16  ;;  %vm5513_vm12 = vcmp.ge.s32.totalorder %v725_v21, 0 }
 0x315   :  { %1149 = vmax.xlane.f32.xlu0 %v1148_v63  ;;  %v4153_v63 = vsub.s32 %v3854_v42, %v3755_v18  ;;  %vm4176_vm10 = vmand %vm5510_vm4, %vm5509_vm1 }
 0x316   :  { %v426_v13 = vpop.f32.mrb[28].mxu1  ;;  %vm4190_vm3 = vmand %vm5513_vm12, %vm853_vm2  ;;  %vm877_vm12 = vcmp.lt.s32.totalorder %v749_v45, 16 }
 0x317   :  { %v543_v59 = vmul.f32 0.35355338, %v426_v13  ;;  %v428_v61 = vpop.f32.mrb[29].mxu1 }
 0x318   :  { %v544_v5 = vmul.f32 0.35355338, %v428_v61  ;;  %v430_v47 = vpop.f32.mrb[30].mxu1  ;;  %v5602_v61 = vmov 0 }
 0x319   :  { %v545_v57 = vmul.f32 0.35355338, %v430_v47  ;;  %v432_v7 = vpop.f32.mrb[31].mxu1  ;;  %v4186_v0 = vsel %vm4054_vm5, %v543_v59, -1e+09  ;;  %vm5516_vm5 = vcmp.eq.s32.totalorder %v3863_v46, 1  ;;  %v743_v47 = vsub.s32 %v3854_v42, %v3753_v17 }
 0x31a   :  { %v546_v62 = vmul.f32 0.35355338, %v432_v7  ;;  %v4201_v25 = vsel %vm4076_vm9, %v544_v5, -1e+09  ;;  %vm4207_vm1 = vmand %vm4161_vm6, %vm5516_vm5  ;;  %v529_v59 = vmul.f32 0.35355338, %v3956_v44 }
 0x31b   :  { %vm5519_vm2 = vmmov %vm5516_vm5  ;;  %v1154_v7 = vmax.f32 %v4186_v0, %v4201_v25  ;;  %v4245_v2 = vsel %vm4107_vm0, %v545_v57, -1e+09  ;;  %v537_v57 = vmul.f32 0.35355338, %v4004_v35 }
 0x31c   :  { %vm4215_vm4 = vmand %vm4167_vm8, %vm5519_vm2  ;;  %v4249_v9 = vsel %vm4123_vm7, %v546_v62, -1e+09  ;;  %vm813_vm7 = vcmp.ge.s32.totalorder %v749_v45, 0  ;;  %v4268_v62 = vsub.s32 %v3848_v38, %v3779_v26  ;;  %v5577_v45 = vmov 0 }
 0x31d   :  { %vm920_vm9 = vmand %vm792_vm15, %vm856_vm14  ;;  %vm5525_vm14 = vcmp.ge.s32.totalorder %v729_v15, 0  ;;  %1155 = vmax.xlane.f32.xlu0 %v1154_v7  ;;  %v4274_v15 = vsel %vm4139_vm13, %v525_v31, -1e+09 }
 0x31e   :  { %vm5522_vm5 = vmmov %vm5519_vm2  ;;  %v4270_v20 = vpop.f32.mrb[32].mxu1 }
 0x31f   :  { %vm4233_vm8 = vmand %vm4176_vm10, %vm5522_vm5  ;;  %vm876_vm5 = vcmp.lt.s32.totalorder %v748_v60, 16  ;;  %v4291_v31 = vpop.f32.mrb[33].mxu1 }
 0x320   :  { %vm4239_vm15 = vmand %vm5525_vm14, %vm857_vm11  ;;  %vm812_vm11 = vcmp.ge.s32.totalorder %v748_v60, 0  ;;  %v440_v13 = vpop.f32.mrb[34].mxu1 }
 0x321   :  { %vm4255_vm10 = vmand %vm4190_vm3, %vm5519_vm2  ;;  %vm5533_vm3 = vnez %v5504_v58  ;;  %v1157_v58 = vmax.f32 %v4245_v2, %v4249_v9  ;;  %v549_v48 = vmul.f32 0.35355338, %v440_v13  ;;  %v442_v60 = vpop.f32.mrb[35].mxu1 }
 0x322   :  { %vm5530_vm6 = vmmov %vm5519_vm2  ;;  %v4278_v12 = vsel %vm5533_vm3, %v526_v19, -1e+09  ;;  %v534_v19 = vmul.f32 0.35355338, %v3982_v39  ;;  %v550_v7 = vmul.f32 0.35355338, %v442_v60 }
 0x323   :  { %vm4261_vm0 = vmand %vm920_vm9, %vm5530_vm6  ;;  %1158 = vmax.xlane.f32.xlu0 %v1157_v58  ;;  %v1127_v24 = vmax.f32 %v4274_v15, %v4278_v12  ;;  %v4352_v39 = vsel %vm4207_vm1, %v549_v48, -1e+09  ;;  %v4360_v13 = vsel %vm4255_vm10, %v530_v16, -1e+09  ;;  %vm5559_vm1 = vcmp.ge.s32.totalorder %v4117_v14, 0 }
 0x324   :  { %vm5534_vm9 = vmmov %vm5519_vm2  ;;  %vm860_vm2 = vcmp.lt.s32.totalorder %v4113_v6, 16  ;;  %vm878_vm10 = vcmp.lt.s32.totalorder %v4196_v4, 16  ;;  %v754_v48 = vsub.s32 %v3848_v38, %v3771_v22  ;;  %v538_v60 = vmul.f32 0.35355338, %v4008_v1 }
 0x325   :  { %vm4284_vm6 = vmand %vm4239_vm15, %vm5534_vm9  ;;  %1128 = vmax.xlane.f32.xlu1 %v1127_v24  ;;  %v755_v1 = vsub.s32 %v3854_v42, %v3771_v22  ;;  %v542_v24 = vmul.f32 0.35355338, %v4066_v36  ;;  %v759_v22 = vsub.s32 %v3854_v42, %v3777_v23 }
 0x326   :  { %vm4297_vm3 = vmand %vm812_vm11, %vm876_vm5  ;;  %vm5541_vm11 = vcmp.lt.s32.totalorder %v4157_v3, 16  ;;  %vm5542_vm5 = vcmp.ge.s32.totalorder %v4157_v3, 0  ;;  %v533_v3 = vmul.f32 0.35355338, %v3976_v11  ;;  %v753_v11 = vsub.s32 %v3854_v42, %v3779_v26 }
 0x327   :  { %vm4304_vm9 = vmand %vm813_vm7, %vm877_vm12  ;;  %vm5545_vm12 = vcmp.ge.s32.totalorder %v4113_v6, 0  ;;  %v4415_v17 = vsel %vm4284_vm6, %v534_v19, -1e+09 }
 0x328   :  { %vm4315_vm15 = vmand %vm5542_vm5, %vm5541_vm11  ;;  %vm5548_vm11 = vcmp.lt.s32.totalorder %v747_v40, 16  ;;  %vm5549_vm5 = vcmp.ge.s32.totalorder %v747_v40, 0  ;;  %v4356_v40 = vsel %vm4215_vm4, %v529_v59, -1e+09  ;;  %v4405_v59 = vpop.f32.mrb[36].mxu1 }
 0x329   :  { %vm4323_vm7 = vmand %vm5545_vm12, %vm860_vm2  ;;  %vm5552_vm12 = vcmp.eq.s32.totalorder %v3863_v46, 1  ;;  %v1133_v16 = vmax.f32 %v4356_v40, %v4360_v13  ;;  %v4411_v44 = vsel %vm4261_vm0, %v533_v3, -1e+09  ;;  %v448_v43 = vpop.f32.mrb[37].mxu1  ;;  %vm5574_vm0 = vcmp.ge.s32.totalorder %v4196_v4, 0 }
 0x32a   :  { %vm4336_vm2 = vmand %vm5549_vm5, %vm5548_vm11  ;;  %vm5558_vm5 = vcmp.lt.s32.totalorder %v4117_v14, 16  ;;  %v450_v4 = vpop.f32.mrb[38].mxu1 }
 0x32b   :  { %vm4344_vm13 = vmand %vm4297_vm3, %vm5552_vm12  ;;  %1134 = vmax.xlane.f32.xlu1 %v1133_v16  ;;  %v553_v3 = vmul.f32 0.35355338, %v450_v4  ;;  %v452_v19 = vpop.f32.mrb[39].mxu1  ;;  %v547_v4 = vmul.f32 0.35355338, %v4270_v20 }
 0x32c   :  { %vm5555_vm3 = vmmov %vm5552_vm12  ;;  %v554_v26 = vmul.f32 0.35355338, %v452_v19 }
 0x32d   :  { %vm4366_vm11 = vmand %vm4304_vm9, %vm5555_vm3  ;;  %vm815_vm9 = vcmp.ge.s32.totalorder %v4223_v53, 0  ;;  %vm879_vm3 = vcmp.lt.s32.totalorder %v4223_v53, 16  ;;  %v4489_v16 = vsel %vm4344_vm13, %v553_v3, -1e+09  ;;  %v548_v3 = vmul.f32 0.35355338, %v4291_v31 }
 0x32e   :  { %vm4374_vm12 = vmand %vm5559_vm1, %vm5558_vm5  ;;  %vm5566_vm5 = vcmp.lt.s32.totalorder %v4133_v8, 16  ;;  %vm5567_vm1 = vcmp.ge.s32.totalorder %v4133_v8, 0  ;;  %v4515_v14 = vsel %vm4366_vm11, %v554_v26, -1e+09  ;;  %v758_v8 = vsub.s32 %v3848_v38, %v3777_v23 }
 0x32f   :  { %vm5562_vm4 = vmmov %vm4233_vm8  ;;  %vm5563_vm8 = vcmp.eq.s32.totalorder %v3863_v46, 1  ;;  %v1169_v18 = vmax.f32 %v4489_v16, %v4515_v14  ;;  %vm5604_vm11 = vcmp.ge.s32.totalorder %v743_v47, 0  ;;  %v551_v26 = vmul.f32 0.35355338, %v4405_v59 }
 0x330   :  { %v4380_v51 = vsel %vm5562_vm4, %v550_v7, -1e+09  ;;  %vm4389_vm14 = vmand %vm4323_vm7, %vm5563_vm8  ;;  %vm5570_vm8 = vcmp.lt.s32.totalorder %v4153_v63, 16  ;;  %vm5571_vm7 = vcmp.ge.s32.totalorder %v4153_v63, 0  ;;  %v5575_v63 = vmov 0 }
 0x331   :  { %v1163_v5 = vmax.f32 %v4352_v39, %v4380_v51  ;;  %vm4401_vm4 = vmand %vm5567_vm1, %vm5566_vm5  ;;  %v541_v7 = vmul.f32 0.35355338, %v4048_v10  ;;  %v4493_v10 = vsel %vm4389_vm14, %v537_v57, -1e+09  ;;  %vm5598_vm14 = vcmp.ge.s32.totalorder %v4129_v37, 0  ;;  %v456_v57 = vpop.f32.mrb[40].mxu1 }
 0x332   :  { %vm4421_vm5 = vmand %vm5571_vm7, %vm5570_vm8  ;;  %vm5579_vm7 = vcmp.eq.s32.totalorder %v3863_v46, 1  ;;  %v458_v53 = vpop.f32.mrb[41].mxu1 }
 0x333   :  { %1164 = vmax.xlane.f32.xlu0 %v1163_v5  ;;  %vm4434_vm6 = vmand %vm5574_vm0, %vm878_vm10  ;;  %v1139_v5 = vmax.f32 %v4411_v44, %v4415_v17  ;;  %vm5589_vm0 = vcmp.ge.s32.totalorder %v4268_v62, 0  ;;  %v460_v20 = vpop.f32.mrb[42].mxu1  ;;  %v556_v31 = vmul.f32 0.35355338, %v458_v53  ;;  %v761_v53 = vsub.s32 %v3854_v42, %v3789_v28 }
 0x334   :  { %v5576_v63 = vsel %vm4434_vm6, 4294967295, %v5575_v63  ;;  %vm4442_vm8 = vmand %vm815_vm9, %vm879_vm3  ;;  %v462_v23 = vpop.f32.mrb[43].mxu1 }
 0x335   :  { %v5578_v45 = vsel %vm4442_vm8, 4294967295, %v5577_v45  ;;  %vm4450_vm1 = vmand %vm4374_vm12, %vm5579_vm7  ;;  %vm881_vm12 = vcmp.lt.s32.totalorder %v753_v11, 16  ;;  %1140 = vmax.xlane.f32.xlu1 %v1139_v5  ;;  %v557_v5 = vmul.f32 0.35355338, %v460_v20  ;;  %v558_v59 = vmul.f32 0.35355338, %v462_v23 }
 0x336   :  { %vm5582_vm9 = vmmov %vm5579_vm7  ;;  %v4497_v36 = vsel %vm4450_vm1, %v538_v60, -1e+09  ;;  %v466_v19 = vpop.f32.mrb[44].mxu1  ;;  %v764_v20 = vsub.s32 %v3848_v38, %v3797_v30 }
 0x337   :  { %vm4461_vm3 = vmand %vm4401_vm4, %vm5582_vm9  ;;  %vm870_vm4 = vcmp.lt.s32.totalorder %v4129_v37, 16  ;;  %vm871_vm9 = vcmp.lt.s32.totalorder %v743_v47, 16  ;;  %v1145_v60 = vmax.f32 %v4493_v10, %v4497_v36  ;;  %1170 = vmax.xlane.f32.xlu0 %v1169_v18 }
 0x338   :  { %vm5585_vm10 = vmmov %vm5579_vm7  ;;  %vm5588_vm7 = vcmp.lt.s32.totalorder %v4268_v62, 16  ;;  %v4545_v6 = vsel %vm4461_vm3, %v541_v7, -1e+09  ;;  %v756_v7 = vsub.s32 %v3848_v38, %v3785_v27 }
 0x339   :  { %vm4470_vm8 = vmand %vm4421_vm5, %vm5585_vm10  ;;  %vm5592_vm10 = vcmp.ge.s32.totalorder %v753_v11, 0  ;;  %1146 = vmax.xlane.f32.xlu1 %v1145_v60  ;;  %v552_v11 = vmul.f32 0.35355338, %v448_v43 }
 0x33a   :  { %vm4483_vm5 = vmand %vm5589_vm0, %vm5588_vm7  ;;  %vm5595_vm0 = vcmp.eq.s32.totalorder %v3863_v46, 1  ;;  %v4549_v35 = vsel %vm4470_vm8, %v542_v24, -1e+09  ;;  %v757_v24 = vsub.s32 %v3854_v42, %v3785_v27 }
 0x33b   :  { %vm4501_vm6 = vmand %vm5592_vm10, %vm881_vm12  ;;  %vm5622_vm10 = vnez %v5578_v45 }
 0x33c   :  { %vm4509_vm13 = vmand %vm4315_vm15, %vm5595_vm0 }
 0x33d   :  { %vm4519_vm1 = vmand %vm5598_vm14, %vm870_vm4  ;;  %vm818_vm4 = vcmp.ge.s32.totalorder %v754_v48, 0  ;;  %v4638_v37 = vsel %vm4509_vm13, %v551_v26, -1e+09  ;;  %vm5635_vm13 = vcmp.ge.s32.totalorder %v758_v8, 0  ;;  %v559_v26 = vmul.f32 0.35355338, %v466_v19 }
 0x33e   :  { %vm5601_vm12 = vmmov %vm5595_vm0 }
 0x33f   :  { %vm4529_vm15 = vmand %vm4336_vm2, %vm5601_vm12 }
 0x340   :  { %v5603_v61 = vsel %vm4529_vm15, 4294967295, %v5602_v61  ;;  %vm4537_vm7 = vmand %vm5604_vm11, %vm871_vm9  ;;  %vm886_vm15 = vcmp.lt.s32.totalorder %v758_v8, 16 }
 0x341   :  { %vm5607_vm2 = vmmov %vm5595_vm0  ;;  %vm882_vm0 = vcmp.lt.s32.totalorder %v754_v48, 16  ;;  %v1151_v48 = vmax.f32 %v4545_v6, %v4549_v35 }
 0x342   :  { %vm4555_vm9 = vmand %vm4483_vm5, %vm5607_vm2 }
 0x343   :  { %vm5610_vm3 = vmmov %vm5607_vm2  ;;  %v4616_v43 = vsel %vm4555_vm9, %v557_v5, -1e+09  ;;  %1152 = vmax.xlane.f32.xlu1 %v1151_v48  ;;  %vm823_vm9 = vcmp.ge.s32.totalorder %v759_v22, 0  ;;  %v468_v5 = vpop.f32.mrb[45].mxu1 }
 0x344   :  { %vm4565_vm8 = vmand %vm4519_vm1, %vm5610_vm3  ;;  %v560_v23 = vmul.f32 0.35355338, %v468_v5  ;;  %v470_v8 = vpop.f32.mrb[46].mxu1 }
 0x345   :  { %vm5613_vm5 = vmmov %vm5607_vm2 }
 0x346   :  { %vm4577_vm12 = vmand %vm4537_vm7, %vm5613_vm5 }
 0x347   :  { %vm4586_vm1 = vmand %vm818_vm4, %vm882_vm0  ;;  %vm5625_vm4 = vcmp.lt.s32.totalorder %v755_v1, 16  ;;  %vm5626_vm0 = vcmp.ge.s32.totalorder %v755_v1, 0  ;;  %v4624_v45 = vsel %vm4577_vm12, %v548_v3, -1e+09  ;;  %v555_v3 = vmul.f32 0.35355338, %v456_v57 }
 0x348   :  { %vm5618_vm7 = vmmov %vm5607_vm2  ;;  %vm5619_vm2 = vnez %v5576_v63  ;;  %v4620_v63 = vsel %vm4565_vm8, %v547_v4, -1e+09  ;;  %v760_v57 = vsub.s32 %v3848_v38, %v3789_v28 }
 0x349   :  { %vm4594_vm3 = vmand %vm5619_vm2, %vm5618_vm7  ;;  %v1160_v58 = vmax.f32 %v4620_v63, %v4624_v45 }
 0x34a   :  { %vm4602_vm14 = vmand %vm5622_vm10, %vm5613_vm5  ;;  %v4702_v62 = vsel %vm4594_vm3, %v555_v3, -1e+09  ;;  %vm888_vm3 = vcmp.lt.s32.totalorder %v760_v57, 16 }
 0x34b   :  { %vm947_vm11 = vmand %vm5626_vm0, %vm5625_vm4  ;;  %vm884_vm4 = vcmp.lt.s32.totalorder %v756_v7, 16  ;;  %vm885_vm0 = vcmp.lt.s32.totalorder %v757_v24, 16  ;;  %1161 = vmax.xlane.f32.xlu1 %v1160_v58  ;;  %v4706_v58 = vsel %vm4602_vm14, %v556_v31, -1e+09 }
 0x34c   :  { %vm5627_vm7 = vmmov %vm5613_vm5  ;;  %v1172_v27 = vmax.f32 %v4702_v62, %v4706_v58 }
 0x34d   :  { %vm1027_vm2 = vmand %vm4501_vm6, %vm5627_vm7 }
 0x34e   :  { %v4626_v1 = vsel %vm1027_vm2, %v558_v59, -1e+09  ;;  %vm5628_vm10 = vmmov %vm5613_vm5  ;;  %vm820_vm5 = vcmp.ge.s32.totalorder %v756_v7, 0  ;;  %v561_v7 = vmul.f32 0.35355338, %v470_v8 }
 0x34f   :  { %vm4632_vm6 = vmand %vm4586_vm1, %vm5628_vm10  ;;  %v1175_v60 = vmax.f32 %v4616_v43, %v4626_v1  ;;  %vm821_vm1 = vcmp.ge.s32.totalorder %v757_v24, 0  ;;  %v762_v24 = vsub.s32 %v3848_v38, %v3787_v34 }
 0x350   :  { %vm5631_vm8 = vmmov %vm5627_vm7  ;;  %vm5634_vm7 = vnez %v5603_v61  ;;  %v4678_v59 = vsel %vm4632_vm6, %v559_v26, -1e+09 }
 0x351   :  { %vm4644_vm12 = vmand %vm947_vm11, %vm5631_vm8  ;;  %v4650_v4 = vsel %vm5634_vm7, %v552_v11, -1e+09  ;;  %vm887_vm11 = vcmp.lt.s32.totalorder %v759_v22, 16  ;;  %1176 = vmax.xlane.f32.xlu0 %v1175_v60  ;;  %v472_v11 = vpop.f32.mrb[47].mxu1  ;;  %v763_v22 = vsub.s32 %v3854_v42, %v3787_v34  ;;  %vm889_vm7 = vcmp.lt.s32.totalorder %v761_v53, 16 }
 0x352   :  { %vm4656_vm2 = vmand %vm5635_vm13, %vm886_vm15  ;;  %v1166_v60 = vmax.f32 %v4638_v37, %v4650_v4  ;;  %v562_v19 = vmul.f32 0.35355338, %v472_v11  ;;  %v4692_v28 = vsel %vm4644_vm12, %v560_v23, -1e+09  ;;  %vm824_vm12 = vcmp.ge.s32.totalorder %v760_v57, 0  ;;  %v476_v3 = vpop.f32.mrb[48].mxu1 }
 0x353   :  { %vm4662_vm10 = vmand %vm820_vm5, %vm884_vm4  ;;  %v1178_v47 = vmax.f32 %v4678_v59, %v4692_v28  ;;  %v563_v5 = vmul.f32 0.35355338, %v476_v3  ;;  %v478_v61 = vpop.f32.mrb[49].mxu1  ;;  %v765_v11 = vsub.s32 %v3854_v42, %v3797_v30 }
 0x354   :  { %vm4670_vm15 = vmand %vm821_vm1, %vm885_vm0  ;;  %1167 = vmax.xlane.f32.xlu1 %v1166_v60  ;;  %vm825_vm0 = vcmp.ge.s32.totalorder %v761_v53, 0  ;;  %v564_v21 = vmul.f32 0.35355338, %v478_v61 }
 0x355   :  { %vm4682_vm5 = vmand %vm823_vm9, %vm887_vm11  ;;  %1179 = vmax.xlane.f32.xlu0 %v1178_v47 }
 0x356   :  { %vm5644_vm6 = vmmov %vm5631_vm8 }
 0x357   :  { %vm1030_vm4 = vmand %vm4662_vm10, %vm5644_vm6  ;;  %vm826_vm10 = vcmp.ge.s32.totalorder %v762_v24, 0 }
 0x358   :  { %vm5645_vm9 = vmmov %vm5644_vm6  ;;  %v4714_v26 = vsel %vm1030_vm4, %v561_v7, -1e+09  ;;  %1173 = vmax.xlane.f32.xlu1 %v1172_v27  ;;  %v480_v7 = vpop.f32.mrb[50].mxu1 }
 0x359   :  { %vm1031_vm8 = vmand %vm4670_vm15, %vm5645_vm9  ;;  %vm890_vm15 = vcmp.lt.s32.totalorder %v762_v24, 16  ;;  %v565_v60 = vmul.f32 0.35355338, %v480_v7  ;;  %v482_v57 = vpop.f32.mrb[51].mxu1  ;;  %vm891_vm9 = vcmp.lt.s32.totalorder %v763_v22, 16  ;;  %v769_v7 = vsub.s32 %v3854_v42, %v3799_v33 }
 0x35a   :  { %v4716_v34 = vsel %vm1031_vm8, %v562_v19, -1e+09  ;;  %vm5646_vm1 = vmmov %vm5644_vm6  ;;  %vm827_vm6 = vcmp.ge.s32.totalorder %v763_v22, 0  ;;  %v766_v19 = vsub.s32 %v3848_v38, %v3795_v29  ;;  %v566_v47 = vmul.f32 0.35355338, %v482_v57  ;;  %v486_v31 = vpop.f32.mrb[52].mxu1 }
 0x35b   :  { %vm4722_vm14 = vmand %vm4656_vm2, %vm5646_vm1  ;;  %v1181_v23 = vmax.f32 %v4714_v26, %v4716_v34  ;;  %v767_v22 = vsub.s32 %v3854_v42, %v3795_v29  ;;  %v488_v61 = vpop.f32.mrb[53].mxu1 }
 0x35c   :  { %vm5649_vm13 = vmmov %vm5646_vm1  ;;  %v4750_v48 = vsel %vm4722_vm14, %v563_v5, -1e+09  ;;  %vm828_vm14 = vcmp.ge.s32.totalorder %v764_v20, 0  ;;  %v568_v8 = vmul.f32 0.35355338, %v488_v61 }
 0x35d   :  { %vm4732_vm11 = vmand %vm4682_vm5, %vm5649_vm13  ;;  %1182 = vmax.xlane.f32.xlu0 %v1181_v23  ;;  %v768_v23 = vsub.s32 %v3848_v38, %v3799_v33 }
 0x35e   :  { %vm4741_vm2 = vmand %vm824_vm12, %vm888_vm3  ;;  %v4758_v53 = vsel %vm4732_vm11, %v564_v21, -1e+09  ;;  %v490_v21 = vpop.f32.mrb[54].mxu1 }
 0x35f   :  { %vm953_vm5 = vmand %vm825_vm0, %vm889_vm7  ;;  %v1184_v30 = vmax.f32 %v4750_v48, %v4758_v53  ;;  %vm892_vm0 = vcmp.lt.s32.totalorder %v764_v20, 16  ;;  %v567_v20 = vmul.f32 0.35355338, %v486_v31 }
 0x360   :  { %vm954_vm4 = vmand %vm826_vm10, %vm890_vm15  ;;  %vm829_vm10 = vcmp.ge.s32.totalorder %v765_v11, 0  ;;  %vm893_vm15 = vcmp.lt.s32.totalorder %v765_v11, 16  ;;  %v569_v11 = vmul.f32 0.35355338, %v490_v21 }
 0x361   :  { %vm5654_vm8 = vmmov %vm5646_vm1  ;;  %1185 = vmax.xlane.f32.xlu1 %v1184_v30 }
 0x362   :  { %vm1034_vm12 = vmand %vm4741_vm2, %vm5654_vm8 }
 0x363   :  { %vm5655_vm3 = vmmov %vm5646_vm1  ;;  %v4768_v24 = vsel %vm1034_vm12, %v565_v60, -1e+09  ;;  %v492_v60 = vpop.f32.mrb[55].mxu1 }
 0x364   :  { %vm1035_vm1 = vmand %vm953_vm5, %vm5655_vm3 }
 0x365   :  { %v4770_v18 = vsel %vm1035_vm1, %v566_v47, -1e+09  ;;  %vm955_vm7 = vmand %vm827_vm6, %vm891_vm9  ;;  %vm894_vm9 = vcmp.lt.s32.totalorder %v766_v19, 16 }
 0x366   :  { %5656 = vst [vmem:[#allocation16_spill] sm:$0xff] %v4770_v18  ;;  %vm5657_vm13 = vmmov %vm5655_vm3  ;;  %v1187_v3 = vmax.f32 %v4768_v24, %v4770_v18 }
 0x367   :  { %vm4775_vm11 = vmand %vm954_vm4, %vm5657_vm13  ;;  %vm830_vm4 = vcmp.ge.s32.totalorder %v766_v19, 0  ;;  %v570_v19 = vmul.f32 0.35355338, %v492_v60  ;;  %vm895_vm13 = vcmp.lt.s32.totalorder %v767_v22, 16 }
 0x368   :  { %vm4781_vm2 = vmand %vm828_vm14, %vm892_vm0  ;;  %1188 = vmax.xlane.f32.xlu0 %v1187_v3  ;;  %v4795_v29 = vsel %vm4775_vm11, %v567_v20, -1e+09  ;;  %vm832_vm11 = vcmp.ge.s32.totalorder %v768_v23, 0  ;;  %v496_v3 = vpop.f32.mrb[56].mxu1 }
 0x369   :  { %vm5662_vm5 = vmmov %vm5655_vm3  ;;  %v571_v31 = vmul.f32 0.35355338, %v496_v3  ;;  %v498_v5 = vpop.f32.mrb[57].mxu1 }
 0x36a   :  { %vm1037_vm6 = vmand %vm955_vm7, %vm5662_vm5  ;;  %vm831_vm7 = vcmp.ge.s32.totalorder %v767_v22, 0  ;;  %v772_v22 = vsub.s32 %v3848_v38, %v3807_v32  ;;  %v572_v20 = vmul.f32 0.35355338, %v498_v5  ;;  %v500_v61 = vpop.f32.mrb[58].mxu1 }
 0x36b   :  { %vm957_vm8 = vmand %vm829_vm10, %vm893_vm15  ;;  %v4801_v57 = vsel %vm1037_vm6, %v568_v8, -1e+09  ;;  %vm896_vm10 = vcmp.lt.s32.totalorder %v768_v23, 16  ;;  %vm833_vm15 = vcmp.ge.s32.totalorder %v769_v7, 0  ;;  %v773_v23 = vsub.s32 %v3854_v42, %v3807_v32 }
 0x36c   :  { %vm5663_vm12 = vmmov %vm5655_vm3  ;;  %v1190_v47 = vmax.f32 %v4795_v29, %v4801_v57  ;;  %v573_v21 = vmul.f32 0.35355338, %v500_v61 }
 0x36d   :  { %vm1038_vm3 = vmand %vm4781_vm2, %vm5663_vm12  ;;  %vm897_vm2 = vcmp.lt.s32.totalorder %v769_v7, 16  ;;  %v502_v7 = vpop.f32.mrb[59].mxu1 }
 0x36e   :  { %vm958_vm1 = vmand %vm830_vm4, %vm894_vm9  ;;  %v4805_v30 = vsel %vm1038_vm3, %v569_v11, -1e+09  ;;  %1191 = vmax.xlane.f32.xlu1 %v1190_v47  ;;  %v574_v60 = vmul.f32 0.35355338, %v502_v7  ;;  %v4837_v3 = vpop.f32.mrb[60].mxu1 }
 0x36f   :  { %5664 = vst [vmem:[#allocation17_spill] sm:$0xff] %v4805_v30  ;;  %vm5665_vm14 = vmmov %vm5662_vm5 }
 0x370   :  { %vm1039_vm0 = vmand %vm957_vm8, %vm5665_vm14 }
 0x371   :  { %v4809_v33 = vsel %vm1039_vm0, %v570_v19, -1e+09  ;;  %vm1040_vm6 = vmand %vm958_vm1, %vm5662_vm5 }
 0x372   :  { %5666 = vst [vmem:[#allocation18_spill] sm:$0xff] %v4809_v33  ;;  %v1193_v27 = vmax.f32 %v4805_v30, %v4809_v33  ;;  %vm959_vm4 = vmand %vm831_vm7, %vm895_vm13  ;;  %v4819_v8 = vsel %vm1040_vm6, %v571_v31, -1e+09  ;;  %vm836_vm13 = vcmp.ge.s32.totalorder %v772_v22, 0  ;;  %v4839_v31 = vpop.f32.mrb[61].mxu1  ;;  %v1114_v7 = vpop.xlane.xlu0 %1113 }
 0x373   :  { %vm960_vm9 = vmand %vm832_vm11, %vm896_vm10  ;;  %vm900_vm11 = vcmp.lt.s32.totalorder %v772_v22, 16  ;;  %vm837_vm10 = vcmp.ge.s32.totalorder %v773_v23, 0  ;;  %v510_v5 = vpop.f32.mrb[62].mxu1 }
 0x374   :  { %1194 = vmax.xlane.f32.xlu0 %v1193_v27  ;;  %vm961_vm8 = vmand %vm833_vm15, %vm897_vm2  ;;  %vm901_vm15 = vcmp.lt.s32.totalorder %v773_v23, 16  ;;  %v512_v61 = vpop.f32.mrb[63].mxu1 }
 0x375   :  { %vm5667_vm12 = vmmov %vm5662_vm5  ;;  %v578_v22 = vmul.f32 0.35355338, %v512_v61 }
 0x376   :  { %vm1041_vm3 = vmand %vm959_vm4, %vm5667_vm12 }
 0x377   :  { %v4823_v11 = vsel %vm1041_vm3, %v572_v20, -1e+09  ;;  %vm5668_vm1 = vmmov %vm5662_vm5  ;;  %v577_v20 = vmul.f32 0.35355338, %v510_v5 }
 0x378   :  { %vm1042_vm14 = vmand %vm960_vm9, %vm5668_vm1  ;;  %v1196_v19 = vmax.f32 %v4819_v8, %v4823_v11 }
 0x379   :  { %v4829_v47 = vsel %vm1042_vm14, %v573_v21, -1e+09  ;;  %vm5670_vm0 = vmmov %vm5668_vm1 }
 0x37a   :  { %5669 = vst [vmem:[#allocation19_spill] sm:$0xff] %v4829_v47  ;;  %vm1043_vm7 = vmand %vm961_vm8, %vm5670_vm0  ;;  %1197 = vmax.xlane.f32.xlu1 %v1196_v19  ;;  %v1209_v19 = vsub.f32 %v3892_v41, %v1114_v7 }
 0x37b   :  { %v4833_v32 = vsel %vm1043_vm7, %v574_v60, -1e+09  ;;  %vm964_vm2 = vmand %vm836_vm13, %vm900_vm11  ;;  %v1208_v60 = vsub.f32 %v3888_v50, %v1114_v7 }
 0x37c   :  { %5671 = vst [vmem:[#allocation20_spill] sm:$0xff] %v4833_v32  ;;  %v1199_v27 = vmax.f32 %v4829_v47, %v4833_v32  ;;  %vm965_vm5 = vmand %vm837_vm10, %vm901_vm15  ;;  %v1274_v5 = vmul.f32 1.442695, %v1209_v19  ;;  %v5674_v19 = vld [vmem:[#allocation5_spill] sm:$0xff] }
 0x37d   :  { %vm5672_vm6 = vmmov %vm5670_vm0  ;;  %v1272_v32 = vmul.f32 1.442695, %v1208_v60 }
 0x37e   :  { %1200 = vmax.xlane.f32.xlu0 %v1199_v27  ;;  %vm1046_vm4 = vmand %vm964_vm2, %vm5672_vm6  ;;  %v1117_v27 = vpop.xlane.xlu1 %1116  ;;  %vm1863_vm2 = vcmask 1043456  }
 0x37f   :  { %v4843_v21 = vsel %vm1046_vm4, %v577_v20, -1e+09  ;;  %vm5673_vm9 = vmmov %vm5670_vm0  ;;  %v1210_v47 = vsub.f32 %v3898_v54, %v1117_v27  ;;  %v1211_v33 = vsub.f32 %v3900_v56, %v1117_v27  ;;  %3143 = vpow2.f32 %v1272_v32 }
 0x380   :  { %vm1047_vm8 = vmand %vm965_vm5, %vm5673_vm9  ;;  %3145 = vpow2.f32 %v1274_v5  ;;  %vm5731_vm5 = vcmask 64512  }
 0x381   :  { %v4847_v23 = vsel %vm1047_vm8, %v578_v22, -1e+09  ;;  %v1276_v20 = vmul.f32 1.442695, %v1210_v47  ;;  %v1278_v61 = vmul.f32 1.442695, %v1211_v33  ;;  %v1120_v22 = vpop.xlane.xlu0 %1119  ;;  %vm5689_vm13 = vmmov %vm5672_vm6 }
 0x382   :  { %v1212_v30 = vsub.f32 %v3918_v55, %v1120_v22  ;;  %v1213_v50 = vsub.f32 %v3920_v49, %v1120_v22  ;;  %v1123_v18 = vpop.xlane.xlu1 %1122  ;;  %vm5690_vm10 = vmmov %vm5672_vm6 }
 0x383   :  { %3147 = vpow2.f32 %v1276_v20  ;;  %v1214_v60 = vsub.f32 %v3928_v52, %v1123_v18  ;;  %v1215_v54 = vsub.f32 %v5674_v19, %v1123_v18  ;;  %v5676_v52 = vld [vmem:[#allocation7_spill] sm:$0xff]  ;;  %vm5732_vm6 = vmmov %vm5731_vm5 }
 0x384   :  { %3149 = vpow2.f32 %v1278_v61  ;;  %v1280_v41 = vmul.f32 1.442695, %v1212_v30  ;;  %v1282_v7 = vmul.f32 1.442695, %v1213_v50  ;;  %v5675_v30 = vld [vmem:[#allocation6_spill] sm:$0xff]  ;;  %vm5733_vm4 = vmmov %vm5731_vm5 }
 0x385   :  { %v1284_v56 = vmul.f32 1.442695, %v1214_v60  ;;  %v1286_v32 = vmul.f32 1.442695, %v1215_v54  ;;  %v1126_v55 = vpop.xlane.xlu0 %1125  ;;  %vm5734_vm9 = vmmov %vm5733_vm4 }
 0x386   :  { %3151 = vpow2.f32 %v1280_v41  ;;  %v1637_v33 = vpop.permute.xlu1 %1636  ;;  %v1216_v5 = vsub.f32 %v5675_v30, %v1126_v55  ;;  %v1217_v20 = vsub.f32 %v5676_v52, %v1126_v55  ;;  %vm5735_vm8 = vmmov %vm5733_vm4 }
 0x387   :  { %3153 = vpow2.f32 %v1282_v7  ;;  %2835 = vmatpush3.bf16.msra.mxu0 %v1637_v33 }
 0x388   :  { %3155 = vpow2.f32 %v1284_v56  ;;  %v1288_v22 = vmul.f32 1.442695, %v1216_v5  ;;  %v1290_v50 = vmul.f32 1.442695, %v1217_v20  ;;  %v5683_v5 = vld [vmem:[#allocation2_spill] sm:$0xff] }
 0x389   :  { %v4857_v47 = vpop.eup %3143  ;;  %3157 = vpow2.f32 %v1286_v32 }
 0x38a   :  { %v4859_v27 = vpop.eup %3145  ;;  %3159 = vpow2.f32 %v1288_v22  ;;  %v1132_v52 = vpop.xlane.xlu0 %1131 }
 0x38b   :  { %v1400_v18 = vadd.f32 %v4859_v27, %v4857_v47  ;;  %3161 = vpow2.f32 %v1290_v50  ;;  %v5685_v50 = vld [vmem:[#allocation11_spill] sm:$0xff] }
 0x38d   :  { %v4861_v49 = vpop.eup %3147  ;;  %1401 = vadd.xlane.f32.xlu1 %v1400_v18  ;;  %v5684_v18 = vld [vmem:[#allocation10_spill] sm:$0xff] }
 0x38e   :  { %v4867_v61 = vpop.eup %3149 }
 0x38f   :  { %v1403_v41 = vadd.f32 %v4867_v61, %v4861_v49 }
 0x390   :  { %v4871_v7 = vpop.eup %3151 }
 0x391   :  { %1404 = vadd.xlane.f32.xlu0 %v1403_v41  ;;  %5677 = vst [vmem:[#allocation5_spill] sm:$0xff] %v4871_v7  ;;  %v4873_v60 = vpop.eup %3153 }
 0x392   :  { %5678 = vst [vmem:[#allocation6_spill] sm:$0xff] %v4873_v60  ;;  %v4875_v19 = vpop.eup %3155  ;;  %v1406_v54 = vadd.f32 %v4873_v60, %v4871_v7  ;;  %v1138_v20 = vpop.xlane.xlu0 %1137 }
 0x393   :  { %5679 = vst [vmem:[#allocation7_spill] sm:$0xff] %v4875_v19  ;;  %v4879_v56 = vpop.eup %3157  ;;  %v1224_v22 = vsub.f32 %v5684_v18, %v1138_v20  ;;  %v1225_v41 = vsub.f32 %v5685_v50, %v1138_v20  ;;  %v575_v20 = vmul.f32 0.35355338, %v4837_v3  ;;  %v576_v50 = vmul.f32 0.35355338, %v4839_v31 }
 0x394   :  { %5680 = vst [vmem:[#allocation21_spill] sm:$0xff] %v4879_v56  ;;  %v1409_v32 = vadd.f32 %v4879_v56, %v4875_v19  ;;  %v4883_v33 = vpop.eup %3159 }
 0x395   :  { %1407 = vadd.xlane.f32.xlu0 %v1406_v54  ;;  %5681 = vst [vmem:[#allocation22_spill] sm:$0xff] %v4883_v33  ;;  %v4885_v55 = vpop.eup %3161  ;;  %v5686_v54 = vld [vmem:[#allocation4_spill] sm:$0xff]  ;;  %v1304_v19 = vmul.f32 1.442695, %v1224_v22  ;;  %v1306_v60 = vmul.f32 1.442695, %v1225_v41 }
 0x396   :  { %5682 = vst [vmem:[#allocation23_spill] sm:$0xff] %v4885_v55  ;;  %v1412_v30 = vadd.f32 %v4885_v55, %v4883_v33  ;;  %v770_v7 = vsub.s32 %v3848_v38, %v5686_v54  ;;  %v5688_v38 = vld [vmem:[#allocation9_spill] sm:$0xff] }
 0x397   :  { %3163 = vpow2.f32 %v1304_v19  ;;  %v1221_v33 = vsub.f32 %v5688_v38, %v1132_v52 }
 0x398   :  { %vm834_vm12 = vcmp.ge.s32.totalorder %v770_v7, 0  ;;  %vm898_vm3 = vcmp.lt.s32.totalorder %v770_v7, 16  ;;  %3165 = vpow2.f32 %v1306_v60 }
 0x399   :  { %1410 = vadd.xlane.f32.xlu0 %v1409_v32  ;;  %v771_v32 = vsub.s32 %v3854_v42, %v5686_v54  ;;  %vm962_vm0 = vmand %vm834_vm12, %vm898_vm3 }
 0x39a   :  { %vm1044_vm11 = vmand %vm962_vm0, %vm5689_vm13 }
 0x39b   :  { %vm835_vm1 = vcmp.ge.s32.totalorder %v771_v32, 0  ;;  %vm899_vm14 = vcmp.lt.s32.totalorder %v771_v32, 16  ;;  %v4907_v54 = vsel %vm1044_vm11, %v575_v20, -1e+09  ;;  %vm5736_vm12 = vmmov %vm5733_vm4 }
 0x39c   :  { %vm963_vm7 = vmand %vm835_vm1, %vm899_vm14 }
 0x39d   :  { %1413 = vadd.xlane.f32.xlu0 %v1412_v30  ;;  %v1144_v30 = vpop.xlane.xlu0 %1143  ;;  %vm1045_vm15 = vmand %vm963_vm7, %vm5690_vm10 }
 0x39e   :  { %1638 = vrot.lane.b32.xlu1 %v5683_v5, %s3372_s15  ;;  %v5687_v5 = vld [vmem:[#allocation8_spill] sm:$0xff]  ;;  %v4909_v31 = vsel %vm1045_vm15, %v576_v50, -1e+09  ;;  %vm5737_vm3 = vmmov %vm5733_vm4 }
 0x39f   :  { %v1220_v18 = vsub.f32 %v5687_v5, %v1132_v52  ;;  %5691 = vst [vmem:[#allocation2_spill] sm:$0xff] %v4909_v31  ;;  %v1298_v52 = vmul.f32 1.442695, %v1221_v33  ;;  %v5692_v5 = vld [vmem:[#allocation12_spill] sm:$0xff]  ;;  %v5694_v33 = vld [vmem:[#allocation13_spill] sm:$0xff]  ;;  %vm5738_vm1 = vmmov %vm5737_vm3 }
 0x3a0   :  { %v1228_v38 = vsub.f32 %v5692_v5, %v1144_v30  ;;  %vm5739_vm14 = vmmov %vm5738_vm1 }
 0x3a1   :  { %v1296_v19 = vmul.f32 1.442695, %v1220_v18  ;;  %v4914_v46 = vpop.eup %3163  ;;  %v1202_v18 = vmax.f32 %v4907_v54, %v4909_v31  ;;  %vm5740_vm0 = vmmov %vm5738_vm1 }
 0x3a2   :  { %v1150_v60 = vpop.xlane.xlu0 %1149  ;;  %5693 = vst [vmem:[#allocation10_spill] sm:$0xff] %v4914_v46  ;;  %v4918_v50 = vpop.eup %3165  ;;  %vm5741_vm7 = vmmov %vm5740_vm0 }
 0x3a3   :  { %vm5742_vm13 = vmmov %vm5740_vm0 }
 0x3a4   :  { %vm5743_vm11 = vmmov %vm5740_vm0 }
 0x3a5   :  { %vm5744_vm10 = vmmov %vm5740_vm0 }
 0x3a6   :  { %vm5745_vm15 = vmmov %vm5740_vm0 }
 0x3b2   :  { %v1129_v42 = vpop.xlane.xlu1 %1128 }
 0x3b3   :  { %v1218_v22 = vsub.f32 %v4274_v15, %v1129_v42  ;;  %v1219_v7 = vsub.f32 %v4278_v12, %v1129_v42  ;;  %v1156_v42 = vpop.xlane.xlu0 %1155 }
 0x3b5   :  { %v1292_v41 = vmul.f32 1.442695, %v1218_v22  ;;  %v1294_v3 = vmul.f32 1.442695, %v1219_v7  ;;  %v1229_v22 = vsub.f32 %v5694_v33, %v1144_v30 }
 0x3b7   :  { %3167 = vpow2.f32 %v1292_v41  ;;  %v4927_v30 = vpop.xlane.xlu0 %1158 }
 0x3b8   :  { %v1135_v32 = vpop.xlane.xlu1 %1134  ;;  %3169 = vpow2.f32 %v1294_v3  ;;  %v1312_v3 = vmul.f32 1.442695, %v1228_v38  ;;  %v1236_v38 = vsub.f32 %v4186_v0, %v1156_v42 }
 0x3b9   :  { %v1222_v15 = vsub.f32 %v4356_v40, %v1135_v32  ;;  %v1223_v12 = vsub.f32 %v4360_v13, %v1135_v32  ;;  %3171 = vpow2.f32 %v1296_v19  ;;  %v5695_v32 = vld [vmem:[#allocation14_spill] sm:$0xff]  ;;  %v1424_v19 = vadd.f32 %v4918_v50, %v4914_v46 }
 0x3ba   :  { %3173 = vpow2.f32 %v1298_v52  ;;  %v1232_v5 = vsub.f32 %v5695_v32, %v1150_v60  ;;  %v5696_v52 = vld [vmem:[#allocation15_spill] sm:$0xff] }
 0x3bb   :  { %v1300_v20 = vmul.f32 1.442695, %v1222_v15  ;;  %v1302_v7 = vmul.f32 1.442695, %v1223_v12  ;;  %v1314_v15 = vmul.f32 1.442695, %v1229_v22  ;;  %v1233_v31 = vsub.f32 %v5696_v52, %v1150_v60 }
 0x3bc   :  { %v1237_v60 = vsub.f32 %v4201_v25, %v1156_v42 }
 0x3bd   :  { %3175 = vpow2.f32 %v1300_v20  ;;  %v1322_v20 = vmul.f32 1.442695, %v1233_v31 }
 0x3be   :  { %3177 = vpow2.f32 %v1302_v7  ;;  %v1330_v0 = vmul.f32 1.442695, %v1237_v60 }
 0x3c0   :  { %v4937_v33 = vpop.xlane.xlu0 %1164 }
 0x3c2   :  { %v1141_v40 = vpop.xlane.xlu1 %1140  ;;  %1203 = vmax.xlane.f32.xlu1 %v1202_v18 }
 0x3c3   :  { %v1226_v13 = vsub.f32 %v4411_v44, %v1141_v40  ;;  %v1227_v41 = vsub.f32 %v4415_v17, %v1141_v40  ;;  %v4931_v44 = vpop.eup %3167  ;;  %v1320_v17 = vmul.f32 1.442695, %v1232_v5  ;;  %v1328_v40 = vmul.f32 1.442695, %v1236_v38 }
 0x3c4   :  { %v4934_v18 = vpop.eup %3169 }
 0x3c5   :  { %v1308_v55 = vmul.f32 1.442695, %v1226_v13  ;;  %v1310_v56 = vmul.f32 1.442695, %v1227_v41  ;;  %v4941_v7 = vpop.eup %3171  ;;  %v4947_v13 = vpop.xlane.xlu0 %1170 }
 0x3c6   :  { %v4929_v12 = vpop.xlane.xlu1 %1146  ;;  %1425 = vadd.xlane.f32.xlu1 %v1424_v19 }
 0x3c7   :  { %3179 = vpow2.f32 %v1308_v55  ;;  %v4945_v55 = vpop.eup %3173 }
 0x3c8   :  { %3181 = vpow2.f32 %v1310_v56  ;;  %v1415_v56 = vadd.f32 %v4934_v18, %v4931_v44  ;;  %v4949_v25 = vpop.eup %3175 }
 0x3c9   :  { %3183 = vpow2.f32 %v1312_v3  ;;  %v1418_v3 = vadd.f32 %v4945_v55, %v4941_v7  ;;  %v4955_v32 = vpop.eup %3177 }
 0x3ca   :  { %3185 = vpow2.f32 %v1314_v15  ;;  %1416 = vadd.xlane.f32.xlu0 %v1415_v56  ;;  %v1421_v60 = vadd.f32 %v4955_v32, %v4949_v25 }
 0x3cb   :  { %3187 = vpow2.f32 %v1320_v17 }
 0x3cc   :  { %3189 = vpow2.f32 %v1322_v20 }
 0x3cd   :  { %3191 = vpow2.f32 %v1328_v40 }
 0x3ce   :  { %1419 = vadd.xlane.f32.xlu0 %v1418_v3  ;;  %3193 = vpow2.f32 %v1330_v0 }
 0x3d0   :  { %v4939_v22 = vpop.xlane.xlu1 %1152 }
 0x3d1   :  { %v4957_v5 = vpop.eup %3179 }
 0x3d2   :  { %v4959_v15 = vpop.eup %3181  ;;  %1422 = vadd.xlane.f32.xlu0 %v1421_v60 }
 0x3d3   :  { %v1427_v56 = vadd.f32 %v4959_v15, %v4957_v5 }
 0x3d5   :  { %1428 = vadd.xlane.f32.xlu1 %v1427_v56 }
 0x3d8   :  { %v1162_v31 = vpop.xlane.xlu1 %1161 }
 0x3d9   :  { %v1240_v42 = vsub.f32 %v4620_v63, %v1162_v31  ;;  %v1241_v41 = vsub.f32 %v4624_v45, %v1162_v31  ;;  %v4963_v63 = vpop.eup %3183 }
 0x3da   :  { %v4971_v40 = vpop.eup %3185 }
 0x3db   :  { %v1336_v19 = vmul.f32 1.442695, %v1240_v42  ;;  %v1338_v17 = vmul.f32 1.442695, %v1241_v41  ;;  %v4973_v3 = vpop.eup %3187 }
 0x3dc   :  { %v4979_v46 = vpop.eup %3189 }
 0x3dd   :  { %3195 = vpow2.f32 %v1336_v19  ;;  %v4983_v60 = vpop.eup %3191 }
 0x3de   :  { %v4961_v52 = vpop.xlane.xlu0 %1176  ;;  %3197 = vpow2.f32 %v1338_v17 }
 0x3e1   :  { %v1168_v38 = vpop.xlane.xlu1 %1167 }
 0x3e2   :  { %v1244_v45 = vsub.f32 %v4638_v37, %v1168_v38  ;;  %v1245_v20 = vsub.f32 %v4650_v4, %v1168_v38  ;;  %v1180_v42 = vpop.xlane.xlu0 %1179  ;;  %v1430_v38 = vadd.f32 %v4971_v40, %v4963_v63 }
 0x3e3   :  { %v1252_v19 = vsub.f32 %v4678_v59, %v1180_v42  ;;  %v1253_v17 = vsub.f32 %v4692_v28, %v1180_v42 }
 0x3e4   :  { %v1344_v0 = vmul.f32 1.442695, %v1244_v45  ;;  %v1346_v31 = vmul.f32 1.442695, %v1245_v20  ;;  %1431 = vadd.xlane.f32.xlu1 %v1430_v38 }
 0x3e5   :  { %v1174_v41 = vpop.xlane.xlu1 %1173  ;;  %v1362_v59 = vmul.f32 1.442695, %v1253_v17 }
 0x3e6   :  { %v1248_v37 = vsub.f32 %v4702_v62, %v1174_v41  ;;  %v1249_v4 = vsub.f32 %v4706_v58, %v1174_v41  ;;  %3199 = vpow2.f32 %v1344_v0  ;;  %v1436_v62 = vadd.f32 %v4979_v46, %v4973_v3  ;;  %v4987_v58 = vpop.eup %3193 }
 0x3e7   :  { %3201 = vpow2.f32 %v1346_v31  ;;  %v1360_v41 = vmul.f32 1.442695, %v1252_v19  ;;  %v1442_v28 = vadd.f32 %v4987_v58, %v4983_v60 }
 0x3e8   :  { %v1352_v45 = vmul.f32 1.442695, %v1248_v37  ;;  %v1354_v20 = vmul.f32 1.442695, %v1249_v4  ;;  %1437 = vadd.xlane.f32.xlu1 %v1436_v62  ;;  %v4991_v37 = vpop.eup %3195 }
 0x3e9   :  { %v4995_v42 = vpop.eup %3197 }
 0x3ea   :  { %3203 = vpow2.f32 %v1352_v45  ;;  %v1448_v45 = vadd.f32 %v4995_v42, %v4991_v37 }
 0x3eb   :  { %3205 = vpow2.f32 %v1354_v20 }
 0x3ec   :  { %3207 = vpow2.f32 %v1360_v41  ;;  %1443 = vadd.xlane.f32.xlu1 %v1442_v28 }
 0x3ed   :  { %3209 = vpow2.f32 %v1362_v59 }
 0x3ee   :  { %v1186_v56 = vpop.xlane.xlu1 %1185 }
 0x3ef   :  { %v1256_v0 = vsub.f32 %v4750_v48, %v1186_v56  ;;  %v1257_v31 = vsub.f32 %v4758_v53, %v1186_v56 }
 0x3f0   :  { %v4997_v19 = vpop.eup %3199  ;;  %1449 = vadd.xlane.f32.xlu1 %v1448_v45 }
 0x3f1   :  { %v1368_v4 = vmul.f32 1.442695, %v1256_v0  ;;  %v1370_v38 = vmul.f32 1.442695, %v1257_v31  ;;  %v5001_v17 = vpop.eup %3201 }
 0x3f2   :  { %v1454_v0 = vadd.f32 %v5001_v17, %v4997_v19 }
 0x3f3   :  { %3211 = vpow2.f32 %v1368_v4 }
 0x3f4   :  { %3213 = vpow2.f32 %v1370_v38  ;;  %v5005_v41 = vpop.eup %3203  ;;  %1455 = vadd.xlane.f32.xlu1 %v1454_v0 }
 0x3f5   :  { %v5009_v59 = vpop.eup %3205 }
 0x3f6   :  { %v5011_v31 = vpop.eup %3207  ;;  %v1460_v28 = vadd.f32 %v5009_v59, %v5005_v41 }
 0x3f7   :  { %v5017_v4 = vpop.eup %3209 }
 0x3f8   :  { %1461 = vadd.xlane.f32.xlu1 %v1460_v28 }
 0x3fb   :  { %v1192_v48 = vpop.xlane.xlu1 %1191 }
 0x3fc   :  { %v1260_v53 = vsub.f32 %v4795_v29, %v1192_v48  ;;  %v1261_v20 = vsub.f32 %v4801_v57, %v1192_v48  ;;  %v5697_v29 = vld [vmem:[#allocation3_spill] sm:$0xff] }
 0x3fd   :  { %1654 = vrot.lane.b32.xlu0 %v5697_v29, %s3372_s15 }
 0x3fe   :  { %v1376_v56 = vmul.f32 1.442695, %v1260_v53  ;;  %v1378_v62 = vmul.f32 1.442695, %v1261_v20  ;;  %v5021_v20 = vpop.eup %3211 }
 0x3ff   :  { %5698 = vst [vmem:[#allocation11_spill] sm:$0xff] %v5021_v20 }
 0x400   :  { %3215 = vpow2.f32 %v1376_v56  ;;  %v1466_v56 = vadd.f32 %v5017_v4, %v5011_v31 }
 0x401   :  { %3217 = vpow2.f32 %v1378_v62  ;;  %v5025_v62 = vpop.eup %3213 }
 0x402   :  { %1467 = vadd.xlane.f32.xlu1 %v1466_v56 }
 0x407   :  { %v1198_v57 = vpop.xlane.xlu1 %1197 }
 0x408   :  { %v1264_v38 = vsub.f32 %v4819_v8, %v1198_v57  ;;  %v1265_v48 = vsub.f32 %v4823_v11, %v1198_v57  ;;  %v1472_v8 = vadd.f32 %v5025_v62, %v5021_v20  ;;  %v1230_v11 = vsub.f32 %v4493_v10, %v4929_v12 }
 0x409   :  { %v1231_v57 = vsub.f32 %v4497_v36, %v4929_v12  ;;  %v1238_v36 = vsub.f32 %v4245_v2, %v4927_v30 }
 0x40a   :  { %v1384_v45 = vmul.f32 1.442695, %v1264_v38  ;;  %v1386_v53 = vmul.f32 1.442695, %v1265_v48  ;;  %v5027_v0 = vpop.eup %3215  ;;  %1473 = vadd.xlane.f32.xlu1 %v1472_v8  ;;  %v1316_v48 = vmul.f32 1.442695, %v1230_v11  ;;  %v1235_v8 = vsub.f32 %v4549_v35, %v4939_v22 }
 0x40b   :  { %5699 = vst [vmem:[#allocation4_spill] sm:$0xff] %v5027_v0  ;;  %v5031_v29 = vpop.eup %3217  ;;  %v1318_v56 = vmul.f32 1.442695, %v1231_v57  ;;  %v1239_v11 = vsub.f32 %v4249_v9, %v4927_v30  ;;  %v1242_v57 = vsub.f32 %v4352_v39, %v4937_v33  ;;  %v1247_v9 = vsub.f32 %v4515_v14, %v4947_v13 }
 0x40c   :  { %3219 = vpow2.f32 %v1384_v45  ;;  %5700 = vst [vmem:[#allocation8_spill] sm:$0xff] %v5031_v29  ;;  %v1478_v28 = vadd.f32 %v5031_v29, %v5027_v0  ;;  %v1234_v45 = vsub.f32 %v4545_v6, %v4939_v22  ;;  %v1326_v6 = vmul.f32 1.442695, %v1235_v8  ;;  %v1183_v8 = vpop.xlane.xlu0 %1182  ;;  %v5717_v29 = vld [vmem:[#allocation5_spill] sm:$0xff] }
 0x40d   :  { %3221 = vpow2.f32 %v1386_v53  ;;  %v1334_v35 = vmul.f32 1.442695, %v1239_v11  ;;  %v1243_v22 = vsub.f32 %v4380_v51, %v4937_v33  ;;  %v1340_v2 = vmul.f32 1.442695, %v1242_v57 }
 0x40e   :  { %1479 = vadd.xlane.f32.xlu1 %v1478_v28  ;;  %3223 = vpow2.f32 %v1316_v48  ;;  %v1324_v12 = vmul.f32 1.442695, %v1234_v45  ;;  %v1332_v28 = vmul.f32 1.442695, %v1238_v36  ;;  %v1246_v48 = vsub.f32 %v4489_v16, %v4947_v13 }
 0x40f   :  { %3225 = vpow2.f32 %v1318_v56  ;;  %v1342_v45 = vmul.f32 1.442695, %v1243_v22  ;;  %v1205_v39 = vmax.f32 %v4843_v21, %v4847_v23  ;;  %v1250_v33 = vsub.f32 %v4616_v43, %v4961_v52 }
 0x410   :  { %3227 = vpow2.f32 %v1324_v12  ;;  %v1348_v51 = vmul.f32 1.442695, %v1246_v48  ;;  %v1350_v16 = vmul.f32 1.442695, %v1247_v9  ;;  %v1254_v11 = vsub.f32 %v4714_v26, %v1183_v8  ;;  %v5703_v48 = vld [vmem:[#allocation16_spill] sm:$0xff] }
 0x411   :  { %3229 = vpow2.f32 %v1326_v6  ;;  %v1356_v12 = vmul.f32 1.442695, %v1250_v33  ;;  %v1189_v6 = vpop.xlane.xlu0 %1188 }
 0x412   :  { %3231 = vpow2.f32 %v1332_v28  ;;  %v1255_v28 = vsub.f32 %v4716_v34, %v1183_v8  ;;  %v1258_v22 = vsub.f32 %v4768_v24, %v1189_v6 }
 0x413   :  { %3233 = vpow2.f32 %v1334_v35  ;;  %v1364_v35 = vmul.f32 1.442695, %v1254_v11 }
 0x414   :  { %3235 = vpow2.f32 %v1340_v2  ;;  %v1366_v26 = vmul.f32 1.442695, %v1255_v28  ;;  %v1372_v8 = vmul.f32 1.442695, %v1258_v22  ;;  %v5706_v28 = vld [vmem:[#allocation19_spill] sm:$0xff]  ;;  %v5707_v22 = vld [vmem:[#allocation20_spill] sm:$0xff] }
 0x415   :  { %3237 = vpow2.f32 %v1342_v45  ;;  %v1195_v2 = vpop.xlane.xlu0 %1194  ;;  %v1259_v45 = vsub.f32 %v5703_v48, %v1189_v6 }
 0x416   :  { %v5039_v38 = vpop.eup %3219  ;;  %3239 = vpow2.f32 %v1348_v51  ;;  %v5704_v51 = vld [vmem:[#allocation17_spill] sm:$0xff] }
 0x417   :  { %5701 = vst [vmem:[#allocation9_spill] sm:$0xff] %v5039_v38  ;;  %v5043_v53 = vpop.eup %3221  ;;  %3241 = vpow2.f32 %v1350_v16  ;;  %v1262_v33 = vsub.f32 %v5704_v51, %v1195_v2  ;;  %v1374_v24 = vmul.f32 1.442695, %v1259_v45  ;;  %v5705_v16 = vld [vmem:[#allocation18_spill] sm:$0xff] }
 0x418   :  { %5702 = vst [vmem:[#allocation12_spill] sm:$0xff] %v5043_v53  ;;  %v1484_v10 = vadd.f32 %v5043_v53, %v5039_v38  ;;  %v5061_v30 = vpop.eup %3223  ;;  %3243 = vpow2.f32 %v1356_v12 }
 0x419   :  { %v5065_v56 = vpop.eup %3225 }
 0x41a   :  { %1485 = vadd.xlane.f32.xlu1 %v1484_v10  ;;  %v1251_v10 = vsub.f32 %v4626_v1, %v4961_v52  ;;  %v5071_v14 = vpop.eup %3227  ;;  %v1433_v13 = vadd.f32 %v5065_v56, %v5061_v30  ;;  %v1402_v48 = vpop.xlane.xlu1 %1401 }
 0x41b   :  { %v5075_v36 = vpop.eup %3229 }
 0x41c   :  { %1206 = vmax.xlane.f32.xlu0 %v1205_v39  ;;  %v1358_v43 = vmul.f32 1.442695, %v1251_v10  ;;  %v5079_v57 = vpop.eup %3231  ;;  %v1439_v1 = vadd.f32 %v5075_v36, %v5071_v14  ;;  %v1263_v10 = vsub.f32 %v5705_v16, %v1195_v2 }
 0x41d   :  { %v5083_v52 = vpop.eup %3233 }
 0x41e   :  { %3245 = vpow2.f32 %v1358_v43  ;;  %v5087_v9 = vpop.eup %3235  ;;  %v1445_v34 = vadd.f32 %v5083_v52, %v5079_v57  ;;  %v1380_v43 = vmul.f32 1.442695, %v1262_v33 }
 0x41f   :  { %v5091_v39 = vpop.eup %3237  ;;  %3247 = vpow2.f32 %v1364_v35  ;;  %v1382_v35 = vmul.f32 1.442695, %v1263_v10 }
 0x420   :  { %1434 = vadd.xlane.f32.xlu0 %v1433_v13  ;;  %3249 = vpow2.f32 %v1366_v26  ;;  %v1201_v13 = vpop.xlane.xlu0 %1200  ;;  %v5095_v12 = vpop.eup %3239  ;;  %v1451_v11 = vadd.f32 %v5091_v39, %v5087_v9 }
 0x421   :  { %v5099_v6 = vpop.eup %3241  ;;  %3251 = vpow2.f32 %v1372_v8  ;;  %v1267_v26 = vsub.f32 %v5707_v22, %v1201_v13 }
 0x422   :  { %3253 = vpow2.f32 %v1374_v24  ;;  %v5103_v45 = vpop.eup %3243  ;;  %v1457_v2 = vadd.f32 %v5099_v6, %v5095_v12 }
 0x423   :  { %3255 = vrcp.f32 %v1402_v48  ;;  %v1390_v8 = vmul.f32 1.442695, %v1267_v26 }
 0x424   :  { %1440 = vadd.xlane.f32.xlu0 %v1439_v1  ;;  %v1266_v1 = vsub.f32 %v5706_v28, %v1201_v13  ;;  %3257 = vpow2.f32 %v1380_v43  ;;  %v1405_v51 = vpop.xlane.xlu0 %1404 }
 0x425   :  { %3259 = vrcp.f32 %v1405_v51 }
 0x426   :  { %v1388_v33 = vmul.f32 1.442695, %v1266_v1  ;;  %3261 = vpow2.f32 %v1382_v35 }
 0x428   :  { %1446 = vadd.xlane.f32.xlu0 %v1445_v34  ;;  %v5107_v34 = vpop.eup %3245  ;;  %3263 = vpow2.f32 %v1388_v33 }
 0x429   :  { %v5109_v24 = vpop.eup %3247  ;;  %v1463_v16 = vadd.f32 %v5107_v34, %v5103_v45  ;;  %3265 = vpow2.f32 %v1390_v8 }
 0x42a   :  { %v5113_v10 = vpop.eup %3249 }
 0x42b   :  { %v5115_v13 = vpop.eup %3251 }
 0x42c   :  { %1452 = vadd.xlane.f32.xlu0 %v1451_v11  ;;  %v1469_v11 = vadd.f32 %v5113_v10, %v5109_v24  ;;  %v5119_v43 = vpop.eup %3253 }
 0x42d   :  { %v3256_v28 = vpop.eup %3255  ;;  %v1475_v22 = vadd.f32 %v5119_v43, %v5115_v13 }
 0x42e   :  { %v5121_v1 = vpop.eup %3257  ;;  %v1528_v48 = vmul.f32 %v3256_v28, %v4857_v47  ;;  %v1529_v51 = vmul.f32 %v3256_v28, %v4859_v27  ;;  %v1639_v27 = vpop.permute.xlu1 %1638 }
 0x42f   :  { %5708 = vst [vmem:[#allocation13_spill] sm:$0xff] %v5121_v1  ;;  %v3260_v35 = vpop.eup %3259 }
 0x430   :  { %1458 = vadd.xlane.f32.xlu0 %v1457_v2  ;;  %v5125_v26 = vpop.eup %3261  ;;  %v1530_v2 = vmul.f32 %v3260_v35, %v4861_v49  ;;  %v1531_v33 = vmul.f32 %v3260_v35, %v4867_v61  ;;  %v1408_v49 = vpop.xlane.xlu0 %1407 }
 0x431   :  { %v1481_v38 = vadd.f32 %v5125_v26, %v5121_v1 }
 0x432   :  { %v1593_v8 = vpack.c.bf16 %v1531_v33, %v1529_v51 }
 0x434   :  { %1464 = vadd.xlane.f32.xlu0 %v1463_v16  ;;  %v1592_v16 = vpack.c.bf16 %v1530_v2, %v1528_v48  ;;  %1704 = vmatprep.mubr.bf16.mxu0 %v1593_v8  ;;  %v1411_v28 = vpop.xlane.xlu0 %1410 }
 0x438   :  { %1470 = vadd.xlane.f32.xlu0 %v1469_v11  ;;  %v5131_v11 = vpop.eup %3263  ;;  %v1414_v33 = vpop.xlane.xlu0 %1413 }
 0x439   :  { %5709 = vst [vmem:[#allocation14_spill] sm:$0xff] %v5131_v11  ;;  %v5135_v53 = vpop.eup %3265 }
 0x43a   :  { %5710 = vst [vmem:[#allocation15_spill] sm:$0xff] %v5135_v53  ;;  %v1487_v47 = vadd.f32 %v5135_v53, %v5131_v11 }
 0x43c   :  { %1476 = vadd.xlane.f32.xlu0 %v1475_v22  ;;  %v5711_v22 = vld [vmem:[#allocation2_spill] sm:$0xff] }
 0x440   :  { %1482 = vadd.xlane.f32.xlu0 %v1481_v38 }
 0x444   :  { %1488 = vadd.xlane.f32.xlu0 %v1487_v47 }
 0x44f   :  { %v1204_v61 = vpop.xlane.xlu1 %1203 }
 0x450   :  { %v1268_v35 = vsub.f32 %v4907_v54, %v1204_v61  ;;  %v1269_v48 = vsub.f32 %v5711_v22, %v1204_v61  ;;  %v5714_v22 = vld [vmem:[#allocation21_spill] sm:$0xff] }
 0x452   :  { %v1392_v2 = vmul.f32 1.442695, %v1268_v35  ;;  %v1394_v51 = vmul.f32 1.442695, %v1269_v48 }
 0x454   :  { %3267 = vpow2.f32 %v1392_v2  ;;  %v1426_v2 = vpop.xlane.xlu1 %1425 }
 0x455   :  { %3269 = vpow2.f32 %v1394_v51 }
 0x456   :  { %3271 = vrcp.f32 %v1411_v28 }
 0x457   :  { %v1417_v8 = vpop.xlane.xlu0 %1416  ;;  %3273 = vrcp.f32 %v1408_v49  ;;  %v5715_v49 = vld [vmem:[#allocation6_spill] sm:$0xff] }
 0x458   :  { %3275 = vrcp.f32 %v1417_v8 }
 0x459   :  { %3277 = vrcp.f32 %v1414_v33 }
 0x45b   :  { %v1420_v38 = vpop.xlane.xlu0 %1419 }
 0x45e   :  { %v5141_v0 = vpop.eup %3267 }
 0x45f   :  { %5712 = vst [vmem:[#allocation3_spill] sm:$0xff] %v5141_v0  ;;  %v5143_v47 = vpop.eup %3269  ;;  %v1423_v54 = vpop.xlane.xlu0 %1422 }
 0x460   :  { %5713 = vst [vmem:[#allocation16_spill] sm:$0xff] %v5143_v47  ;;  %v1490_v11 = vadd.f32 %v5143_v47, %v5141_v0  ;;  %v3272_v53 = vpop.eup %3271  ;;  %3279 = vrcp.f32 %v1423_v54  ;;  %v5716_v0 = vld [vmem:[#allocation7_spill] sm:$0xff] }
 0x461   :  { %v3274_v61 = vpop.eup %3273  ;;  %v1535_v48 = vmul.f32 %v3272_v53, %v5714_v22  ;;  %3281 = vrcp.f32 %v1420_v38  ;;  %v1534_v47 = vmul.f32 %v3272_v53, %v5716_v0  ;;  %v5718_v22 = vld [vmem:[#allocation23_spill] sm:$0xff]  ;;  %v5719_v0 = vld [vmem:[#allocation22_spill] sm:$0xff] }
 0x462   :  { %1491 = vadd.xlane.f32.xlu1 %v1490_v11  ;;  %v1533_v28 = vmul.f32 %v3274_v61, %v5715_v49  ;;  %v3276_v1 = vpop.eup %3275  ;;  %v1429_v33 = vpop.xlane.xlu1 %1428  ;;  %v1532_v20 = vmul.f32 %v3274_v61, %v5717_v29 }
 0x463   :  { %v3278_v8 = vpop.eup %3277  ;;  %v1539_v11 = vmul.f32 %v3276_v1, %v4934_v18  ;;  %3283 = vrcp.f32 %v1429_v33 }
 0x464   :  { %v1595_v51 = vpack.c.bf16 %v1535_v48, %v1533_v28  ;;  %3285 = vrcp.f32 %v1426_v2  ;;  %v1536_v53 = vmul.f32 %v3278_v8, %v5719_v0 }
 0x46a   :  { %v3280_v54 = vpop.eup %3279 }
 0x46b   :  { %v3282_v38 = vpop.eup %3281  ;;  %v1543_v48 = vmul.f32 %v3280_v54, %v4955_v32 }
 0x46c   :  { %v1541_v18 = vmul.f32 %v3282_v38, %v4945_v55 }
 0x46d   :  { %v3284_v61 = vpop.eup %3283 }
 0x46e   :  { %v1599_v29 = vpack.c.bf16 %v1543_v48, %v1541_v18  ;;  %v1547_v2 = vmul.f32 %v3284_v61, %v4959_v15  ;;  %v1546_v55 = vmul.f32 %v3284_v61, %v4957_v5 }
 0x46f   :  { %v1655_v35 = vpop.permute.xlu0 %1654 }
 0x470   :  { %2836 = vmatprep.subr.bf16.mxu0 %v1655_v35  ;;  %v1537_v35 = vmul.f32 %v3278_v8, %v5718_v22  ;;  %v5720_v8 = vld [vmem:[#allocation10_spill] sm:$0xff] }
 0x471   :  { %2837 = vmatpush3.bf16.msra.mxu0 %v1639_v27  ;;  %v1594_v27 = vpack.c.bf16 %v1534_v47, %v1532_v20  ;;  %v3286_v20 = vpop.eup %3285  ;;  %v1542_v47 = vmul.f32 %v3280_v54, %v4949_v25  ;;  %v1432_v22 = vpop.xlane.xlu1 %1431 }
 0x472   :  { %v1597_v49 = vpack.c.bf16 %v1539_v11, %v1537_v35  ;;  %v1544_v33 = vmul.f32 %v3286_v20, %v5720_v8  ;;  %3287 = vrcp.f32 %v1432_v22 }
 0x474   :  { %1705 = vmatmul.mubr.bf16.vlgmr.msra.gmra.mrb[8].mxu0 %v1592_v16  ;;  %v1538_v16 = vmul.f32 %v3276_v1, %v4931_v44  ;;  %v1545_v44 = vmul.f32 %v3286_v20, %v4918_v50  ;;  %v1600_v11 = vpack.c.bf16 %v1546_v55, %v1544_v33 }
 0x475   :  { %1712 = vmatprep.mubr.bf16.mxu0 %v1595_v51  ;;  %v1540_v51 = vmul.f32 %v3282_v38, %v4941_v7 }
 0x476   :  { %v1596_v28 = vpack.c.bf16 %v1538_v16, %v1536_v53  ;;  %v1601_v32 = vpack.c.bf16 %v1547_v2, %v1545_v44 }
 0x477   :  { %v1598_v1 = vpack.c.bf16 %v1542_v47, %v1540_v51 }
 0x47c   :  { %1713 = vmatmul.mubr.bf16.gmra.mrb[12].mxu0 %v1594_v27  ;;  %v1438_v27 = vpop.xlane.xlu1 %1437  ;;  %v3288_v16 = vpop.eup %3287 }
 0x47d   :  { %1720 = vmatprep.mubr.bf16.mxu0 %v1597_v49  ;;  %3289 = vrcp.f32 %v1438_v27  ;;  %v1548_v61 = vmul.f32 %v3288_v16, %v4963_v63 }
 0x480   :  { %v1444_v54 = vpop.xlane.xlu1 %1443 }
 0x484   :  { %1721 = vmatmul.mubr.bf16.gmra.mrb[16].mxu0 %v1596_v28  ;;  %v1549_v28 = vmul.f32 %v3288_v16, %v4971_v40  ;;  %v1450_v2 = vpop.xlane.xlu1 %1449 }
 0x485   :  { %1728 = vmatprep.mubr.bf16.mxu0 %v1599_v29 }
 0x487   :  { %v3290_v48 = vpop.eup %3289 }
 0x488   :  { %v1552_v33 = vmul.f32 %v3290_v48, %v4973_v3 }
 0x48c   :  { %1729 = vmatmul.mubr.bf16.gmra.mrb[20].mxu0 %v1598_v1  ;;  %v1553_v1 = vmul.f32 %v3290_v48, %v4979_v46 }
 0x48d   :  { %1736 = vmatprep.mubr.bf16.mxu0 %v1601_v32 }
 0x494   :  { %1737 = vmatmul.mubr.bf16.gmra.mrb[24].mxu0 %v1600_v11  ;;  %v1456_v11 = vpop.xlane.xlu1 %1455 }
 0x4a9   :  { %v1207_v35 = vpop.xlane.xlu0 %1206 }
 0x4aa   :  { %v1270_v25 = vsub.f32 %v4843_v21, %v1207_v35  ;;  %v1271_v15 = vsub.f32 %v4847_v23, %v1207_v35 }
 0x4ac   :  { %v1396_v7 = vmul.f32 1.442695, %v1270_v25  ;;  %v1398_v50 = vmul.f32 1.442695, %v1271_v15 }
 0x4ad   :  { %v1435_v49 = vpop.xlane.xlu0 %1434 }
 0x4ae   :  { %3291 = vpow2.f32 %v1396_v7  ;;  %v1462_v7 = vpop.xlane.xlu1 %1461 }
 0x4af   :  { %3293 = vpow2.f32 %v1398_v50 }
 0x4b0   :  { %3295 = vrcp.f32 %v1435_v49 }
 0x4b1   :  { %v1441_v5 = vpop.xlane.xlu0 %1440 }
 0x4b2   :  { %3297 = vrcp.f32 %v1441_v5  ;;  %v1468_v16 = vpop.xlane.xlu1 %1467 }
 0x4b5   :  { %v1447_v38 = vpop.xlane.xlu0 %1446 }
 0x4b6   :  { %3299 = vrcp.f32 %v1447_v38 }
 0x4b7   :  { %3301 = vrcp.f32 %v1444_v54 }
 0x4b8   :  { %v5165_v0 = vpop.eup %3291 }
 0x4b9   :  { %v5167_v21 = vpop.eup %3293  ;;  %v1453_v18 = vpop.xlane.xlu0 %1452 }
 0x4ba   :  { %v3296_v23 = vpop.eup %3295  ;;  %v1493_v53 = vadd.f32 %v5167_v21, %v5165_v0  ;;  %3303 = vrcp.f32 %v1453_v18 }
 0x4bb   :  { %v1551_v29 = vmul.f32 %v3296_v23, %v5065_v56  ;;  %v1550_v20 = vmul.f32 %v3296_v23, %v5061_v30  ;;  %3305 = vrcp.f32 %v1450_v2 }
 0x4bc   :  { %v3298_v47 = vpop.eup %3297  ;;  %1494 = vadd.xlane.f32.xlu0 %v1493_v53 }
 0x4bd   :  { %v1603_v51 = vpack.c.bf16 %v1551_v29, %v1549_v28  ;;  %v1602_v44 = vpack.c.bf16 %v1550_v20, %v1548_v61  ;;  %v1555_v32 = vmul.f32 %v3298_v47, %v5075_v36  ;;  %v1554_v63 = vmul.f32 %v3298_v47, %v5071_v14  ;;  %v1459_v30 = vpop.xlane.xlu0 %1458  ;;  %v1474_v29 = vpop.xlane.xlu1 %1473 }
 0x4be   :  { %3307 = vrcp.f32 %v1459_v30 }
 0x4bf   :  { %1744 = vmatprep.mubr.bf16.mxu0 %v1603_v51  ;;  %v1605_v55 = vpack.c.bf16 %v1555_v32, %v1553_v1  ;;  %v1604_v36 = vpack.c.bf16 %v1554_v63, %v1552_v33  ;;  %3309 = vrcp.f32 %v1456_v11 }
 0x4c0   :  { %v3300_v8 = vpop.eup %3299  ;;  %1745 = vmatmul.mubr.bf16.gmra.mrb[28].mxu0 %v1602_v44 }
 0x4c1   :  { %1752 = vmatprep.mubr.bf16.mxu0 %v1605_v55  ;;  %v3302_v40 = vpop.eup %3301  ;;  %v1559_v56 = vmul.f32 %v3300_v8, %v5083_v52  ;;  %v1558_v25 = vmul.f32 %v3300_v8, %v5079_v57  ;;  %v1465_v15 = vpop.xlane.xlu0 %1464 }
 0x4c2   :  { %v1557_v46 = vmul.f32 %v3302_v40, %v4987_v58  ;;  %v1556_v52 = vmul.f32 %v3302_v40, %v4983_v60  ;;  %3311 = vrcp.f32 %v1465_v15  ;;  %v1480_v44 = vpop.xlane.xlu1 %1479  ;;  %v5723_v15 = vld [vmem:[#allocation13_spill] sm:$0xff] }
 0x4c3   :  { %3313 = vrcp.f32 %v1462_v7  ;;  %v5725_v7 = vld [vmem:[#allocation4_spill] sm:$0xff] }
 0x4c4   :  { %v1607_v22 = vpack.c.bf16 %v1559_v56, %v1557_v46  ;;  %v3304_v35 = vpop.eup %3303  ;;  %v1606_v58 = vpack.c.bf16 %v1558_v25, %v1556_v52  ;;  %v5721_v46 = vld [vmem:[#allocation11_spill] sm:$0xff] }
 0x4c5   :  { %v3306_v27 = vpop.eup %3305  ;;  %v1563_v14 = vmul.f32 %v3304_v35, %v5091_v39  ;;  %v1562_v54 = vmul.f32 %v3304_v35, %v5087_v9  ;;  %v1471_v38 = vpop.xlane.xlu0 %1470 }
 0x4c6   :  { %v1561_v3 = vmul.f32 %v3306_v27, %v4995_v42  ;;  %v1560_v39 = vmul.f32 %v3306_v27, %v4991_v37  ;;  %3315 = vrcp.f32 %v1471_v38  ;;  %v1486_v63 = vpop.xlane.xlu1 %1485 }
 0x4c7   :  { %3317 = vrcp.f32 %v1468_v16 }
 0x4c8   :  { %1753 = vmatmul.mubr.bf16.gmra.mrb[32].mxu0 %v1604_v36  ;;  %v1609_v50 = vpack.c.bf16 %v1563_v14, %v1561_v3  ;;  %v3308_v49 = vpop.eup %3307  ;;  %v1608_v42 = vpack.c.bf16 %v1562_v54, %v1560_v39  ;;  %v5727_v54 = vld [vmem:[#allocation14_spill] sm:$0xff] }
 0x4c9   :  { %1760 = vmatprep.mubr.bf16.mxu0 %v1607_v22  ;;  %v3310_v5 = vpop.eup %3309  ;;  %v1567_v57 = vmul.f32 %v3308_v49, %v5099_v6  ;;  %v1566_v18 = vmul.f32 %v3308_v49, %v5095_v12  ;;  %v1477_v28 = vpop.xlane.xlu0 %1476 }
 0x4ca   :  { %v1565_v60 = vmul.f32 %v3310_v5, %v5001_v17  ;;  %v1564_v6 = vmul.f32 %v3310_v5, %v4997_v19  ;;  %3319 = vrcp.f32 %v1477_v28 }
 0x4cb   :  { %3321 = vrcp.f32 %v1474_v29 }
 0x4cc   :  { %v1611_v48 = vpack.c.bf16 %v1567_v57, %v1565_v60  ;;  %v3312_v23 = vpop.eup %3311  ;;  %v1610_v17 = vpack.c.bf16 %v1566_v18, %v1564_v6  ;;  %v5728_v57 = vld [vmem:[#allocation9_spill] sm:$0xff]  ;;  %v1849_v60 = vld [vmem:[%s5408_s6] sm:$0xf] }
 0x4cd   :  { %v3314_v53 = vpop.eup %3313  ;;  %v1571_v9 = vmul.f32 %v3312_v23, %v5107_v34  ;;  %v1570_v2 = vmul.f32 %v3312_v23, %v5103_v45  ;;  %v1483_v51 = vpop.xlane.xlu0 %1482 }
 0x4ce   :  { %v1569_v37 = vmul.f32 %v3314_v53, %v5009_v59  ;;  %v1568_v34 = vmul.f32 %v3314_v53, %v5005_v41  ;;  %3323 = vrcp.f32 %v1483_v51 }
 0x4cf   :  { %3325 = vrcp.f32 %v1480_v44 }
 0x4d0   :  { %1761 = vmatmul.mubr.bf16.gmra.mrb[36].mxu0 %v1606_v58  ;;  %v1613_v61 = vpack.c.bf16 %v1571_v9, %v1569_v37  ;;  %v3316_v20 = vpop.eup %3315  ;;  %v1612_v59 = vpack.c.bf16 %v1570_v2, %v1568_v34  ;;  %v5726_v58 = vld [vmem:[#allocation12_spill] sm:$0xff] }
 0x4d1   :  { %1768 = vmatprep.mubr.bf16.mxu0 %v1609_v50  ;;  %v3318_v47 = vpop.eup %3317  ;;  %v1575_v12 = vmul.f32 %v3316_v20, %v5113_v10  ;;  %v1574_v8 = vmul.f32 %v3316_v20, %v5109_v24  ;;  %v1489_v40 = vpop.xlane.xlu0 %1488 }
 0x4d2   :  { %v1573_v19 = vmul.f32 %v3318_v47, %v5017_v4  ;;  %v1572_v10 = vmul.f32 %v3318_v47, %v5011_v31  ;;  %3327 = vrcp.f32 %v1489_v40  ;;  %v5730_v47 = vld [vmem:[#allocation3_spill] sm:$0xff] }
 0x4d3   :  { %3329 = vrcp.f32 %v1486_v63 }
 0x4d4   :  { %v1615_v1 = vpack.c.bf16 %v1575_v12, %v1573_v19  ;;  %v3320_v32 = vpop.eup %3319  ;;  %v1614_v4 = vpack.c.bf16 %v1574_v8, %v1572_v10 }
 0x4d5   :  { %v3322_v55 = vpop.eup %3321  ;;  %v1579_v45 = vmul.f32 %v3320_v32, %v5119_v43  ;;  %v1578_v11 = vmul.f32 %v3320_v32, %v5115_v13  ;;  %v5722_v43 = vld [vmem:[#allocation8_spill] sm:$0xff] }
 0x4d6   :  { %v1577_v41 = vmul.f32 %v3322_v55, %v5025_v62  ;;  %v1576_v36 = vmul.f32 %v3322_v55, %v5721_v46  ;;  %v1850_v62 = vld [vmem:[%s5408_s6 + $0x4] sm:$0xf] }
 0x4d7   :  { %3120 = vmatprep.subr.msk.bf16.mxu0 %vm1863_vm2, %v1850_v62  ;;  %v1865_v13 = vsel %vm1863_vm2, %v1850_v62, 0 }
 0x4d8   :  { %1769 = vmatmul.mubr.bf16.gmra.mrb[40].mxu0 %v1608_v42  ;;  %v1617_v30 = vpack.c.bf16 %v1579_v45, %v1577_v41  ;;  %v3324_v56 = vpop.eup %3323  ;;  %v1616_v31 = vpack.c.bf16 %v1578_v11, %v1576_v36 }
 0x4d9   :  { %1776 = vmatprep.mubr.bf16.mxu0 %v1611_v48  ;;  %v3326_v33 = vpop.eup %3325  ;;  %v1583_v24 = vmul.f32 %v3324_v56, %v5125_v26  ;;  %v1582_v14 = vmul.f32 %v3324_v56, %v5723_v15  ;;  %v5724_v26 = vld [vmem:[#allocation15_spill] sm:$0xff]  ;;  %2990 = vmatpush3.bf16.msra.mxu0 %v1865_v13 }
 0x4da   :  { %v1581_v22 = vmul.f32 %v3326_v33, %v5722_v43  ;;  %v1580_v3 = vmul.f32 %v3326_v33, %v5725_v7  ;;  %3121 = vmatprep.subr.msk.bf16.mxu0 %vm1863_vm2, %v1849_v60 }
 0x4dc   :  { %v1619_v35 = vpack.c.bf16 %v1583_v24, %v1581_v22  ;;  %v3328_v27 = vpop.eup %3327  ;;  %v1618_v49 = vpack.c.bf16 %v1582_v14, %v1580_v3 }
 0x4dd   :  { %v3330_v25 = vpop.eup %3329  ;;  %v1587_v52 = vmul.f32 %v3328_v27, %v5724_v26  ;;  %v1586_v38 = vmul.f32 %v3328_v27, %v5727_v54 }
 0x4de   :  { %v1585_v50 = vmul.f32 %v3330_v25, %v5726_v58  ;;  %v1584_v39 = vmul.f32 %v3330_v25, %v5728_v57  ;;  %v1945_v58 = vsel %vm1863_vm2, %v1849_v60, 0 }
 0x4e0   :  { %1777 = vmatmul.mubr.bf16.gmra.mrb[44].mxu0 %v1610_v17  ;;  %v1621_v5 = vpack.c.bf16 %v1587_v52, %v1585_v50  ;;  %v1620_v16 = vpack.c.bf16 %v1586_v38, %v1584_v39  ;;  %v5729_v17 = vld [vmem:[#allocation16_spill] sm:$0xff]  ;;  %v2012_v50 = vld [vmem:[%s5408_s6 + $0x8] sm:$0xf] }
 0x4e1   :  { %1784 = vmatprep.mubr.bf16.mxu0 %v1613_v61 }
 0x4e8   :  { %1785 = vmatmul.mubr.bf16.gmra.mrb[48].mxu0 %v1612_v59 }
 0x4e9   :  { %1792 = vmatprep.mubr.bf16.mxu0 %v1615_v1 }
 0x4ef   :  { %v1492_v42 = vpop.xlane.xlu1 %1491 }
 0x4f0   :  { %1793 = vmatmul.mubr.bf16.gmra.mrb[52].mxu0 %v1614_v4  ;;  %3331 = vrcp.f32 %v1492_v42 }
 0x4f1   :  { %1800 = vmatprep.mubr.bf16.mxu0 %v1617_v30 }
 0x4f8   :  { %1801 = vmatmul.mubr.bf16.gmra.mrb[56].mxu0 %v1616_v31 }
 0x4f9   :  { %1808 = vmatprep.mubr.bf16.mxu0 %v1619_v35 }
 0x4fa   :  { %v3332_v18 = vpop.eup %3331 }
 0x4fb   :  { %v1589_v61 = vmul.f32 %v3332_v18, %v5729_v17  ;;  %v1588_v2 = vmul.f32 %v3332_v18, %v5730_v47 }
 0x500   :  { %1809 = vmatmul.mubr.bf16.gmra.mrb[60].mxu0 %v1618_v49 }
 0x501   :  { %1816 = vmatprep.mubr.bf16.mxu0 %v1621_v5 }
 0x508   :  { %1817 = vmatmul.mubr.bf16.gmra.mrb[64].mxu0 %v1620_v16 }
 0x547   :  { %v2838_v23 = vpop.f32.mrb[8].mxu0 }
 0x548   :  { %v2839_v53 = vpop.f32.mrb[9].mxu0 }
 0x549   :  { %v1495_v48 = vpop.xlane.xlu0 %1494  ;;  %v5220_v28 = vadd.f32 %v2839_v53, %v2838_v23  ;;  %v2841_v9 = vpop.f32.mrb[10].mxu0 }
 0x54a   :  { %3333 = vrcp.f32 %v1495_v48  ;;  %v2842_v6 = vpop.f32.mrb[11].mxu0 }
 0x54b   :  { %v5222_v37 = vadd.f32 %v2842_v6, %v2841_v9 }
 0x54d   :  { %v1833_v12 = vpack.c.bf16 %v5222_v37, %v5220_v28 }
 0x54f   :  { %v2844_v19 = vpop.f32.mrb[12].mxu0 }
 0x550   :  { %v2845_v59 = vpop.f32.mrb[13].mxu0 }
 0x551   :  { %v5230_v1 = vadd.f32 %v2845_v59, %v2844_v19  ;;  %v2847_v32 = vpop.f32.mrb[14].mxu0  ;;  %v3137_v59 = vld [vmem:[%s5409_s8] sm:$0xff]  }
 0x552   :  { %v2848_v55 = vpop.f32.mrb[15].mxu0  ;;  %3029 = vmatprep.subr.bf16.mxu1 %v3137_v59 }
 0x553   :  { %v5232_v8 = vadd.f32 %v2848_v55, %v2847_v32  ;;  %3030 = vmatpush3.bf16.msra.mxu1 %v3137_v59 }
 0x554   :  { %v3334_v29 = vpop.eup %3333 }
 0x555   :  { %v1591_v20 = vmul.f32 %v3334_v29, %v5167_v21  ;;  %v1590_v51 = vmul.f32 %v3334_v29, %v5165_v0  ;;  %v1834_v21 = vpack.c.bf16 %v5232_v8, %v5230_v1 }
 0x557   :  { %v1623_v34 = vpack.c.bf16 %v1591_v20, %v1589_v61  ;;  %v1622_v44 = vpack.c.bf16 %v1590_v51, %v1588_v2  ;;  %v2850_v40 = vpop.f32.mrb[16].mxu0  ;;  %v2026_v51 = vsel %vm1863_vm2, %v2012_v50, 0 }
 0x558   :  { %v2851_v0 = vpop.f32.mrb[17].mxu0 }
 0x559   :  { %1824 = vmatprep.mubr.bf16.mxu0 %v1623_v34  ;;  %v2852_v45 = vadd.f32 %v2851_v0, %v2850_v40  ;;  %v2853_v10 = vpop.f32.mrb[18].mxu0  ;;  %v2101_v34 = vld [vmem:[%s5408_s6 + $0xc] sm:$0xf] }
 0x55a   :  { %1825 = vmatmul.mubr.bf16.gmra.mrb[68].mxu0 %v1622_v44  ;;  %v2854_v63 = vpop.f32.mrb[19].mxu0 }
 0x55b   :  { %v2855_v41 = vadd.f32 %v2854_v63, %v2853_v10  ;;  %v2115_v63 = vsel %vm1863_vm2, %v2101_v34, 0 }
 0x55d   :  { %v1835_v4 = vpack.c.bf16 %v2855_v41, %v2852_v45 }
 0x55f   :  { %v2856_v30 = vpop.f32.mrb[20].mxu0 }
 0x560   :  { %v2857_v56 = vpop.f32.mrb[21].mxu0 }
 0x561   :  { %v5236_v33 = vadd.f32 %v2857_v56, %v2856_v30  ;;  %v2859_v11 = vpop.f32.mrb[22].mxu0 }
 0x562   :  { %v2860_v24 = vpop.f32.mrb[23].mxu0 }
 0x563   :  { %v5238_v46 = vadd.f32 %v2860_v24, %v2859_v11 }
 0x565   :  { %v1836_v36 = vpack.c.bf16 %v5238_v46, %v5236_v33 }
 0x567   :  { %v2862_v43 = vpop.f32.mrb[24].mxu0 }
 0x568   :  { %v2863_v22 = vpop.f32.mrb[25].mxu0 }
 0x569   :  { %v2864_v31 = vadd.f32 %v2863_v22, %v2862_v43  ;;  %v2865_v35 = vpop.f32.mrb[26].mxu0 }
 0x56a   :  { %v2866_v27 = vpop.f32.mrb[27].mxu0 }
 0x56b   :  { %v2867_v62 = vadd.f32 %v2866_v27, %v2865_v35 }
 0x56d   :  { %v1837_v25 = vpack.c.bf16 %v2867_v62, %v2864_v31 }
 0x56f   :  { %2991 = vmatprep.mubr.msk.bf16.mxu0 %vm5731_vm5, %v1837_v25  ;;  %vm5747_vm5 = vcmask 261120  }
 0x593   :  { %v2868_v15 = vpop.f32.mrb[28].mxu0 }
 0x594   :  { %v2869_v14 = vpop.f32.mrb[29].mxu0 }
 0x595   :  { %v2870_v13 = vadd.f32 %v2869_v14, %v2868_v15  ;;  %v2871_v26 = vpop.f32.mrb[30].mxu0 }
 0x596   :  { %v2872_v52 = vpop.f32.mrb[31].mxu0 }
 0x597   :  { %v2873_v7 = vadd.f32 %v2872_v52, %v2871_v26 }
 0x599   :  { %v1838_v3 = vpack.c.bf16 %v2873_v7, %v2870_v13 }
 0x59b   :  { %v2874_v49 = vpop.f32.mrb[32].mxu0  ;;  %2992 = vmatmul.mubr.msk.bf16.vlgmr.msra.gmra.mrb[72].mxu0 %vm5732_vm6, %v1838_v3  ;;  %vm5748_vm6 = vmmov %vm5747_vm5 }
 0x59c   :  { %v2875_v5 = vpop.f32.mrb[33].mxu0  ;;  %3000 = vmatpush3.bf16.msra.mxu0 %v1945_v58 }
 0x59d   :  { %v2876_v54 = vadd.f32 %v2875_v5, %v2874_v49  ;;  %v2877_v38 = vpop.f32.mrb[34].mxu0  ;;  %3122 = vmatprep.subr.msk.bf16.mxu0 %vm1863_vm2, %v2012_v50 }
 0x59e   :  { %v2878_v57 = vpop.f32.mrb[35].mxu0 }
 0x59f   :  { %v2879_v39 = vadd.f32 %v2878_v57, %v2877_v38 }
 0x5a1   :  { %v1839_v16 = vpack.c.bf16 %v2879_v39, %v2876_v54 }
 0x5a3   :  { %v2880_v42 = vpop.f32.mrb[36].mxu0  ;;  %2995 = vmatprep.mubr.msk.bf16.mxu0 %vm5733_vm4, %v1839_v16  ;;  %vm5749_vm4 = vmmov %vm5747_vm5 }
 0x5a4   :  { %v2881_v60 = vpop.f32.mrb[37].mxu0 }
 0x5a5   :  { %v2882_v48 = vadd.f32 %v2881_v60, %v2880_v42  ;;  %v2883_v23 = vpop.f32.mrb[38].mxu0 }
 0x5a6   :  { %v2884_v53 = vpop.f32.mrb[39].mxu0 }
 0x5a7   :  { %v2885_v18 = vadd.f32 %v2884_v53, %v2883_v23  ;;  %v3139_v53 = vld [vmem:[%s5410_s10] sm:$0xff]  }
 0x5a9   :  { %v1840_v9 = vpack.c.bf16 %v2885_v18, %v2882_v48  ;;  %v3138_v48 = vld [vmem:[%s5409_s8 + $0x8] sm:$0xff]  }
 0x5aa   :  { %3031 = vmatprep.subr.bf16.mxu1 %v3138_v48 }
 0x5ab   :  { %v2886_v6 = vpop.f32.mrb[40].mxu0  ;;  %2996 = vmatmul.mubr.msk.bf16.gmra.mrb[76].mxu0 %vm5734_vm9, %v1840_v9  ;;  %3032 = vmatpush3.bf16.msra.mxu1 %v3138_v48  ;;  %v2748_v9 = vld [vmem:[%s5411_s7] ss:$0 sm:$0xff]  ;;  %vm5750_vm9 = vmmov %vm5749_vm4 }
 0x5ac   :  { %v2887_v29 = vpop.f32.mrb[41].mxu0  ;;  %3001 = vmatprep.mubr.msk.bf16.mxu0 %vm5735_vm8, %v1833_v12  ;;  %3041 = vmatprep.subr.bf16.mxu1 %v3139_v53  ;;  %vm5751_vm8 = vcmask 523264  }
 0x5ad   :  { %v2888_v17 = vadd.f32 %v2887_v29, %v2886_v6  ;;  %v2889_v61 = vpop.f32.mrb[42].mxu0 }
 0x5ae   :  { %v2890_v20 = vpop.f32.mrb[43].mxu0 }
 0x5af   :  { %v2891_v47 = vadd.f32 %v2890_v20, %v2889_v61 }
 0x5b1   :  { %v1841_v2 = vpack.c.bf16 %v2891_v47, %v2888_v17 }
 0x5b3   :  { %v2892_v44 = vpop.f32.mrb[44].mxu0  ;;  %3002 = vmatmul.mubr.msk.bf16.vlgmr.msra.gmra.mrb[72].mxu0 %vm5736_vm12, %v1834_v21  ;;  %vm5752_vm12 = vmmov %vm5751_vm8 }
 0x5b4   :  { %v2893_v19 = vpop.f32.mrb[45].mxu0  ;;  %3005 = vmatprep.mubr.msk.bf16.mxu0 %vm5737_vm3, %v1835_v4  ;;  %3010 = vmatpush3.bf16.msra.mxu0 %v2026_v51  ;;  %vm5753_vm3 = vmmov %vm5751_vm8 }
 0x5b5   :  { %v2894_v28 = vadd.f32 %v2893_v19, %v2892_v44  ;;  %v2895_v37 = vpop.f32.mrb[46].mxu0  ;;  %3123 = vmatprep.subr.msk.bf16.mxu0 %vm1863_vm2, %v2101_v34  ;;  %vm5746_vm2 = vmmov %vm5740_vm0  ;;  %v3140_v44 = vld [vmem:[%s5410_s10 + $0x8] sm:$0xff]  }
 0x5b6   :  { %v2896_v12 = vpop.f32.mrb[47].mxu0 }
 0x5b7   :  { %v2897_v1 = vadd.f32 %v2896_v12, %v2895_v37 }
 0x5b9   :  { %v1842_v32 = vpack.c.bf16 %v2897_v1, %v2894_v28 }
 0x5bb   :  { %v2898_v55 = vpop.f32.mrb[48].mxu0  ;;  %3006 = vmatmul.mubr.msk.bf16.gmra.mrb[76].mxu0 %vm5738_vm1, %v1836_v36  ;;  %vm5754_vm1 = vmmov %vm5753_vm3 }
 0x5bc   :  { %v2899_v8 = vpop.f32.mrb[49].mxu0  ;;  %3011 = vmatprep.mubr.msk.bf16.mxu0 %vm5739_vm14, %v1841_v2  ;;  %vm5755_vm14 = vmmov %vm5749_vm4 }
 0x5bd   :  { %v2900_v21 = vadd.f32 %v2899_v8, %v2898_v55  ;;  %v2901_v40 = vpop.f32.mrb[50].mxu0 }
 0x5be   :  { %v2902_v0 = vpop.f32.mrb[51].mxu0 }
 0x5bf   :  { %v2903_v45 = vadd.f32 %v2902_v0, %v2901_v40  ;;  %v3142_v0 = vld [vmem:[%s5410_s10 + $0x18] sm:$0xff]  }
 0x5c1   :  { %v1843_v10 = vpack.c.bf16 %v2903_v45, %v2900_v21  ;;  %v2749_v45 = vld [vmem:[%s5412_s9] ss:$0 sm:$0xff] }
 0x5c3   :  { %v2904_v41 = vpop.f32.mrb[52].mxu0  ;;  %3012 = vmatmul.mubr.msk.bf16.vlgmr.msra.gmra.mrb[72].mxu0 %vm5740_vm0, %v1842_v32  ;;  %v3141_v32 = vld [vmem:[%s5410_s10 + $0x10] sm:$0xff]   ;;  %vm5756_vm0 = vmmov %vm5749_vm4 }
 0x5c4   :  { %v2905_v4 = vpop.f32.mrb[53].mxu0  ;;  %3015 = vmatprep.mubr.msk.bf16.mxu0 %vm5741_vm7, %v1843_v10  ;;  %3020 = vmatpush3.bf16.msra.mxu0 %v2115_v63  ;;  %vm5757_vm7 = vmmov %vm5756_vm0 }
 0x5c5   :  { %v2906_v30 = vadd.f32 %v2905_v4, %v2904_v41  ;;  %v2907_v56 = vpop.f32.mrb[54].mxu0 }
 0x5c6   :  { %v2908_v33 = vpop.f32.mrb[55].mxu0 }
 0x5c7   :  { %v2909_v11 = vadd.f32 %v2908_v33, %v2907_v56 }
 0x5c9   :  { %v1844_v24 = vpack.c.bf16 %v2909_v11, %v2906_v30 }
 0x5cb   :  { %v2910_v46 = vpop.f32.mrb[56].mxu0  ;;  %3016 = vmatmul.mubr.msk.bf16.gmra.mrb[76].mxu0 %vm5742_vm13, %v1844_v24  ;;  %vm5758_vm13 = vmmov %vm5756_vm0 }
 0x5cc   :  { %v2911_v36 = vpop.f32.mrb[57].mxu0 }
 0x5cd   :  { %v2912_v43 = vadd.f32 %v2911_v36, %v2910_v46  ;;  %v2913_v22 = vpop.f32.mrb[58].mxu0 }
 0x5ce   :  { %v2914_v31 = vpop.f32.mrb[59].mxu0 }
 0x5cf   :  { %v2915_v35 = vadd.f32 %v2914_v31, %v2913_v22 }
 0x5d1   :  { %v1845_v27 = vpack.c.bf16 %v2915_v35, %v2912_v43 }
 0x5d3   :  { %v2916_v62 = vpop.f32.mrb[60].mxu0  ;;  %3021 = vmatprep.mubr.msk.bf16.mxu0 %vm5743_vm11, %v1845_v27  ;;  %vm5759_vm11 = vmmov %vm5756_vm0 }
 0x5d4   :  { %v2917_v25 = vpop.f32.mrb[61].mxu0 }
 0x5d5   :  { %v2918_v15 = vadd.f32 %v2917_v25, %v2916_v62  ;;  %v2919_v14 = vpop.f32.mrb[62].mxu0 }
 0x5d6   :  { %v2920_v13 = vpop.f32.mrb[63].mxu0 }
 0x5d7   :  { %v2921_v26 = vadd.f32 %v2920_v13, %v2919_v14 }
 0x5d9   :  { %v1846_v52 = vpack.c.bf16 %v2921_v26, %v2918_v15 }
 0x5db   :  { %v2922_v7 = vpop.f32.mrb[64].mxu0  ;;  %3022 = vmatmul.mubr.msk.bf16.vlgmr.msra.gmra.mrb[72].mxu0 %vm5744_vm10, %v1846_v52  ;;  %vm5760_vm10 = vmmov %vm5756_vm0 }
 0x5dc   :  { %v2923_v3 = vpop.f32.mrb[65].mxu0 }
 0x5dd   :  { %v2924_v58 = vadd.f32 %v2923_v3, %v2922_v7  ;;  %v2925_v50 = vpop.f32.mrb[66].mxu0 }
 0x5de   :  { %v2926_v49 = vpop.f32.mrb[67].mxu0 }
 0x5df   :  { %v2927_v5 = vadd.f32 %v2926_v49, %v2925_v50 }
 0x5e1   :  { %v1847_v54 = vpack.c.bf16 %v2927_v5, %v2924_v58  ;;  %v2756_v5 = vld [vmem:[%s5413_s11] ss:$0 sm:$0xff] }
 0x5e3   :  { %3025 = vmatprep.mubr.msk.bf16.mxu0 %vm5745_vm15, %v1847_v54  ;;  %vm5761_vm15 = vmmov %vm5756_vm0 }
 0x62d   :  { %v2928_v38 = vpop.f32.mrb[68].mxu0 }
 0x62e   :  { %v2929_v57 = vpop.f32.mrb[69].mxu0 }
 0x62f   :  { %v2930_v39 = vadd.f32 %v2929_v57, %v2928_v38  ;;  %v2931_v16 = vpop.f32.mrb[70].mxu0 }
 0x630   :  { %v2932_v42 = vpop.f32.mrb[71].mxu0 }
 0x631   :  { %v2933_v60 = vadd.f32 %v2932_v42, %v2931_v16 }
 0x633   :  { %v1848_v23 = vpack.c.bf16 %v2933_v60, %v2930_v39 }
 0x635   :  { %3026 = vmatmul.mubr.msk.bf16.gmra.mrb[76].mxu0 %vm5746_vm2, %v1848_v23  ;;  %vm5762_vm2 = vmmov %vm5756_vm0 }
 0x6ae   :  { %v3023_v18 = vpop.f32.mrb[72].mxu0 }
 0x6af   :  { %v2151_v6 = vpop.f32.mrb[73].mxu0  ;;  %v2199_v17 = vadd.f32 %v3023_v18, %v2748_v9 }
 0x6b0   :  { %v3024_v29 = vpop.f32.mrb[74].mxu0  ;;  %v2197_v47 = vadd.f32 %v2748_v9, %v2151_v6 }
 0x6b1   :  { %v2200_v61 = vadd.f32 %v3024_v29, %v2748_v9  ;;  %v2154_v20 = vpop.f32.mrb[75].mxu0 }
 0x6b2   :  { %v2198_v2 = vadd.f32 %v2748_v9, %v2154_v20 }
 0x6b3   :  { %v2206_v51 = vpack.c.bf16 %v2200_v61, %v2199_v17 }
 0x6b4   :  { %v2205_v34 = vpack.c.bf16 %v2198_v2, %v2197_v47 }
 0x6b6   :  { %3033 = vmatprep.mubr.msk.bf16.mxu1 %vm5747_vm5, %v2205_v34  ;;  %vm5763_vm5 = vmmov %vm5756_vm0 }
 0x6b7   :  { %3034 = vmatmul.mubr.msk.bf16.vlgmr.msra.gmra.mrb[64].mxu1 %vm5748_vm6, %v2206_v51  ;;  %vm5764_vm6 = vmmov %vm5756_vm0 }
 0x6b8   :  { %3042 = vmatpush3.bf16.msra.mxu1 %v3139_v53 }
 0x6b9   :  { %3043 = vmatprep.subr.bf16.mxu1 %v3140_v44 }
 0x6bc   :  { %3044 = vmatpush3.bf16.msra.mxu1 %v3140_v44 }
 0x6bd   :  { %3045 = vmatprep.subr.bf16.mxu1 %v3141_v32 }
 0x6c0   :  { %3046 = vmatpush3.bf16.msra.mxu1 %v3141_v32 }
 0x6c1   :  { %3047 = vmatprep.subr.bf16.mxu1 %v3142_v0 }
 0x6c4   :  { %3048 = vmatpush3.bf16.msra.mxu1 %v3142_v0 }
 0x708   :  { %v3027_v19 = vpop.f32.mrb[76].mxu0 }
 0x709   :  { %v2167_v28 = vpop.f32.mrb[77].mxu0  ;;  %v2203_v12 = vadd.f32 %v3027_v19, %v2748_v9 }
 0x70a   :  { %v3028_v37 = vpop.f32.mrb[78].mxu0  ;;  %v2201_v55 = vadd.f32 %v2748_v9, %v2167_v28 }
 0x70b   :  { %v2204_v59 = vadd.f32 %v3028_v37, %v2748_v9  ;;  %v2170_v1 = vpop.f32.mrb[79].mxu0 }
 0x70c   :  { %v2202_v8 = vadd.f32 %v2748_v9, %v2170_v1 }
 0x70d   :  { %v2208_v21 = vpack.c.bf16 %v2204_v59, %v2203_v12 }
 0x70e   :  { %v2207_v40 = vpack.c.bf16 %v2202_v8, %v2201_v55 }
 0x710   :  { %3037 = vmatprep.mubr.msk.bf16.mxu1 %vm5749_vm4, %v2207_v40  ;;  %vm5765_vm4 = vmmov %vm5756_vm0 }
 0x711   :  { %3038 = vmatmul.mubr.msk.bf16.gmra.mrb[68].mxu1 %vm5750_vm9, %v2208_v21  ;;  %vm5766_vm9 = vmmov %vm5756_vm0 }
 0x78a   :  { %v3035_v10 = vpop.f32.mrb[64].mxu1 }
 0x78b   :  { %v2287_v63 = vadd.f32 %v3035_v10, %v2749_v45  ;;  %v2278_v41 = vpop.f32.mrb[65].mxu1 }
 0x78c   :  { %v2279_v4 = vadd.f32 %v2749_v45, %v2278_v41  ;;  %v3036_v30 = vpop.f32.mrb[66].mxu1 }
 0x78d   :  { %v2290_v56 = vadd.f32 %v3036_v30, %v2749_v45  ;;  %v2281_v33 = vpop.f32.mrb[67].mxu1  ;;  %v2311_v24 = vmax.f32 %v2287_v63, 0.0 }
 0x78e   :  { %v2282_v11 = vadd.f32 %v2749_v45, %v2281_v33  ;;  %v2309_v36 = vmax.f32 %v2279_v4, 0.0 }
 0x78f   :  { %v2312_v46 = vmax.f32 %v2290_v56, 0.0 }
 0x790   :  { %v2310_v43 = vmax.f32 %v2282_v11, 0.0 }
 0x791   :  { %v2318_v22 = vpack.c.bf16 %v2312_v46, %v2311_v24  ;;  %v3373_v46 = vmov 0.0|0.0  }
 0x792   :  { %v2317_v31 = vpack.c.bf16 %v2310_v43, %v2309_v36  ;;  %3076 = vmatprep.subr.bf16.mxu1 %v3373_v46 }
 0x794   :  { %3049 = vmatprep.mubr.msk.bf16.mxu1 %vm5751_vm8, %v2317_v31  ;;  %vm5767_vm8 = vmmov %vm5756_vm0 }
 0x795   :  { %3050 = vmatmul.mubr.msk.bf16.vlgmr.msra.gmra.mrb[72].mxu1 %vm5752_vm12, %v2318_v22  ;;  %vm5768_vm12 = vmmov %vm5756_vm0 }
 0x7e4   :  { %v3039_v35 = vpop.f32.mrb[68].mxu1 }
 0x7e5   :  { %v2303_v27 = vadd.f32 %v3039_v35, %v2749_v45  ;;  %v2294_v62 = vpop.f32.mrb[69].mxu1 }
 0x7e6   :  { %v2295_v25 = vadd.f32 %v2749_v45, %v2294_v62  ;;  %v3040_v15 = vpop.f32.mrb[70].mxu1 }
 0x7e7   :  { %v2306_v14 = vadd.f32 %v3040_v15, %v2749_v45  ;;  %v2297_v13 = vpop.f32.mrb[71].mxu1  ;;  %v2315_v52 = vmax.f32 %v2303_v27, 0.0 }
 0x7e8   :  { %v2298_v26 = vadd.f32 %v2749_v45, %v2297_v13  ;;  %v2313_v3 = vmax.f32 %v2295_v25, 0.0 }
 0x7e9   :  { %v2316_v7 = vmax.f32 %v2306_v14, 0.0 }
 0x7ea   :  { %v2314_v58 = vmax.f32 %v2298_v26, 0.0 }
 0x7eb   :  { %v2320_v50 = vpack.c.bf16 %v2316_v7, %v2315_v52 }
 0x7ec   :  { %v2319_v49 = vpack.c.bf16 %v2314_v58, %v2313_v3 }
 0x7ee   :  { %3053 = vmatprep.mubr.msk.bf16.mxu1 %vm5753_vm3, %v2319_v49  ;;  %vm5769_vm3 = vmmov %vm5756_vm0 }
 0x7ef   :  { %3054 = vmatmul.mubr.msk.bf16.gmra.mrb[76].mxu1 %vm5754_vm1, %v2320_v50  ;;  %vm5770_vm1 = vmmov %vm5756_vm0 }
 0x868   :  { %v3051_v54 = vpop.f32.mrb[72].mxu1 }
 0x869   :  { %v2406_v38 = vpop.f32.mrb[73].mxu1  ;;  %v2415_v42 = vadd.f32 %v3051_v54, %v2756_v5 }
 0x86a   :  { %v2407_v57 = vadd.f32 %v2756_v5, %v2406_v38  ;;  %v3052_v39 = vpop.f32.mrb[74].mxu1 }
 0x86b   :  { %v2409_v16 = vpop.f32.mrb[75].mxu1  ;;  %v2418_v23 = vadd.f32 %v3052_v39, %v2756_v5  ;;  %v2443_v18 = vsel %vm5757_vm7, %v2415_v42, 0.0 }
 0x86c   :  { %v2410_v60 = vadd.f32 %v2756_v5, %v2409_v16  ;;  %v2437_v48 = vsel %vm5755_vm14, %v2407_v57, 0.0  ;;  %vm3374_vm14 = vmmov 0  }
 0x86d   :  { %2438 = vadd.xlane.f32.xlu1 %v2437_v48  ;;  %v2446_v9 = vsel %vm5758_vm13, %v2418_v23, 0.0 }
 0x86e   :  { %v2440_v53 = vsel %vm5756_vm0, %v2410_v60, 0.0 }
 0x86f   :  { %2441 = vadd.xlane.f32.xlu0 %v2440_v53  ;;  %v3375_v53 = vmov 0.0  }
 0x870   :  { %3073 = vmatprep.mubr.msk.f32.mxu1 %vm3374_vm14, %v3375_v53 }
 0x871   :  { %2444 = vadd.xlane.f32.xlu1 %v2443_v18 }
 0x873   :  { %2447 = vadd.xlane.f32.xlu0 %v2446_v9 }
 0x8c2   :  { %v3055_v6 = vpop.f32.mrb[76].mxu1 }
 0x8c3   :  { %v2422_v29 = vpop.f32.mrb[77].mxu1  ;;  %v2431_v47 = vadd.f32 %v3055_v6, %v2756_v5 }
 0x8c4   :  { %v2423_v17 = vadd.f32 %v2756_v5, %v2422_v29  ;;  %v3056_v61 = vpop.f32.mrb[78].mxu1 }
 0x8c5   :  { %v2425_v20 = vpop.f32.mrb[79].mxu1  ;;  %v2434_v34 = vadd.f32 %v3056_v61, %v2756_v5  ;;  %v2455_v19 = vsel %vm5761_vm15, %v2431_v47, 0.0 }
 0x8c6   :  { %v2426_v2 = vadd.f32 %v2756_v5, %v2425_v20  ;;  %v2449_v51 = vsel %vm5759_vm11, %v2423_v17, 0.0 }
 0x8c7   :  { %2450 = vadd.xlane.f32.xlu1 %v2449_v51  ;;  %v2458_v28 = vsel %vm5762_vm2, %v2434_v34, 0.0 }
 0x8c8   :  { %v2452_v44 = vsel %vm5760_vm10, %v2426_v2, 0.0 }
 0x8c9   :  { %2453 = vadd.xlane.f32.xlu0 %v2452_v44 }
 0x8cb   :  { %2456 = vadd.xlane.f32.xlu1 %v2455_v19 }
 0x8cd   :  { %2459 = vadd.xlane.f32.xlu0 %v2458_v28 }
 0x8fa   :  { %v2439_v37 = vpop.xlane.xlu1 %2438 }
 0x8fb   :  { %v2462_v12 = vmul.f32 0.03125, %v2439_v37 }
 0x8fc   :  { %v2442_v59 = vpop.xlane.xlu0 %2441 }
 0x8fd   :  { %v5318_v1 = vsub.f32 %v2407_v57, %v2462_v12  ;;  %v2463_v32 = vmul.f32 0.03125, %v2442_v59 }
 0x8fe   :  { %v2445_v55 = vpop.xlane.xlu1 %2444 }
 0x8ff   :  { %v5320_v8 = vsub.f32 %v2410_v60, %v2463_v32  ;;  %v2464_v21 = vmul.f32 0.03125, %v2445_v55  ;;  %v2478_v40 = vmul.f32 %v5318_v1, %v5318_v1 }
 0x900   :  { %v2448_v0 = vpop.xlane.xlu0 %2447 }
 0x901   :  { %v5324_v45 = vsub.f32 %v2415_v42, %v2464_v21  ;;  %v2465_v10 = vmul.f32 0.03125, %v2448_v0  ;;  %v2486_v63 = vsel %vm5763_vm5, %v2478_v40, 0.0  ;;  %v2479_v41 = vmul.f32 %v5320_v8, %v5320_v8 }
 0x902   :  { %2487 = vadd.xlane.f32.xlu1 %v2486_v63 }
 0x903   :  { %v5329_v4 = vsub.f32 %v2418_v23, %v2465_v10  ;;  %v2480_v30 = vmul.f32 %v5324_v45, %v5324_v45  ;;  %v2489_v56 = vsel %vm5764_vm6, %v2479_v41, 0.0  ;;  %v5362_v41 = vld [vmem:[%s5414_s12] ss:$0 sm:$0xff] }
 0x904   :  { %2490 = vadd.xlane.f32.xlu0 %v2489_v56  ;;  %v2598_v56 = vmul.f32 %v5362_v41, %v5318_v1 }
 0x905   :  { %v2492_v33 = vsel %vm5765_vm4, %v2480_v30, 0.0  ;;  %v2481_v11 = vmul.f32 %v5329_v4, %v5329_v4 }
 0x906   :  { %2493 = vadd.xlane.f32.xlu1 %v2492_v33  ;;  %v2599_v33 = vmul.f32 %v5362_v41, %v5320_v8 }
 0x907   :  { %v2495_v24 = vsel %vm5766_vm9, %v2481_v11, 0.0 }
 0x908   :  { %2496 = vadd.xlane.f32.xlu0 %v2495_v24 }
 0x954   :  { %v2451_v36 = vpop.xlane.xlu1 %2450 }
 0x955   :  { %v2466_v43 = vmul.f32 0.03125, %v2451_v36  ;;  %v5371_v36 = vld [vmem:[%s5415_s13] ss:$0 sm:$0xff] }
 0x956   :  { %v2454_v22 = vpop.xlane.xlu0 %2453 }
 0x957   :  { %v5339_v31 = vsub.f32 %v2423_v17, %v2466_v43  ;;  %v2467_v35 = vmul.f32 0.03125, %v2454_v22  ;;  %v2600_v22 = vmul.f32 %v5362_v41, %v5324_v45 }
 0x958   :  { %v2457_v27 = vpop.xlane.xlu1 %2456 }
 0x959   :  { %v5341_v62 = vsub.f32 %v2426_v2, %v2467_v35  ;;  %v2468_v25 = vmul.f32 0.03125, %v2457_v27  ;;  %v2482_v15 = vmul.f32 %v5339_v31, %v5339_v31  ;;  %v2601_v27 = vmul.f32 %v5362_v41, %v5329_v4 }
 0x95a   :  { %v2460_v14 = vpop.xlane.xlu0 %2459 }
 0x95b   :  { %v5345_v13 = vsub.f32 %v2431_v47, %v2468_v25  ;;  %v2469_v26 = vmul.f32 0.03125, %v2460_v14  ;;  %v2498_v52 = vsel %vm5767_vm8, %v2482_v15, 0.0  ;;  %v2483_v7 = vmul.f32 %v5341_v62, %v5341_v62 }
 0x95c   :  { %2499 = vadd.xlane.f32.xlu1 %v2498_v52 }
 0x95d   :  { %v5350_v3 = vsub.f32 %v2434_v34, %v2469_v26  ;;  %v2484_v58 = vmul.f32 %v5345_v13, %v5345_v13  ;;  %v2501_v50 = vsel %vm5768_vm12, %v2483_v7, 0.0 }
 0x95e   :  { %2502 = vadd.xlane.f32.xlu0 %v2501_v50 }
 0x95f   :  { %v2504_v49 = vsel %vm5769_vm3, %v2484_v58, 0.0  ;;  %v2485_v5 = vmul.f32 %v5350_v3, %v5350_v3 }
 0x960   :  { %2505 = vadd.xlane.f32.xlu1 %v2504_v49 }
 0x961   :  { %v2507_v54 = vsel %vm5770_vm1, %v2485_v5, 0.0 }
 0x962   :  { %2508 = vadd.xlane.f32.xlu0 %v2507_v54 }
 0x98f   :  { %v2488_v38 = vpop.xlane.xlu1 %2487 }
 0x990   :  { %v2511_v57 = vmul.f32 0.032258064, %v2488_v38 }
 0x991   :  { %v2491_v39 = vpop.xlane.xlu0 %2490 }
 0x992   :  { %3335 = vrsqrt.f32 %v2511_v57  ;;  %v2512_v16 = vmul.f32 0.032258064, %v2491_v39  ;;  %vm2521_vm0 = vcmp.eq.f32.partialorder %v2511_v57, inf  ;;  %v2524_v6 = vand.u32 2147483648, %v2511_v57 }
 0x993   :  { %v2494_v42 = vpop.xlane.xlu1 %2493  ;;  %vm2523_vm7 = vcmp.eq.f32.partialorder %v2511_v57, 0.0 }
 0x994   :  { %v2513_v60 = vmul.f32 0.032258064, %v2494_v42  ;;  %3337 = vrsqrt.f32 %v2512_v16  ;;  %vm2528_vm13 = vcmp.eq.f32.partialorder %v2512_v16, inf  ;;  %v2531_v51 = vand.u32 2147483648, %v2512_v16 }
 0x995   :  { %v2497_v48 = vpop.xlane.xlu0 %2496  ;;  %vm2530_vm11 = vcmp.eq.f32.partialorder %v2512_v16, 0.0 }
 0x996   :  { %3339 = vrsqrt.f32 %v2513_v60  ;;  %v2514_v23 = vmul.f32 0.032258064, %v2497_v48  ;;  %vm2535_vm10 = vcmp.eq.f32.partialorder %v2513_v60, inf  ;;  %v2538_v19 = vand.u32 2147483648, %v2513_v60 }
 0x997   :  { %vm2537_vm15 = vcmp.eq.f32.partialorder %v2513_v60, 0.0 }
 0x998   :  { %3341 = vrsqrt.f32 %v2514_v23  ;;  %vm2542_vm2 = vcmp.eq.f32.partialorder %v2514_v23, inf  ;;  %v2545_v40 = vand.u32 2147483648, %v2514_v23  ;;  %vm2544_vm5 = vcmp.eq.f32.partialorder %v2514_v23, 0.0 }
 0x99c   :  { %v3336_v18 = vpop.eup %3335 }
 0x99d   :  { %v2520_v9 = vmul.f32 %v3336_v18, %v2511_v57 }
 0x99e   :  { %v3338_v29 = vpop.eup %3337 }
 0x99f   :  { %v2522_v17 = vsel %vm2521_vm0, %v2511_v57, %v2520_v9  ;;  %v2527_v47 = vmul.f32 %v3338_v29, %v2512_v16  ;;  %vm5771_vm0 = vcmask 523264  }
 0x9a0   :  { %v3340_v61 = vpop.eup %3339  ;;  %v2525_v20 = vsel %vm2523_vm7, %v2524_v6, %v2522_v17  ;;  %vm2703_vm7 = vcmask 257024  }
 0x9a1   :  { %v2575_v2 = vadd.f32 1e-06, %v2525_v20  ;;  %v2534_v34 = vmul.f32 %v3340_v61, %v2513_v60  ;;  %v2529_v44 = vsel %vm2528_vm13, %v2512_v16, %v2527_v47 }
 0x9a2   :  { %v3342_v28 = vpop.eup %3341  ;;  %v2532_v37 = vsel %vm2530_vm11, %v2531_v51, %v2529_v44 }
 0x9a3   :  { %3343 = vrcp.f32 %v2575_v2  ;;  %v2536_v12 = vsel %vm2535_vm10, %v2513_v60, %v2534_v34  ;;  %v2576_v59 = vadd.f32 1e-06, %v2532_v37  ;;  %v2541_v55 = vmul.f32 %v3342_v28, %v2514_v23 }
 0x9a4   :  { %v2539_v32 = vsel %vm2537_vm15, %v2538_v19, %v2536_v12 }
 0x9a5   :  { %v2577_v21 = vadd.f32 1e-06, %v2539_v32  ;;  %3345 = vrcp.f32 %v2576_v59  ;;  %v2543_v0 = vsel %vm2542_vm2, %v2514_v23, %v2541_v55  ;;  %v2602_v55 = vmul.f32 %v5362_v41, %v5339_v31 }
 0x9a6   :  { %v2546_v10 = vsel %vm2544_vm5, %v2545_v40, %v2543_v0 }
 0x9a7   :  { %3347 = vrcp.f32 %v2577_v21  ;;  %v2578_v63 = vadd.f32 1e-06, %v2546_v10  ;;  %v2603_v21 = vmul.f32 %v5362_v41, %v5341_v62 }
 0x9a9   :  { %3349 = vrcp.f32 %v2578_v63  ;;  %v2604_v63 = vmul.f32 %v5362_v41, %v5345_v13 }
 0x9ad   :  { %v3344_v30 = vpop.eup %3343 }
 0x9ae   :  { %v2606_v11 = vmul.f32 %v3344_v30, %v2598_v56  ;;  %v2605_v56 = vmul.f32 %v5362_v41, %v5350_v3  ;;  %v2629_v3 = vld [vmem:[%s5416_s3] sm:$0xf] }
 0x9af   :  { %v3346_v24 = vpop.eup %3345 }
 0x9b0   :  { %v2607_v35 = vmul.f32 %v3346_v24, %v2599_v33  ;;  %v2621_v1 = vadd.f32 %v5371_v36, %v2606_v11 }
 0x9b1   :  { %v3348_v43 = vpop.eup %3347 }
 0x9b2   :  { %v2622_v25 = vadd.f32 %v5371_v36, %v2607_v35  ;;  %v2608_v8 = vmul.f32 %v3348_v43, %v2600_v22 }
 0x9b3   :  { %v3350_v15 = vpop.eup %3349 }
 0x9b4   :  { %v3077_v14 = vpack.c.bf16 %v2622_v25, %v2621_v1  ;;  %v2609_v26 = vmul.f32 %v3350_v15, %v2601_v27  ;;  %v2623_v52 = vadd.f32 %v5371_v36, %v2608_v8 }
 0x9b6   :  { %3078 = vmatpush3.bf16.msra.mxu1 %v3077_v14  ;;  %v2624_v7 = vadd.f32 %v5371_v36, %v2609_v26 }
 0x9b7   :  { %3079 = vmatprep.subr.bf16.mxu1 %v3373_v46 }
 0x9b8   :  { %v3080_v45 = vpack.c.bf16 %v2624_v7, %v2623_v52 }
 0x9ba   :  { %3081 = vmatpush3.bf16.msra.mxu1 %v3080_v45 }
 0x9bb   :  { %3082 = vmatprep.subr.bf16.mxu1 %v3373_v46 }
 0x9e9   :  { %v2500_v4 = vpop.xlane.xlu1 %2499 }
 0x9ea   :  { %v2515_v58 = vmul.f32 0.032258064, %v2500_v4 }
 0x9eb   :  { %v2503_v50 = vpop.xlane.xlu0 %2502 }
 0x9ec   :  { %3351 = vrsqrt.f32 %v2515_v58  ;;  %v2516_v49 = vmul.f32 0.032258064, %v2503_v50  ;;  %vm2549_vm6 = vcmp.eq.f32.partialorder %v2515_v58, inf  ;;  %v2552_v42 = vand.u32 2147483648, %v2515_v58 }
 0x9ed   :  { %v2506_v5 = vpop.xlane.xlu1 %2505  ;;  %vm2551_vm4 = vcmp.eq.f32.partialorder %v2515_v58, 0.0 }
 0x9ee   :  { %v2517_v54 = vmul.f32 0.032258064, %v2506_v5  ;;  %3353 = vrsqrt.f32 %v2516_v49  ;;  %vm2556_vm9 = vcmp.eq.f32.partialorder %v2516_v49, inf  ;;  %v2559_v6 = vand.u32 2147483648, %v2516_v49 }
 0x9ef   :  { %v2509_v38 = vpop.xlane.xlu0 %2508  ;;  %vm2558_vm8 = vcmp.eq.f32.partialorder %v2516_v49, 0.0 }
 0x9f0   :  { %3355 = vrsqrt.f32 %v2517_v54  ;;  %v2518_v57 = vmul.f32 0.032258064, %v2509_v38  ;;  %vm2563_vm12 = vcmp.eq.f32.partialorder %v2517_v54, inf  ;;  %v2566_v61 = vand.u32 2147483648, %v2517_v54 }
 0x9f1   :  { %vm2565_vm3 = vcmp.eq.f32.partialorder %v2517_v54, 0.0 }
 0x9f2   :  { %3357 = vrsqrt.f32 %v2518_v57  ;;  %vm2570_vm1 = vcmp.eq.f32.partialorder %v2518_v57, inf  ;;  %v2573_v28 = vand.u32 2147483648, %v2518_v57  ;;  %vm2572_vm14 = vcmp.eq.f32.partialorder %v2518_v57, 0.0 }
 0x9f6   :  { %v3352_v39 = vpop.eup %3351 }
 0x9f7   :  { %v2548_v16 = vmul.f32 %v3352_v39, %v2515_v58 }
 0x9f8   :  { %v3354_v60 = vpop.eup %3353 }
 0x9f9   :  { %v2550_v48 = vsel %vm2549_vm6, %v2515_v58, %v2548_v16  ;;  %v2555_v18 = vmul.f32 %v3354_v60, %v2516_v49 }
 0x9fa   :  { %v3356_v23 = vpop.eup %3355  ;;  %v2553_v53 = vsel %vm2551_vm4, %v2552_v42, %v2550_v48 }
 0x9fb   :  { %v2579_v9 = vadd.f32 1e-06, %v2553_v53  ;;  %v2562_v29 = vmul.f32 %v3356_v23, %v2517_v54  ;;  %v2557_v17 = vsel %vm2556_vm9, %v2516_v49, %v2555_v18 }
 0x9fc   :  { %v3358_v20 = vpop.eup %3357  ;;  %v2560_v47 = vsel %vm2558_vm8, %v2559_v6, %v2557_v17 }
 0x9fd   :  { %3359 = vrcp.f32 %v2579_v9  ;;  %v2564_v2 = vsel %vm2563_vm12, %v2517_v54, %v2562_v29  ;;  %v2580_v51 = vadd.f32 1e-06, %v2560_v47  ;;  %v2569_v44 = vmul.f32 %v3358_v20, %v2518_v57 }
 0x9fe   :  { %v2567_v34 = vsel %vm2565_vm3, %v2566_v61, %v2564_v2 }
 0x9ff   :  { %v2581_v19 = vadd.f32 1e-06, %v2567_v34  ;;  %3361 = vrcp.f32 %v2580_v51  ;;  %v2571_v37 = vsel %vm2570_vm1, %v2518_v57, %v2569_v44 }
 0xa00   :  { %v2574_v12 = vsel %vm2572_vm14, %v2573_v28, %v2571_v37 }
 0xa01   :  { %3363 = vrcp.f32 %v2581_v19  ;;  %v2582_v59 = vadd.f32 1e-06, %v2574_v12 }
 0xa03   :  { %3365 = vrcp.f32 %v2582_v59 }
 0xa07   :  { %v3360_v32 = vpop.eup %3359 }
 0xa08   :  { %v2610_v40 = vmul.f32 %v3360_v32, %v2602_v55 }
 0xa09   :  { %v3362_v0 = vpop.eup %3361 }
 0xa0a   :  { %v2611_v30 = vmul.f32 %v3362_v0, %v2603_v21  ;;  %v2625_v33 = vadd.f32 %v5371_v36, %v2610_v40 }
 0xa0b   :  { %v3364_v10 = vpop.eup %3363 }
 0xa0c   :  { %v2626_v11 = vadd.f32 %v5371_v36, %v2611_v30  ;;  %v2612_v24 = vmul.f32 %v3364_v10, %v2604_v63 }
 0xa0d   :  { %v3366_v43 = vpop.eup %3365 }
 0xa0e   :  { %v3083_v31 = vpack.c.bf16 %v2626_v11, %v2625_v33  ;;  %v2613_v22 = vmul.f32 %v3366_v43, %v2605_v56  ;;  %v2627_v62 = vadd.f32 %v5371_v36, %v2612_v24 }
 0xa10   :  { %3084 = vmatpush3.bf16.msra.mxu1 %v3083_v31  ;;  %v2628_v35 = vadd.f32 %v5371_v36, %v2613_v22 }
 0xa11   :  { %3085 = vmatprep.subr.bf16.mxu1 %v3373_v46 }
 0xa12   :  { %v3086_v13 = vpack.c.bf16 %v2628_v35, %v2627_v62 }
 0xa14   :  { %3087 = vmatpush3.bf16.msra.mxu1 %v3086_v13 }
 0xa17   :  { %3074 = vmatmul.mubr.msk.f32.vlgmr.msra.gmra.mrb[80].mxu1 %vm5771_vm0, %v2629_v3 }
 0xaea   :  { %v2699_v41 = vpop.f32.mrb[80].mxu1 }
 0xaeb   :  { %2704 = vst.msk [vmem:[%s5417_s14] sm:$0xf] %vm2703_vm7, %v2699_v41  ;;  %v3075_v27 = vpop.f32.mrb[81].mxu1 }

</bundles_post_ra>
